<compile_context>
chip_gen: v7x
topology: tpu7x:2x2x1
jax: 0.10.0
libtpu: 0.0.40
codegen_flags: <defaults>
</compile_context>

<pallas_src>
import functools
import math

import jax
import jax.numpy as jnp
from jax import lax
from jax.experimental import pallas as pl
from jax.experimental.pallas import tpu as pltpu

_EPS = 1e-7
_TWO_OVER_PI = 2.0 / math.pi


def _sum_all_2d(x):
    # Full reduction that stays >= 2-D at every step (Mosaic-friendly) -> (1, 1).
    return jnp.sum(jnp.sum(x, axis=-1, keepdims=True), axis=-2, keepdims=True)


def _bbox_loss_kernel(ifeat_ref, jfeat_ref, weff_ref, pd_ref, pkw_ref,
                      out_iou_ref, out_dfl_ref, acc_ref, *, reg_max, dfl_width):
    j = pl.program_id(1)
    nj = pl.num_programs(1)

    @pl.when(j == 0)
    def _():
        acc_ref[...] = jnp.zeros_like(acc_ref)

    # Packed i-side attributes, (TI, 16): x1, y1, x2, y2, area1, cx, cy, atan, valid.
    f = ifeat_ref[...]
    x1, y1, x2, y2 = f[:, 0:1], f[:, 1:2], f[:, 2:3], f[:, 3:4]
    area1, cx1, cy1, at1 = f[:, 4:5], f[:, 5:6], f[:, 6:7], f[:, 7:8]
    valid = f[:, 8:9]

    # Packed j-side attributes, (8, TJ): x1, y1, x2, y2, area2+eps, cx, cy, atan.
    g = jfeat_ref[...]
    x1r, y1r, x2r, y2r = g[0:1, :], g[1:2, :], g[2:3, :], g[3:4, :]
    area2e, cx2, cy2, at2 = g[4:5, :], g[5:6, :], g[6:7, :], g[7:8, :]

    # ---- pairwise CIoU on the (TI, TJ) block: the O(N^2) hot path ----
    inter = (jnp.maximum(jnp.minimum(x2, x2r) - jnp.maximum(x1, x1r), 0.0)
             * jnp.maximum(jnp.minimum(y2, y2r) - jnp.maximum(y1, y1r), 0.0))
    union = area1 + area2e - inter                 # +eps already folded into area2e
    cw = jnp.maximum(x2, x2r) - jnp.minimum(x1, x1r)
    ch = jnp.maximum(y2, y2r) - jnp.minimum(y1, y1r)
    c2 = cw * cw + ch * ch + _EPS
    r_uc = pl.reciprocal(union * c2)               # one exact recip shared by iou & rho2/c2
    iou = inter * c2 * r_uc
    dcx, dcy = cx2 - cx1, cy2 - cy1
    rho2 = dcx * dcx + dcy * dcy                   # centers pre-halved -> no /4
    da = at2 - at1
    v = da * da                                    # atan pre-scaled by 2/pi -> no 4/pi^2
    # alpha denominator = v - iou + 1 + eps is >= ~eps and typically ~1 -> approx is safe.
    alpha = v * pl.reciprocal(v - iou + (1.0 + _EPS), approx=True)
    one_minus_ciou = (1.0 - iou) + rho2 * union * r_uc + v * alpha

    # Weighted row reduction over this j-tile on the MXU (weights are 0 on padded j).
    acc_ref[...] += jnp.dot(one_minus_ciou, weff_ref[...],
                            preferred_element_type=jnp.float32,
                            precision=lax.Precision.HIGHEST)

    @pl.when(j == nj - 1)
    def _():
        out_iou_ref[...] = jnp.broadcast_to(
            _sum_all_2d(acc_ref[...] * valid), out_iou_ref.shape)

    @pl.when(j == 0)
    def _():
        # ---- Distribution Focal Loss (runs once per i-tile) ----
        # loss terms = sum_s [ logsumexp_s(logits) ] - sum_lanes logits * pick_w,
        # with pick_w precomputed in the wrapper (one-hot(tl)*wl + one-hot(tr)*wr).
        r = reg_max
        logits = pd_ref[...]                                   # (TI, DW), zero-padded lanes
        lane = lax.broadcasted_iota(jnp.int32, (1, dfl_width), 1)
        seg_masks, seg_max = [], []
        m_full = jnp.zeros_like(logits)
        for s in range(4):
            sm = (lane >= s * r) & (lane < (s + 1) * r)        # (1, DW)
            mx = jnp.max(jnp.where(sm, logits, -1e30), axis=-1, keepdims=True)
            seg_masks.append(sm)
            seg_max.append(mx)
            m_full = m_full + jnp.where(sm, mx, 0.0)
        e = jnp.exp(logits - m_full)                           # one EUP pass over all lanes
        lse = jnp.zeros_like(seg_max[0])                       # (TI, 1)
        for s in range(4):
            ssum = jnp.sum(jnp.where(seg_masks[s], e, 0.0), axis=-1, keepdims=True)
            lse = lse + seg_max[s] + jnp.log(ssum)
        picked = jnp.sum(logits * pkw_ref[...], axis=-1, keepdims=True)
        out_dfl_ref[...] = jnp.broadcast_to(
            _sum_all_2d((lse - picked) * valid), out_dfl_ref.shape)


def _pick_tiles(n_pad):
    # i axis: 256 rows/tile for larger problems (and so that >=2 tiles exist for
    # megacore), else 128.  j axis: <=1024 columns/tile bounds the (TI, TJ) temp
    # live set to ~10 MiB, safe on v7x's 64 MiB VMEM.
    ti = 256 if (n_pad % 256 == 0 and n_pad > 512) else 128
    if n_pad <= 1024:
        tj = n_pad
    else:
        tj = 1024
        while n_pad % tj:
            tj //= 2
    return ti, tj


def _bbox_loss_pallas(pred_dist, pred_bboxes, anchor_points, target_bboxes,
                      target_scores, reg_max, *, tile_i=None, tile_j=None):
    n = pred_bboxes.shape[0]
    n_pad = ((n + 127) // 128) * 128               # lane-dense padding
    pad = n_pad - n

    def pad_rows(x):
        return jnp.pad(x.astype(jnp.float32), ((0, pad), (0, 0)))

    pb = pad_rows(pred_bboxes)
    tb = pad_rows(target_bboxes)
    ap = pad_rows(anchor_points)

    # --- O(N) per-box prep hoisted out of the kernel (pred / i side) ---
    x1, y1, x2, y2 = pb[:, 0:1], pb[:, 1:2], pb[:, 2:3], pb[:, 3:4]
    w1, h1 = x2 - x1, y2 - y1
    # TODO(synk): arctan has no guaranteed Mosaic lowering; the O(N) per-box atan is
    # precomputed here (pre-scaled by 2/pi) while the O(N^2) CIoU stays in the kernel.
    at1 = _TWO_OVER_PI * jnp.arctan(w1 / (h1 + _EPS))
    valid = jnp.pad(jnp.ones((n, 1), jnp.float32), ((0, pad), (0, 0)))
    ifeat = jnp.concatenate(
        [x1, y1, x2, y2, w1 * h1, 0.5 * (x1 + x2), 0.5 * (y1 + y2), at1, valid,
         jnp.zeros((n_pad, 7), jnp.float32)], axis=1)          # (N_pad, 16)

    # --- target / j side packed as 8 rows ---
    tx1, ty1, tx2, ty2 = tb[:, 0:1], tb[:, 1:2], tb[:, 2:3], tb[:, 3:4]
    w2, h2 = tx2 - tx1, ty2 - ty1
    at2 = _TWO_OVER_PI * jnp.arctan(w2 / (h2 + _EPS))
    jfeat = jnp.concatenate(
        [tx1, ty1, tx2, ty2, w2 * h2 + _EPS, 0.5 * (tx1 + tx2), 0.5 * (ty1 + ty2),
         at2], axis=1).T                                       # (8, N_pad), +eps on all cols

    weight = jnp.pad(jnp.sum(target_scores.astype(jnp.float32), axis=-1,
                             keepdims=True), ((0, pad), (0, 0)))   # (N_pad, 1), 0 on pads

    # --- DFL prep: bbox2dist + one-hot pick weights, lane-padded to a multiple of 128 ---
    dw = max(128, ((4 * reg_max + 127) // 128) * 128)
    pd = jnp.pad(pred_dist.astype(jnp.float32), ((0, pad), (0, dw - 4 * reg_max)))
    tgt = jnp.clip(jnp.concatenate([ap - tb[:, :2], tb[:, 2:] - ap], axis=-1),
                   0.0, reg_max - 0.01)                        # (N_pad, 4)
    tl = jnp.floor(tgt)
    wl = (tl + 1.0) - tgt
    wr = 1.0 - wl
    tl_i = tl.astype(jnp.int32)                                # in [0, reg_max-1]
    tr_i = jnp.minimum(tl_i + 1, reg_max - 1)
    pkw = (jax.nn.one_hot(tl_i, reg_max, dtype=jnp.float32) * wl[..., None]
           + jax.nn.one_hot(tr_i, reg_max, dtype=jnp.float32) * wr[..., None])
    pkw = jnp.pad(pkw.reshape(n_pad, 4 * reg_max), ((0, 0), (0, dw - 4 * reg_max)))

    ti, tj = _pick_tiles(n_pad)
    if tile_i is not None:
        ti = tile_i
    if tile_j is not None:
        tj = tile_j
    ni, nj = n_pad // ti, n_pad // tj

    kernel = functools.partial(_bbox_loss_kernel, reg_max=reg_max, dfl_width=dw)
    out_iou, out_dfl = pl.pallas_call(
        kernel,
        out_shape=(jax.ShapeDtypeStruct((ni * 8, 128), jnp.float32),
                   jax.ShapeDtypeStruct((ni * 8, 128), jnp.float32)),
        grid=(ni, nj),
        in_specs=[
            pl.BlockSpec((ti, 16), lambda i, j: (i, 0)),       # packed i features
            pl.BlockSpec((8, tj), lambda i, j: (0, j)),        # packed j features
            pl.BlockSpec((tj, 1), lambda i, j: (j, 0)),        # weights column
            pl.BlockSpec((ti, dw), lambda i, j: (i, 0)),       # DFL logits
            pl.BlockSpec((ti, dw), lambda i, j: (i, 0)),       # DFL pick weights
        ],
        out_specs=(pl.BlockSpec((8, 128), lambda i, j: (i, 0)),
                   pl.BlockSpec((8, 128), lambda i, j: (i, 0))),
        scratch_shapes=[pltpu.VMEM((ti, 1), jnp.float32)],
        compiler_params=pltpu.CompilerParams(
            dimension_semantics=("parallel", "arbitrary"),     # i across TCs, j sequential
            vmem_limit_bytes=48 * 1024 * 1024),
    )(ifeat, jfeat, weight, pd, pkw)

    iou_sum = jnp.sum(out_iou.reshape(ni, 8, 128)[:, 0, 0])
    dfl_terms_sum = jnp.sum(out_dfl.reshape(ni, 8, 128)[:, 0, 0])
    wsum = jnp.sum(weight)
    # Reference DFL: mean over all 4N terms, times sum(weight.repeat(1, 4)).
    dfl_sum = dfl_terms_sum * wsum / float(n)
    return iou_sum, dfl_sum


class BboxLoss:
    """JAX/Pallas port of the PyTorch BboxLoss module (no learnable params)."""

    def __init__(self, reg_max_val, use_dfl=False):
        self.reg_max = reg_max_val
        self.use_dfl = use_dfl

    def __call__(self, pred_dist, pred_bboxes, anchor_points, target_bboxes,
                 target_scores, target_scores_sum, fg_mask_from_assigner,
                 *, tile_i=None, tile_j=None):
        del fg_mask_from_assigner  # not used by the reference forward either
        num_fg = pred_bboxes.shape[0]
        if num_fg == 0:
            return jnp.float32(0.0), jnp.float32(0.0)
        iou_sum, dfl_sum = _bbox_loss_pallas(
            pred_dist, pred_bboxes, anchor_points, target_bboxes,
            target_scores, self.reg_max, tile_i=tile_i, tile_j=tile_j)
        tss = jnp.asarray(target_scores_sum, jnp.float32)
        loss_iou = iou_sum / tss
        loss_dfl = dfl_sum / tss if self.use_dfl else jnp.float32(0.0)
        return loss_iou, loss_dfl


def _reference(pred_dist, pred_bboxes, anchor_points, target_bboxes,
               target_scores, target_scores_sum, reg_max, use_dfl):
    """Pure-JAX mirror of the PyTorch forward, for correctness checking."""
    eps = 1e-7
    weight = jnp.sum(target_scores, -1, keepdims=True)
    b1_x1, b1_y1, b1_x2, b1_y2 = jnp.split(pred_bboxes, 4, -1)
    b2_x1, b2_y1, b2_x2, b2_y2 = jnp.split(target_bboxes, 4, -1)
    w1, h1 = b1_x2 - b1_x1, b1_y2 - b1_y1
    w2, h2 = b2_x2 - b2_x1, b2_y2 - b2_y1
    inter = (jnp.clip(jnp.minimum(b1_x2, b2_x2.T) - jnp.maximum(b1_x1, b2_x1.T), 0.0)
             * jnp.clip(jnp.minimum(b1_y2, b2_y2.T) - jnp.maximum(b1_y1, b2_y1.T), 0.0))
    union = w1 * h1 + (w2 * h2).T - inter + eps
    iou = inter / union
    cw = jnp.maximum(b1_x2, b2_x2.T) - jnp.minimum(b1_x1, b2_x1.T)
    ch = jnp.maximum(b1_y2, b2_y2.T) - jnp.minimum(b1_y1, b2_y1.T)
    c2 = cw ** 2 + ch ** 2 + eps
    rho2 = (((b2_x1 + b2_x2).T - (b1_x1 + b1_x2)) ** 2
            + ((b2_y1 + b2_y2).T - (b1_y1 + b1_y2)) ** 2) / 4.0
    v = 4.0 / math.pi ** 2 * (jnp.arctan(w1 / (h1 + eps)) - jnp.arctan(w2 / (h2 + eps)).T) ** 2
    alpha = v / (v - iou + (1.0 + eps))
    ciou = iou - (rho2 / c2 + v * alpha)
    loss_iou = jnp.sum((1.0 - ciou[..., None]) * weight) / target_scores_sum

    if not use_dfl:
        return loss_iou, jnp.float32(0.0)
    x1y1, x2y2 = target_bboxes[:, :2], target_bboxes[:, 2:]
    ltrb = jnp.clip(jnp.concatenate([anchor_points - x1y1, x2y2 - anchor_points], -1),
                    0.0, reg_max - 0.01)
    pdist = pred_dist.reshape(-1, reg_max)
    t = ltrb.reshape(-1)
    tl = jnp.floor(t).astype(jnp.int32)
    wl = (tl + 1).astype(jnp.float32) - t
    wr = 1.0 - wl
    tl_c = jnp.clip(tl, 0, reg_max - 1)
    tr_c = jnp.clip(tl + 1, 0, reg_max - 1)
    logz = jax.scipy.special.logsumexp(pdist, axis=-1)
    ce_tl = logz - jnp.take_along_axis(pdist, tl_c[:, None], 1)[:, 0]
    ce_tr = logz - jnp.take_along_axis(pdist, tr_c[:, None], 1)[:, 0]
    m = jnp.mean(ce_tl * wl + ce_tr * wr)
    wrep = jnp.tile(weight, (1, 4)).reshape(-1, 1)
    loss_dfl = jnp.sum(m * wrep) / target_scores_sum
    return loss_iou, loss_dfl


def _make_inputs(key, n_fg, reg_max, nc):
    k1, k2, k3, k4, k5, k6 = jax.random.split(key, 6)
    xy1 = jax.random.uniform(k1, (n_fg, 2), jnp.float32, 0.0, 10.0)
    wh_p = jax.random.uniform(k2, (n_fg, 2), jnp.float32, 1.0, 6.0)
    pred_bboxes = jnp.concatenate([xy1, xy1 + wh_p], axis=-1)              # (N, 4) xyxy
    xy1_t = xy1 + jax.random.uniform(k3, (n_fg, 2), jnp.float32, -1.0, 1.0)
    wh_t = jax.random.uniform(k4, (n_fg, 2), jnp.float32, 1.0, 6.0)
    target_bboxes = jnp.concatenate([xy1_t, xy1_t + wh_t], axis=-1)        # (N, 4) xyxy
    anchor_points = (pred_bboxes[:, :2] + pred_bboxes[:, 2:]) / 2.0        # (N, 2)
    pred_dist = jax.random.normal(k5, (n_fg, 4 * reg_max), jnp.float32)    # (N, 4R)
    target_scores = jax.random.uniform(k6, (n_fg, nc), jnp.float32)        # (N, nc)
    tss = float(jnp.maximum(jnp.sum(target_scores), 1.0))
    return pred_dist, pred_bboxes, anchor_points, target_bboxes, target_scores, tss


if __name__ == "__main__":
    key = jax.random.PRNGKey(0)
    reg_max, nc = 16, 8
    k_small, k_big = jax.random.split(key)
    loss_mod = BboxLoss(reg_max, use_dfl=True)

    # Tolerance absorbs the approx reciprocal on the (well-conditioned) alpha
    # denominator plus MXU accumulation rounding.
    RTOL, ATOL = 5e-4, 1e-3

    # Case 1: tiny N -> single (i, j) tile.
    args_s = _make_inputs(k_small, 16, reg_max, nc)
    iou_s, dfl_s = loss_mod(*args_s, jnp.ones((16,), jnp.bool_))
    jax.block_until_ready((iou_s, dfl_s))
    ref_iou_s, ref_dfl_s = _reference(*args_s, reg_max, True)
    assert jnp.allclose(iou_s, ref_iou_s, rtol=RTOL, atol=ATOL), (iou_s, ref_iou_s)
    assert jnp.allclose(dfl_s, ref_dfl_s, rtol=RTOL, atol=ATOL), (dfl_s, ref_dfl_s)

    # Case 2: 2x2 tile grid -> exercises the j-axis scratch accumulator and the
    # "parallel" i axis (megacore path).
    args_b = _make_inputs(k_big, 200, reg_max, nc)
    iou_b, dfl_b = loss_mod(*args_b, jnp.ones((200,), jnp.bool_), tile_i=128, tile_j=128)
    jax.block_until_ready((iou_b, dfl_b))
    ref_iou_b, ref_dfl_b = _reference(*args_b, reg_max, True)
    assert jnp.allclose(iou_b, ref_iou_b, rtol=RTOL, atol=ATOL), (iou_b, ref_iou_b)
    assert jnp.allclose(dfl_b, ref_dfl_b, rtol=RTOL, atol=ATOL), (dfl_b, ref_dfl_b)

    print("KERNEL_OK")
</pallas_src>

<mosaic_0001>
module attributes {stable_mosaic.version = 11 : i64} {
  func.func @_bbox_loss_kernel(%arg0: i32, %arg1: i32, %arg2: memref<128x16xf32, #tpu.memory_space<vmem>>, %arg3: memref<8x128xf32, #tpu.memory_space<vmem>>, %arg4: memref<128x1xf32, #tpu.memory_space<vmem>>, %arg5: memref<128x128xf32, #tpu.memory_space<vmem>>, %arg6: memref<128x128xf32, #tpu.memory_space<vmem>>, %arg7: memref<8x128xf32, #tpu.memory_space<vmem>>, %arg8: memref<8x128xf32, #tpu.memory_space<vmem>>, %arg9: memref<128x1xf32, #tpu.memory_space<vmem>>) attributes {dimension_semantics = [#tpu.dimension_semantics<parallel>, #tpu.dimension_semantics<arbitrary>], iteration_bounds = array<i64: 1, 1>, scalar_prefetch = 0 : i64, scratch_operands = 1 : i64, tpu.core_type = #tpu.core_type<tc>, window_params = [{transform_indices = @transform_0, window_bounds = array<i64: 128, 16>}, {transform_indices = @transform_1, window_bounds = array<i64: 8, 128>}, {transform_indices = @transform_2, window_bounds = array<i64: 128, 1>}, {transform_indices = @transform_3, window_bounds = array<i64: 128, 128>}, {transform_indices = @transform_4, window_bounds = array<i64: 128, 128>}, {transform_indices = @transform_5, window_bounds = array<i64: 8, 128>}, {transform_indices = @transform_6, window_bounds = array<i64: 8, 128>}]} {
    %c0_i32 = arith.constant 0 : i32
    %0 = arith.cmpi eq, %arg1, %c0_i32 : i32
    %1 = arith.extui %0 : i1 to i32
    %c0_i32_0 = arith.constant 0 : i32
    %2 = arith.cmpi ne, %1, %c0_i32_0 : i32
    scf.if %2 {
      %cst_19 = arith.constant 0.000000e+00 : f32
      %104 = vector.broadcast %cst_19 : f32 to vector<128x1xf32>
      %c0_20 = arith.constant 0 : index
      %c0_21 = arith.constant 0 : index
      %105 = vector.load %arg9[%c0_20, %c0_21] : memref<128x1xf32, #tpu.memory_space<vmem>>, vector<128x1xf32>
      tpu.vector_store %arg9[%c0_20, %c0_21], %104 {strides = array<i32>} : memref<128x1xf32, #tpu.memory_space<vmem>>, vector<128x1xf32>,
    } else {
    }
    %c0 = arith.constant 0 : index
    %c0_1 = arith.constant 0 : index
    %3 = vector.load %arg2[%c0, %c0_1] : memref<128x16xf32, #tpu.memory_space<vmem>>, vector<128x16xf32>
    %4 = vector.extract_strided_slice %3 {offsets = [0, 0], sizes = [128, 1], strides = [1, 1]} : vector<128x16xf32> to vector<128x1xf32>
    %5 = vector.extract_strided_slice %3 {offsets = [0, 1], sizes = [128, 1], strides = [1, 1]} : vector<128x16xf32> to vector<128x1xf32>
    %6 = vector.extract_strided_slice %3 {offsets = [0, 2], sizes = [128, 1], strides = [1, 1]} : vector<128x16xf32> to vector<128x1xf32>
    %7 = vector.extract_strided_slice %3 {offsets = [0, 3], sizes = [128, 1], strides = [1, 1]} : vector<128x16xf32> to vector<128x1xf32>
    %8 = vector.extract_strided_slice %3 {offsets = [0, 4], sizes = [128, 1], strides = [1, 1]} : vector<128x16xf32> to vector<128x1xf32>
    %9 = vector.extract_strided_slice %3 {offsets = [0, 5], sizes = [128, 1], strides = [1, 1]} : vector<128x16xf32> to vector<128x1xf32>
    %10 = vector.extract_strided_slice %3 {offsets = [0, 6], sizes = [128, 1], strides = [1, 1]} : vector<128x16xf32> to vector<128x1xf32>
    %11 = vector.extract_strided_slice %3 {offsets = [0, 7], sizes = [128, 1], strides = [1, 1]} : vector<128x16xf32> to vector<128x1xf32>
    %12 = vector.extract_strided_slice %3 {offsets = [0, 8], sizes = [128, 1], strides = [1, 1]} : vector<128x16xf32> to vector<128x1xf32>
    %c0_2 = arith.constant 0 : index
    %c0_3 = arith.constant 0 : index
    %13 = vector.load %arg3[%c0_2, %c0_3] : memref<8x128xf32, #tpu.memory_space<vmem>>, vector<8x128xf32>
    %14 = vector.extract_strided_slice %13 {offsets = [0, 0], sizes = [1, 128], strides = [1, 1]} : vector<8x128xf32> to vector<1x128xf32>
    %15 = vector.extract_strided_slice %13 {offsets = [1, 0], sizes = [1, 128], strides = [1, 1]} : vector<8x128xf32> to vector<1x128xf32>
    %16 = vector.extract_strided_slice %13 {offsets = [2, 0], sizes = [1, 128], strides = [1, 1]} : vector<8x128xf32> to vector<1x128xf32>
    %17 = vector.extract_strided_slice %13 {offsets = [3, 0], sizes = [1, 128], strides = [1, 1]} : vector<8x128xf32> to vector<1x128xf32>
    %18 = vector.extract_strided_slice %13 {offsets = [4, 0], sizes = [1, 128], strides = [1, 1]} : vector<8x128xf32> to vector<1x128xf32>
    %19 = vector.extract_strided_slice %13 {offsets = [5, 0], sizes = [1, 128], strides = [1, 1]} : vector<8x128xf32> to vector<1x128xf32>
    %20 = vector.extract_strided_slice %13 {offsets = [6, 0], sizes = [1, 128], strides = [1, 1]} : vector<8x128xf32> to vector<1x128xf32>
    %21 = vector.extract_strided_slice %13 {offsets = [7, 0], sizes = [1, 128], strides = [1, 1]} : vector<8x128xf32> to vector<1x128xf32>
    %22 = vector.broadcast %6 : vector<128x1xf32> to vector<128x128xf32>
    %23 = vector.broadcast %16 : vector<1x128xf32> to vector<128x128xf32>
    %24 = arith.minimumf %22, %23 : vector<128x128xf32>
    %25 = vector.broadcast %4 : vector<128x1xf32> to vector<128x128xf32>
    %26 = vector.broadcast %14 : vector<1x128xf32> to vector<128x128xf32>
    %27 = arith.maximumf %25, %26 : vector<128x128xf32>
    %28 = arith.subf %24, %27 : vector<128x128xf32>
    %cst = arith.constant 0.000000e+00 : f32
    %29 = vector.broadcast %cst : f32 to vector<128x128xf32>
    %30 = arith.maximumf %28, %29 : vector<128x128xf32>
    %31 = vector.broadcast %7 : vector<128x1xf32> to vector<128x128xf32>
    %32 = vector.broadcast %17 : vector<1x128xf32> to vector<128x128xf32>
    %33 = arith.minimumf %31, %32 : vector<128x128xf32>
    %34 = vector.broadcast %5 : vector<128x1xf32> to vector<128x128xf32>
    %35 = vector.broadcast %15 : vector<1x128xf32> to vector<128x128xf32>
    %36 = arith.maximumf %34, %35 : vector<128x128xf32>
    %37 = arith.subf %33, %36 : vector<128x128xf32>
    %cst_4 = arith.constant 0.000000e+00 : f32
    %38 = vector.broadcast %cst_4 : f32 to vector<128x128xf32>
    %39 = arith.maximumf %37, %38 : vector<128x128xf32>
    %40 = arith.mulf %30, %39 : vector<128x128xf32>
    %41 = vector.broadcast %8 : vector<128x1xf32> to vector<128x128xf32>
    %42 = vector.broadcast %18 : vector<1x128xf32> to vector<128x128xf32>
    %43 = arith.addf %41, %42 : vector<128x128xf32>
    %44 = arith.subf %43, %40 : vector<128x128xf32>
    %45 = vector.broadcast %6 : vector<128x1xf32> to vector<128x128xf32>
    %46 = vector.broadcast %16 : vector<1x128xf32> to vector<128x128xf32>
    %47 = arith.maximumf %45, %46 : vector<128x128xf32>
    %48 = vector.broadcast %4 : vector<128x1xf32> to vector<128x128xf32>
    %49 = vector.broadcast %14 : vector<1x128xf32> to vector<128x128xf32>
    %50 = arith.minimumf %48, %49 : vector<128x128xf32>
    %51 = arith.subf %47, %50 : vector<128x128xf32>
    %52 = vector.broadcast %7 : vector<128x1xf32> to vector<128x128xf32>
    %53 = vector.broadcast %17 : vector<1x128xf32> to vector<128x128xf32>
    %54 = arith.maximumf %52, %53 : vector<128x128xf32>
    %55 = vector.broadcast %5 : vector<128x1xf32> to vector<128x128xf32>
    %56 = vector.broadcast %15 : vector<1x128xf32> to vector<128x128xf32>
    %57 = arith.minimumf %55, %56 : vector<128x128xf32>
    %58 = arith.subf %54, %57 : vector<128x128xf32>
    %59 = arith.mulf %51, %51 : vector<128x128xf32>
    %60 = arith.mulf %58, %58 : vector<128x128xf32>
    %61 = arith.addf %59, %60 : vector<128x128xf32>
    %cst_5 = arith.constant 1.000000e-07 : f32
    %62 = vector.broadcast %cst_5 : f32 to vector<128x128xf32>
    %63 = arith.addf %61, %62 : vector<128x128xf32>
    %64 = arith.mulf %44, %63 : vector<128x128xf32>
    %65 = tpu.reciprocal %64 : vector<128x128xf32> -> vector<128x128xf32>
    %66 = arith.mulf %40, %63 : vector<128x128xf32>
    %67 = arith.mulf %66, %65 : vector<128x128xf32>
    %68 = vector.broadcast %19 : vector<1x128xf32> to vector<128x128xf32>
    %69 = vector.broadcast %9 : vector<128x1xf32> to vector<128x128xf32>
    %70 = arith.subf %68, %69 : vector<128x128xf32>
    %71 = vector.broadcast %20 : vector<1x128xf32> to vector<128x128xf32>
    %72 = vector.broadcast %10 : vector<128x1xf32> to vector<128x128xf32>
    %73 = arith.subf %71, %72 : vector<128x128xf32>
    %74 = arith.mulf %70, %70 : vector<128x128xf32>
    %75 = arith.mulf %73, %73 : vector<128x128xf32>
    %76 = arith.addf %74, %75 : vector<128x128xf32>
    %77 = vector.broadcast %21 : vector<1x128xf32> to vector<128x128xf32>
    %78 = vector.broadcast %11 : vector<128x1xf32> to vector<128x128xf32>
    %79 = arith.subf %77, %78 : vector<128x128xf32>
    %80 = arith.mulf %79, %79 : vector<128x128xf32>
    %81 = arith.subf %80, %67 : vector<128x128xf32>
    %cst_6 = arith.constant 1.00000012 : f32
    %82 = vector.broadcast %cst_6 : f32 to vector<128x128xf32>
    %83 = arith.addf %81, %82 : vector<128x128xf32>
    %84 = tpu.reciprocal %83 {approx = true} : vector<128x128xf32> -> vector<128x128xf32>
    %85 = arith.mulf %80, %84 : vector<128x128xf32>
    %cst_7 = arith.constant 1.000000e+00 : f32
    %86 = vector.broadcast %cst_7 : f32 to vector<128x128xf32>
    %87 = arith.subf %86, %67 : vector<128x128xf32>
    %88 = arith.mulf %76, %44 : vector<128x128xf32>
    %89 = arith.mulf %88, %65 : vector<128x128xf32>
    %90 = arith.addf %87, %89 : vector<128x128xf32>
    %91 = arith.mulf %80, %85 : vector<128x128xf32>
    %92 = arith.addf %90, %91 : vector<128x128xf32>
    %c0_8 = arith.constant 0 : index
    %c0_9 = arith.constant 0 : index
    %93 = vector.load %arg9[%c0_8, %c0_9] : memref<128x1xf32, #tpu.memory_space<vmem>>, vector<128x1xf32>
    %c0_10 = arith.constant 0 : index
    %c0_11 = arith.constant 0 : index
    %94 = vector.load %arg4[%c0_10, %c0_11] : memref<128x1xf32, #tpu.memory_space<vmem>>, vector<128x1xf32>
    %cst_12 = arith.constant dense<0.000000e+00> : vector<128x1xf32>
    %95 = tpu.matmul %92, %94, %cst_12 {dimension_numbers = #tpu.dot_dimension_numbers<[1], [0], [0], [1], [0, 0, 1, 1], [], []>, precision = #tpu.contract_precision<fp32>} : vector<128x128xf32>, vector<128x1xf32>, vector<128x1xf32> -> vector<128x1xf32>
    %96 = arith.addf %93, %95 : vector<128x1xf32>
    %c0_13 = arith.constant 0 : index
    %c0_14 = arith.constant 0 : index
    %97 = vector.load %arg9[%c0_13, %c0_14] : memref<128x1xf32, #tpu.memory_space<vmem>>, vector<128x1xf32>
    tpu.vector_store %arg9[%c0_13, %c0_14], %96 {strides = array<i32>} : memref<128x1xf32, #tpu.memory_space<vmem>>, vector<128x1xf32>,
    %c0_i32_15 = arith.constant 0 : i32
    %98 = arith.cmpi eq, %arg1, %c0_i32_15 : i32
    %99 = arith.extui %98 : i1 to i32
    %c0_i32_16 = arith.constant 0 : i32
    %100 = arith.cmpi ne, %99, %c0_i32_16 : i32
    scf.if %100 {
      %c0_19 = arith.constant 0 : index
      %c0_20 = arith.constant 0 : index
      %104 = vector.load %arg9[%c0_19, %c0_20] : memref<128x1xf32, #tpu.memory_space<vmem>>, vector<128x1xf32>
      %105 = arith.mulf %104, %12 : vector<128x1xf32>
      %cst_21 = arith.constant dense<0.000000e+00> : vector<128xf32>
      %106 = vector.multi_reduction <add>, %105, %cst_21 [1] : vector<128x1xf32> to vector<128xf32>
      %107 = vector.shape_cast %106 : vector<128xf32> to vector<128x1xf32>
      %cst_22 = arith.constant dense<0.000000e+00> : vector<1xf32>
      %108 = vector.multi_reduction <add>, %107, %cst_22 [0] : vector<128x1xf32> to vector<1xf32>
      %109 = vector.shape_cast %108 : vector<1xf32> to vector<1x1xf32>
      %110 = vector.shape_cast %109 : vector<1x1xf32> to vector<1x1xf32>
      %111 = vector.broadcast %110 : vector<1x1xf32> to vector<8x128xf32>
      %c0_23 = arith.constant 0 : index
      %c0_24 = arith.constant 0 : index
      %112 = vector.load %arg7[%c0_23, %c0_24] : memref<8x128xf32, #tpu.memory_space<vmem>>, vector<8x128xf32>
      tpu.vector_store %arg7[%c0_23, %c0_24], %111 {strides = array<i32>} : memref<8x128xf32, #tpu.memory_space<vmem>>, vector<8x128xf32>,
    } else {
    }
    %c0_i32_17 = arith.constant 0 : i32
    %101 = arith.cmpi eq, %arg1, %c0_i32_17 : i32
    %102 = arith.extui %101 : i1 to i32
    %c0_i32_18 = arith.constant 0 : i32
    %103 = arith.cmpi ne, %102, %c0_i32_18 : i32
    scf.if %103 {
      %c0_19 = arith.constant 0 : index
      %c0_20 = arith.constant 0 : index
      %104 = vector.load %arg5[%c0_19, %c0_20] : memref<128x128xf32, #tpu.memory_space<vmem>>, vector<128x128xf32>
      %105 = tpu.iota {dimensions = array<i32: 1>} : vector<1x128xi32>
      %cst_21 = arith.constant 0.000000e+00 : f32
      %106 = vector.broadcast %cst_21 : f32 to vector<128x128xf32>
      %c0_i32_22 = arith.constant 0 : i32
      %107 = vector.broadcast %c0_i32_22 : i32 to vector<1x128xi32>
      %108 = arith.cmpi sge, %105, %107 : vector<1x128xi32>
      %c16_i32 = arith.constant 16 : i32
      %109 = vector.broadcast %c16_i32 : i32 to vector<1x128xi32>
      %110 = arith.cmpi slt, %105, %109 : vector<1x128xi32>
      %111 = arith.andi %108, %110 : vector<1x128xi1>
      %cst_23 = arith.constant -1.000000e+30 : f32
      %112 = vector.shape_cast %111 : vector<1x128xi1> to vector<1x128xi1>
      %113 = vector.broadcast %112 : vector<1x128xi1> to vector<128x128xi1>
      %114 = vector.broadcast %cst_23 : f32 to vector<128x128xf32>
      %115 = arith.select %113, %104, %114 : vector<128x128xi1>, vector<128x128xf32>
      %cst_24 = arith.constant dense<0xFF800000> : vector<128xf32>
      %116 = vector.multi_reduction <maximumf>, %115, %cst_24 [1] : vector<128x128xf32> to vector<128xf32>
      %117 = vector.shape_cast %116 : vector<128xf32> to vector<128x1xf32>
      %cst_25 = arith.constant 0.000000e+00 : f32
      %118 = vector.shape_cast %111 : vector<1x128xi1> to vector<1x128xi1>
      %119 = vector.broadcast %118 : vector<1x128xi1> to vector<128x128xi1>
      %120 = vector.shape_cast %117 : vector<128x1xf32> to vector<128x1xf32>
      %121 = vector.broadcast %120 : vector<128x1xf32> to vector<128x128xf32>
      %122 = vector.broadcast %cst_25 : f32 to vector<128x128xf32>
      %123 = arith.select %119, %121, %122 : vector<128x128xi1>, vector<128x128xf32>
      %124 = arith.addf %106, %123 : vector<128x128xf32>
      %c16_i32_26 = arith.constant 16 : i32
      %125 = vector.broadcast %c16_i32_26 : i32 to vector<1x128xi32>
      %126 = arith.cmpi sge, %105, %125 : vector<1x128xi32>
      %c32_i32 = arith.constant 32 : i32
      %127 = vector.broadcast %c32_i32 : i32 to vector<1x128xi32>
      %128 = arith.cmpi slt, %105, %127 : vector<1x128xi32>
      %129 = arith.andi %126, %128 : vector<1x128xi1>
      %cst_27 = arith.constant -1.000000e+30 : f32
      %130 = vector.shape_cast %129 : vector<1x128xi1> to vector<1x128xi1>
      %131 = vector.broadcast %130 : vector<1x128xi1> to vector<128x128xi1>
      %132 = vector.broadcast %cst_27 : f32 to vector<128x128xf32>
      %133 = arith.select %131, %104, %132 : vector<128x128xi1>, vector<128x128xf32>
      %cst_28 = arith.constant dense<0xFF800000> : vector<128xf32>
      %134 = vector.multi_reduction <maximumf>, %133, %cst_28 [1] : vector<128x128xf32> to vector<128xf32>
      %135 = vector.shape_cast %134 : vector<128xf32> to vector<128x1xf32>
      %cst_29 = arith.constant 0.000000e+00 : f32
      %136 = vector.shape_cast %129 : vector<1x128xi1> to vector<1x128xi1>
      %137 = vector.broadcast %136 : vector<1x128xi1> to vector<128x128xi1>
      %138 = vector.shape_cast %135 : vector<128x1xf32> to vector<128x1xf32>
      %139 = vector.broadcast %138 : vector<128x1xf32> to vector<128x128xf32>
      %140 = vector.broadcast %cst_29 : f32 to vector<128x128xf32>
      %141 = arith.select %137, %139, %140 : vector<128x128xi1>, vector<128x128xf32>
      %142 = arith.addf %124, %141 : vector<128x128xf32>
      %c32_i32_30 = arith.constant 32 : i32
      %143 = vector.broadcast %c32_i32_30 : i32 to vector<1x128xi32>
      %144 = arith.cmpi sge, %105, %143 : vector<1x128xi32>
      %c48_i32 = arith.constant 48 : i32
      %145 = vector.broadcast %c48_i32 : i32 to vector<1x128xi32>
      %146 = arith.cmpi slt, %105, %145 : vector<1x128xi32>
      %147 = arith.andi %144, %146 : vector<1x128xi1>
      %cst_31 = arith.constant -1.000000e+30 : f32
      %148 = vector.shape_cast %147 : vector<1x128xi1> to vector<1x128xi1>
      %149 = vector.broadcast %148 : vector<1x128xi1> to vector<128x128xi1>
      %150 = vector.broadcast %cst_31 : f32 to vector<128x128xf32>
      %151 = arith.select %149, %104, %150 : vector<128x128xi1>, vector<128x128xf32>
      %cst_32 = arith.constant dense<0xFF800000> : vector<128xf32>
      %152 = vector.multi_reduction <maximumf>, %151, %cst_32 [1] : vector<128x128xf32> to vector<128xf32>
      %153 = vector.shape_cast %152 : vector<128xf32> to vector<128x1xf32>
      %cst_33 = arith.constant 0.000000e+00 : f32
      %154 = vector.shape_cast %147 : vector<1x128xi1> to vector<1x128xi1>
      %155 = vector.broadcast %154 : vector<1x128xi1> to vector<128x128xi1>
      %156 = vector.shape_cast %153 : vector<128x1xf32> to vector<128x1xf32>
      %157 = vector.broadcast %156 : vector<128x1xf32> to vector<128x128xf32>
      %158 = vector.broadcast %cst_33 : f32 to vector<128x128xf32>
      %159 = arith.select %155, %157, %158 : vector<128x128xi1>, vector<128x128xf32>
      %160 = arith.addf %142, %159 : vector<128x128xf32>
      %c48_i32_34 = arith.constant 48 : i32
      %161 = vector.broadcast %c48_i32_34 : i32 to vector<1x128xi32>
      %162 = arith.cmpi sge, %105, %161 : vector<1x128xi32>
      %c64_i32 = arith.constant 64 : i32
      %163 = vector.broadcast %c64_i32 : i32 to vector<1x128xi32>
      %164 = arith.cmpi slt, %105, %163 : vector<1x128xi32>
      %165 = arith.andi %162, %164 : vector<1x128xi1>
      %cst_35 = arith.constant -1.000000e+30 : f32
      %166 = vector.shape_cast %165 : vector<1x128xi1> to vector<1x128xi1>
      %167 = vector.broadcast %166 : vector<1x128xi1> to vector<128x128xi1>
      %168 = vector.broadcast %cst_35 : f32 to vector<128x128xf32>
      %169 = arith.select %167, %104, %168 : vector<128x128xi1>, vector<128x128xf32>
      %cst_36 = arith.constant dense<0xFF800000> : vector<128xf32>
      %170 = vector.multi_reduction <maximumf>, %169, %cst_36 [1] : vector<128x128xf32> to vector<128xf32>
      %171 = vector.shape_cast %170 : vector<128xf32> to vector<128x1xf32>
      %cst_37 = arith.constant 0.000000e+00 : f32
      %172 = vector.shape_cast %165 : vector<1x128xi1> to vector<1x128xi1>
      %173 = vector.broadcast %172 : vector<1x128xi1> to vector<128x128xi1>
      %174 = vector.shape_cast %171 : vector<128x1xf32> to vector<128x1xf32>
      %175 = vector.broadcast %174 : vector<128x1xf32> to vector<128x128xf32>
      %176 = vector.broadcast %cst_37 : f32 to vector<128x128xf32>
      %177 = arith.select %173, %175, %176 : vector<128x128xi1>, vector<128x128xf32>
      %178 = arith.addf %160, %177 : vector<128x128xf32>
      %179 = arith.subf %104, %178 : vector<128x128xf32>
      %180 = math.exp %179 : vector<128x128xf32>
      %cst_38 = arith.constant 0.000000e+00 : f32
      %181 = vector.broadcast %cst_38 : f32 to vector<128x1xf32>
      %cst_39 = arith.constant 0.000000e+00 : f32
      %182 = vector.shape_cast %111 : vector<1x128xi1> to vector<1x128xi1>
      %183 = vector.broadcast %182 : vector<1x128xi1> to vector<128x128xi1>
      %184 = vector.broadcast %cst_39 : f32 to vector<128x128xf32>
      %185 = arith.select %183, %180, %184 : vector<128x128xi1>, vector<128x128xf32>
      %cst_40 = arith.constant dense<0.000000e+00> : vector<128xf32>
      %186 = vector.multi_reduction <add>, %185, %cst_40 [1] : vector<128x128xf32> to vector<128xf32>
      %187 = vector.shape_cast %186 : vector<128xf32> to vector<128x1xf32>
      %188 = arith.addf %181, %117 : vector<128x1xf32>
      %189 = math.log %187 : vector<128x1xf32>
      %190 = arith.addf %188, %189 : vector<128x1xf32>
      %cst_41 = arith.constant 0.000000e+00 : f32
      %191 = vector.shape_cast %129 : vector<1x128xi1> to vector<1x128xi1>
      %192 = vector.broadcast %191 : vector<1x128xi1> to vector<128x128xi1>
      %193 = vector.broadcast %cst_41 : f32 to vector<128x128xf32>
      %194 = arith.select %192, %180, %193 : vector<128x128xi1>, vector<128x128xf32>
      %cst_42 = arith.constant dense<0.000000e+00> : vector<128xf32>
      %195 = vector.multi_reduction <add>, %194, %cst_42 [1] : vector<128x128xf32> to vector<128xf32>
      %196 = vector.shape_cast %195 : vector<128xf32> to vector<128x1xf32>
      %197 = arith.addf %190, %135 : vector<128x1xf32>
      %198 = math.log %196 : vector<128x1xf32>
      %199 = arith.addf %197, %198 : vector<128x1xf32>
      %cst_43 = arith.constant 0.000000e+00 : f32
      %200 = vector.shape_cast %147 : vector<1x128xi1> to vector<1x128xi1>
      %201 = vector.broadcast %200 : vector<1x128xi1> to vector<128x128xi1>
      %202 = vector.broadcast %cst_43 : f32 to vector<128x128xf32>
      %203 = arith.select %201, %180, %202 : vector<128x128xi1>, vector<128x128xf32>
      %cst_44 = arith.constant dense<0.000000e+00> : vector<128xf32>
      %204 = vector.multi_reduction <add>, %203, %cst_44 [1] : vector<128x128xf32> to vector<128xf32>
      %205 = vector.shape_cast %204 : vector<128xf32> to vector<128x1xf32>
      %206 = arith.addf %199, %153 : vector<128x1xf32>
      %207 = math.log %205 : vector<128x1xf32>
      %208 = arith.addf %206, %207 : vector<128x1xf32>
      %cst_45 = arith.constant 0.000000e+00 : f32
      %209 = vector.shape_cast %165 : vector<1x128xi1> to vector<1x128xi1>
      %210 = vector.broadcast %209 : vector<1x128xi1> to vector<128x128xi1>
      %211 = vector.broadcast %cst_45 : f32 to vector<128x128xf32>
      %212 = arith.select %210, %180, %211 : vector<128x128xi1>, vector<128x128xf32>
      %cst_46 = arith.constant dense<0.000000e+00> : vector<128xf32>
      %213 = vector.multi_reduction <add>, %212, %cst_46 [1] : vector<128x128xf32> to vector<128xf32>
      %214 = vector.shape_cast %213 : vector<128xf32> to vector<128x1xf32>
      %215 = arith.addf %208, %171 : vector<128x1xf32>
      %216 = math.log %214 : vector<128x1xf32>
      %217 = arith.addf %215, %216 : vector<128x1xf32>
      %c0_47 = arith.constant 0 : index
      %c0_48 = arith.constant 0 : index
      %218 = vector.load %arg6[%c0_47, %c0_48] : memref<128x128xf32, #tpu.memory_space<vmem>>, vector<128x128xf32>
      %219 = arith.mulf %104, %218 : vector<128x128xf32>
      %cst_49 = arith.constant dense<0.000000e+00> : vector<128xf32>
      %220 = vector.multi_reduction <add>, %219, %cst_49 [1] : vector<128x128xf32> to vector<128xf32>
      %221 = vector.shape_cast %220 : vector<128xf32> to vector<128x1xf32>
      %222 = arith.subf %217, %221 : vector<128x1xf32>
      %223 = arith.mulf %222, %12 : vector<128x1xf32>
      %cst_50 = arith.constant dense<0.000000e+00> : vector<128xf32>
      %224 = vector.multi_reduction <add>, %223, %cst_50 [1] : vector<128x1xf32> to vector<128xf32>
      %225 = vector.shape_cast %224 : vector<128xf32> to vector<128x1xf32>
      %cst_51 = arith.constant dense<0.000000e+00> : vector<1xf32>
      %226 = vector.multi_reduction <add>, %225, %cst_51 [0] : vector<128x1xf32> to vector<1xf32>
      %227 = vector.shape_cast %226 : vector<1xf32> to vector<1x1xf32>
      %228 = vector.shape_cast %227 : vector<1x1xf32> to vector<1x1xf32>
      %229 = vector.broadcast %228 : vector<1x1xf32> to vector<8x128xf32>
      %c0_52 = arith.constant 0 : index
      %c0_53 = arith.constant 0 : index
      %230 = vector.load %arg8[%c0_52, %c0_53] : memref<8x128xf32, #tpu.memory_space<vmem>>, vector<8x128xf32>
      tpu.vector_store %arg8[%c0_52, %c0_53], %229 {strides = array<i32>} : memref<8x128xf32, #tpu.memory_space<vmem>>, vector<8x128xf32>,
    } else {
    }
    return
  }
  func.func @transform_0(%arg0: i32, %arg1: i32) -> (i32, i32) {
    %c0_i32 = arith.constant 0 : i32
    %c0_i32_0 = arith.constant 0 : i32
    return %arg0, %c0_i32 : i32, i32
  }
  func.func @transform_1(%arg0: i32, %arg1: i32) -> (i32, i32) {
    %c0_i32 = arith.constant 0 : i32
    %c0_i32_0 = arith.constant 0 : i32
    return %c0_i32, %arg1 : i32, i32
  }
  func.func @transform_2(%arg0: i32, %arg1: i32) -> (i32, i32) {
    %c0_i32 = arith.constant 0 : i32
    %c0_i32_0 = arith.constant 0 : i32
    return %arg1, %c0_i32 : i32, i32
  }
  func.func @transform_3(%arg0: i32, %arg1: i32) -> (i32, i32) {
    %c0_i32 = arith.constant 0 : i32
    %c0_i32_0 = arith.constant 0 : i32
    return %arg0, %c0_i32 : i32, i32
  }
  func.func @transform_4(%arg0: i32, %arg1: i32) -> (i32, i32) {
    %c0_i32 = arith.constant 0 : i32
    %c0_i32_0 = arith.constant 0 : i32
    return %arg0, %c0_i32 : i32, i32
  }
  func.func @transform_5(%arg0: i32, %arg1: i32) -> (i32, i32) {
    %c0_i32 = arith.constant 0 : i32
    %c0_i32_0 = arith.constant 0 : i32
    return %arg0, %c0_i32 : i32, i32
  }
  func.func @transform_6(%arg0: i32, %arg1: i32) -> (i32, i32) {
    %c0_i32 = arith.constant 0 : i32
    %c0_i32_0 = arith.constant 0 : i32
    return %arg0, %c0_i32 : i32, i32
  }
}

</mosaic_0001>

<bundles_post_ra>
// kernel: tpu_custom_call.1
= control target key start
LH: loop header
LB: loop body
LE: loop exit
PB: predicated region body
PF: predicated region fallthrough
CT: control target
= control target key end

     0   :  { %12 = vsyncpa [#allocation4], 0  ;;  %v4990_v2 = vmov 2   ;;  %s8628_s0 = inlined_call_operand.vmem [shape: f32[128,16], index: 0, kind: input, shape index: {}]   ;;  %s8629_s1 = inlined_call_operand.vmem [shape: f32[8,128], index: 1, kind: input, shape index: {}]   ;;  %s8630_s2 = inlined_call_operand.vmem [shape: f32[128,1], index: 2, kind: input, shape index: {}]   ;;  %s8631_s3 = inlined_call_operand.vmem [shape: f32[128,128], index: 3, kind: input, shape index: {}]   ;;  %s8632_s4 = inlined_call_operand.vmem [shape: f32[128,128], index: 4, kind: input, shape index: {}]   ;;  %s8633_s5 = inlined_call_operand.hbm [shape: f32[8,128], index: 5, kind: output, shape index: {0}]   ;;  %s8634_s6 = inlined_call_operand.hbm [shape: f32[8,128], index: 6, kind: output, shape index: {1}]  }
   0x1   :  { %v5041_v0 = vld [vmem:[%s8628_s0 + $0x10] sm:$0xff]  ;;  %v5046_v1 = vld [vmem:[%s8628_s0] sm:$0xff]  ;;  %4639 = vset.pattern.permute.xlu1 %v4990_v2  ;;  %4638 = vset.pattern.permute.xlu0 %v4990_v2  ;;  %v5053_v3 = vld [vmem:[%s8628_s0 + $0x18] sm:$0xff] }
   0x2   :  { %74 = vperm.xlu1 %4639, %v5041_v0   ;;  %64 = vperm.xlu0 %4638, %v5046_v1   ;;  %v5058_v4 = vld [vmem:[%s8628_s0 + $0x8] sm:$0xff] }
   0x3   :  { %8867 = vst [vmem:[#allocation9_spill] sm:$0xff] %v5058_v4 }
   0x4   :  { %13 = vsyncpa [#allocation6], 0  ;;  %v5065_v5 = vld [vmem:[%s8628_s0 + $0x28] sm:$0xff]  ;;  %v5070_v6 = vld [vmem:[%s8628_s0 + $0x20] sm:$0xff]  ;;  %v8635_v17 = vmov 0   ;;  %v4992_v18 = vmov 3   ;;  %v8637_v44 = vlaneseq }
   0x5   :  { %8868 = vst [vmem:[#allocation10_spill] sm:$0xff] %v5065_v5  ;;  %8869 = vst [vmem:[#allocation11_spill] sm:$0xff] %v5070_v6  ;;  %v5077_v7 = vld [vmem:[%s8628_s0 + $0x38] sm:$0xff]  ;;  %v5082_v8 = vld [vmem:[%s8628_s0 + $0x30] sm:$0xff]  ;;  %v4993_v19 = vmov 1   ;;  %v4994_v21 = vmov 4  }
   0x6   :  { %79 = vperm.xlu1 %4639, %v5053_v3   ;;  %69 = vperm.xlu0 %4638, %v5058_v4   ;;  %v5089_v9 = vld [vmem:[%s8628_s0 + $0x48] sm:$0xff]  ;;  %v5094_v10 = vld [vmem:[%s8628_s0 + $0x40] sm:$0xff]  ;;  %v5101_v11 = vld [vmem:[%s8628_s0 + $0x58] sm:$0xff]  ;;  %v8636_v37 = vmov 5   ;;  %v5253_v47 = vshrl.u32 %v8637_v44, 7  ;;  %v8638_v56 = vmov 7  }
   0x7   :  { %8870 = vst [vmem:[#allocation12_spill] sm:$0xff] %v5094_v10  ;;  %8871 = vst [vmem:[#allocation13_spill] sm:$0xff] %v5101_v11  ;;  %v5106_v12 = vld [vmem:[%s8628_s0 + $0x50] sm:$0xff]  ;;  %v5113_v13 = vld [vmem:[%s8628_s0 + $0x68] sm:$0xff]  ;;  %s4998_s14 = smov 120   ;;  %vm28_vm10 = vcmask 7168  }
   0x8   :  { %8872 = vst [vmem:[#allocation14_spill] sm:$0xff] %v5113_v13  ;;  %v5118_v14 = vld [vmem:[%s8628_s0 + $0x60] sm:$0xff]  ;;  %v5125_v15 = vld [vmem:[%s8628_s0 + $0x78] sm:$0xff]  ;;  %v5130_v16 = vld [vmem:[%s8628_s0 + $0x70] sm:$0xff]  ;;  %v144_v50 = vsub.s32 2, %v5253_v47  ;;  %v228_v52 = vsub.s32 0, %v5253_v47 }
   0x9   :  { %8873 = vst [vmem:[#allocation15_spill] sm:$0xff] %v5125_v15  ;;  %8874 = vst [vmem:[#allocation16_spill] sm:$0xff] %v5130_v16  ;;  %v5265_v51 = vld [vmem:[%s8629_s1] sm:$0xff]  ;;  %vm3753_vm11 = vcmask 72768   ;;  %s5001_s20 = smov [#allocation3]  }
   0xa   :  { %89 = vperm.xlu1 %4639, %v5065_v5   ;;  %84 = vperm.xlu0 %4638, %v5070_v6   ;;  %v5274_v55 = vrot.slane %v5265_v51, %v144_v50  ;;  %v5278_v57 = vrot.slane %v5265_v51, %v228_v52  ;;  %s3803_s21 = sshll.u32 %s5001_s20, 4  ;;  %s3804_s21 = int_to_ptr.vmem [resolvable:$true] %s3803_s21 }
   0xb   :  { %s4942_s22 = scalar_lea.vmem %s3804_s21, 128  ;;  %p4947_p1 = scmp.lt.s32.totalorder %s3804_s21, %s3804_s21 }
   0xc   :  { %p4943_p0 = scmp.ne.s32.totalorder %s3804_s21, %s4942_s22  ;;  %p4948_p2 = scmp.lt.s32.totalorder %s4942_s22, %s4942_s22 }
   0xe   :  { %99 = vperm.xlu1 %4639, %v5077_v7   ;;  %94 = vperm.xlu0 %4638, %v5082_v8   ;;  %p4949_p3 = por %p4948_p2, %p4947_p1 }
  0x10   :  { %p4950_p4 = pnand %p4949_p3, %p4943_p0 }
  0x12   :  { %109 = vperm.xlu1 %4639, %v5089_v9   ;;  %104 = vperm.xlu0 %4638, %v5094_v10  }
  0x16   :  { %119 = vperm.xlu1 %4639, %v5101_v11   ;;  %114 = vperm.xlu0 %4638, %v5106_v12  }
  0x1a   :  { %129 = vperm.xlu1 %4639, %v5113_v13   ;;  %124 = vperm.xlu0 %4638, %v5118_v14  }
  0x1e   :  { %139 = vperm.xlu1 %4639, %v5125_v15   ;;  %134 = vperm.xlu0 %4638, %v5130_v16  }
  0x22   :  { %4641 = vset.pattern.permute.xlu1 %v8635_v17  ;;  %4640 = vset.pattern.permute.xlu0 %v8635_v17 }
  0x23   :  { %167 = vperm.xlu1 %4641, %v5058_v4   ;;  %163 = vperm.xlu0 %4640, %v5046_v1  }
  0x27   :  { %171 = vperm.xlu1 %4641, %v5041_v0   ;;  %175 = vperm.xlu0 %4640, %v5053_v3  }
  0x2b   :  { %179 = vperm.xlu1 %4641, %v5070_v6   ;;  %183 = vperm.xlu0 %4640, %v5065_v5  }
  0x2f   :  { %187 = vperm.xlu1 %4641, %v5082_v8   ;;  %191 = vperm.xlu0 %4640, %v5077_v7  }
  0x33   :  { %195 = vperm.xlu1 %4641, %v5094_v10   ;;  %199 = vperm.xlu0 %4640, %v5089_v9  }
  0x37   :  { %203 = vperm.xlu1 %4641, %v5106_v12   ;;  %207 = vperm.xlu0 %4640, %v5101_v11  }
  0x3b   :  { %211 = vperm.xlu1 %4641, %v5118_v14   ;;  %215 = vperm.xlu0 %4640, %v5113_v13  }
  0x3f   :  { %219 = vperm.xlu1 %4641, %v5130_v16   ;;  %223 = vperm.xlu0 %4640, %v5125_v15  }
  0x43   :  { %4642 = vset.pattern.permute.xlu1 %v4992_v18  ;;  %4643 = vset.pattern.permute.xlu0 %v4992_v18 }
  0x44   :  { %279 = vperm.xlu1 %4642, %v5046_v1   ;;  %283 = vperm.xlu0 %4643, %v5058_v4  }
  0x48   :  { %287 = vperm.xlu1 %4642, %v5041_v0   ;;  %295 = vperm.xlu0 %4643, %v5070_v6  }
  0x4c   :  { %291 = vperm.xlu1 %4642, %v5053_v3   ;;  %303 = vperm.xlu0 %4643, %v5082_v8  }
  0x50   :  { %299 = vperm.xlu1 %4642, %v5065_v5   ;;  %311 = vperm.xlu0 %4643, %v5094_v10  }
  0x54   :  { %307 = vperm.xlu1 %4642, %v5077_v7   ;;  %319 = vperm.xlu0 %4643, %v5106_v12  }
  0x58   :  { %315 = vperm.xlu1 %4642, %v5089_v9   ;;  %327 = vperm.xlu0 %4643, %v5118_v14  }
  0x5c   :  { %323 = vperm.xlu1 %4642, %v5101_v11   ;;  %335 = vperm.xlu0 %4643, %v5130_v16  }
  0x60   :  { %331 = vperm.xlu1 %4642, %v5113_v13   ;;  %4644 = vset.pattern.permute.xlu0 %v4993_v19 }
  0x61   :  { %363 = vperm.xlu0 %4644, %v5046_v1  }
  0x64   :  { %339 = vperm.xlu1 %4642, %v5125_v15  }
  0x65   :  { %375 = vperm.xlu0 %4644, %v5053_v3  }
  0x68   :  { %4645 = vset.pattern.permute.xlu1 %v4993_v19 }
  0x69   :  { %367 = vperm.xlu1 %4645, %v5058_v4   ;;  %383 = vperm.xlu0 %4644, %v5065_v5  }
  0x6d   :  { %371 = vperm.xlu1 %4645, %v5041_v0   ;;  %391 = vperm.xlu0 %4644, %v5077_v7  }
  0x71   :  { %379 = vperm.xlu1 %4645, %v5070_v6   ;;  %399 = vperm.xlu0 %4644, %v5089_v9  }
  0x75   :  { %387 = vperm.xlu1 %4645, %v5082_v8   ;;  %407 = vperm.xlu0 %4644, %v5101_v11  }
  0x79   :  { %395 = vperm.xlu1 %4645, %v5094_v10   ;;  %415 = vperm.xlu0 %4644, %v5113_v13  }
  0x7d   :  { %403 = vperm.xlu1 %4645, %v5106_v12   ;;  %423 = vperm.xlu0 %4644, %v5125_v15  }
  0x81   :  { %v5182_v20 = vpop.permute.xlu1 %74  ;;  %411 = vperm.xlu1 %4645, %v5118_v14   ;;  %4647 = vset.pattern.permute.xlu0 %v4994_v21  ;;  %v5185_v22 = vpop.permute.xlu0 %64 }
  0x82   :  { %499 = vperm.xlu0 %4647, %v5058_v4  }
  0x85   :  { %v5188_v23 = vpop.permute.xlu1 %79  ;;  %419 = vperm.xlu1 %4645, %v5130_v16   ;;  %v5191_v24 = vpop.permute.xlu0 %69 }
  0x86   :  { %511 = vperm.xlu0 %4647, %v5070_v6  }
  0x89   :  { %v5194_v25 = vpop.permute.xlu1 %89  ;;  %4646 = vset.pattern.permute.xlu1 %v4994_v21  ;;  %v5196_v26 = vpop.permute.xlu0 %84 }
  0x8a   :  { %495 = vperm.xlu1 %4646, %v5046_v1   ;;  %519 = vperm.xlu0 %4647, %v5082_v8  }
  0x8d   :  { %v5200_v27 = vpop.permute.xlu1 %99  ;;  %v5202_v28 = vpop.permute.xlu0 %94 }
  0x8e   :  { %503 = vperm.xlu1 %4646, %v5041_v0   ;;  %527 = vperm.xlu0 %4647, %v5094_v10  }
  0x91   :  { %v5206_v29 = vpop.permute.xlu1 %109  ;;  %v5208_v30 = vpop.permute.xlu0 %104 }
  0x92   :  { %507 = vperm.xlu1 %4646, %v5053_v3   ;;  %535 = vperm.xlu0 %4647, %v5106_v12  }
  0x95   :  { %v5212_v31 = vpop.permute.xlu1 %119  ;;  %v5214_v32 = vpop.permute.xlu0 %114 }
  0x96   :  { %515 = vperm.xlu1 %4646, %v5065_v5   ;;  %543 = vperm.xlu0 %4647, %v5118_v14  }
  0x99   :  { %v130_v33 = vpop.permute.xlu1 %129  ;;  %v125_v34 = vpop.permute.xlu0 %124 }
  0x9a   :  { %523 = vperm.xlu1 %4646, %v5077_v7   ;;  %551 = vperm.xlu0 %4647, %v5130_v16   ;;  %v159_v58 = vmin.f32 %v130_v33, %v5274_v55  ;;  %v607_v59 = vmax.f32 %v130_v33, %v5274_v55  ;;  %v158_v60 = vmin.f32 %v125_v34, %v5274_v55 }
  0x9b   :  { %v606_v61 = vmax.f32 %v125_v34, %v5274_v55 }
  0x9d   :  { %v5220_v35 = vpop.permute.xlu1 %139  ;;  %v5222_v36 = vpop.permute.xlu0 %134 }
  0x9e   :  { %531 = vperm.xlu1 %4646, %v5089_v9   ;;  %4648 = vset.pattern.permute.xlu0 %v8636_v37 }
  0x9f   :  { %823 = vperm.xlu0 %4648, %v5046_v1  }
  0xa2   :  { %v5227_v38 = vpop.permute.xlu1 %167  ;;  %539 = vperm.xlu1 %4646, %v5101_v11   ;;  %v5230_v39 = vpop.permute.xlu0 %163 }
  0xa3   :  { %835 = vperm.xlu0 %4648, %v5053_v3  }
  0xa6   :  { %v5233_v40 = vpop.permute.xlu1 %171  ;;  %547 = vperm.xlu1 %4646, %v5113_v13   ;;  %v5236_v41 = vpop.permute.xlu0 %175 }
  0xa7   :  { %843 = vperm.xlu0 %4648, %v5065_v5  }
  0xaa   :  { %v5239_v42 = vpop.permute.xlu1 %179  ;;  %555 = vperm.xlu1 %4646, %v5125_v15   ;;  %v5242_v43 = vpop.permute.xlu0 %183  ;;  %v594_v15 = vmax.f32 %v5185_v22, %v5274_v55 }
  0xab   :  { %851 = vperm.xlu0 %4648, %v5077_v7  }
  0xae   :  { %v5245_v45 = vpop.permute.xlu1 %187  ;;  %4649 = vset.pattern.permute.xlu1 %v8636_v37  ;;  %v5248_v46 = vpop.permute.xlu0 %191 }
  0xaf   :  { %827 = vperm.xlu1 %4649, %v5058_v4   ;;  %859 = vperm.xlu0 %4648, %v5089_v9  }
  0xb2   :  { %v5255_v48 = vpop.permute.xlu1 %195  ;;  %v5257_v49 = vpop.permute.xlu0 %199 }
  0xb3   :  { %831 = vperm.xlu1 %4649, %v5041_v0   ;;  %867 = vperm.xlu0 %4648, %v5101_v11  }
  0xb6   :  { %v5268_v53 = vpop.permute.xlu1 %203  ;;  %v5270_v54 = vpop.permute.xlu0 %207 }
  0xb7   :  { %839 = vperm.xlu1 %4649, %v5070_v6   ;;  %4650 = vset.pattern.permute.xlu0 %v8638_v56 }
  0xb8   :  { %1039 = vperm.xlu0 %4650, %v5046_v1  }
  0xba   :  { %v212_v62 = vpop.permute.xlu1 %211  ;;  %v216_v63 = vpop.permute.xlu0 %215 }
  0xbb   :  { %v242_v2 = vmax.f32 %v212_v62, %v5278_v57  ;;  %v622_v18 = vmin.f32 %v212_v62, %v5278_v57  ;;  %v243_v19 = vmax.f32 %v216_v63, %v5278_v57  ;;  %v623_v21 = vmin.f32 %v216_v63, %v5278_v57  ;;  %847 = vperm.xlu1 %4649, %v5082_v8  }
  0xbc   :  { %1051 = vperm.xlu0 %4650, %v5053_v3   ;;  %v161_v62 = vmin.f32 %v5220_v35, %v5274_v55  ;;  %v609_v63 = vmax.f32 %v5220_v35, %v5274_v55 }
  0xbd   :  { %v5290_v50 = vsub.f32 %v158_v60, %v242_v2  ;;  %v5292_v52 = vsub.f32 %v606_v61, %v622_v18  ;;  %v5294_v33 = vsub.f32 %v159_v58, %v243_v19  ;;  %v5296_v17 = vsub.f32 %v607_v59, %v623_v21 }
  0xbe   :  { %v220_v34 = vpop.permute.xlu1 %219  ;;  %v224_v37 = vpop.permute.xlu0 %223  ;;  %v160_v60 = vmin.f32 %v5222_v36, %v5274_v55  ;;  %v608_v61 = vmax.f32 %v5222_v36, %v5274_v55 }
  0xbf   :  { %8875 = vst [vmem:[#allocation17_spill] sm:$0xff] %v5290_v50  ;;  %8876 = vst [vmem:[#allocation18_spill] sm:$0xff] %v5294_v33  ;;  %855 = vperm.xlu1 %4649, %v5094_v10   ;;  %v244_v58 = vmax.f32 %v220_v34, %v5278_v57  ;;  %v624_v59 = vmin.f32 %v220_v34, %v5278_v57  ;;  %v245_v2 = vmax.f32 %v224_v37, %v5278_v57 }
  0xc0   :  { %v625_v18 = vmin.f32 %v224_v37, %v5278_v57  ;;  %1059 = vperm.xlu0 %4650, %v5065_v5  }
  0xc1   :  { %v5313_v19 = vsub.f32 %v160_v60, %v244_v58  ;;  %v5315_v35 = vsub.f32 %v608_v61, %v624_v59  ;;  %v5317_v21 = vsub.f32 %v161_v62, %v245_v2  ;;  %v344_v62 = vsub.s32 3, %v5253_v47 }
  0xc2   :  { %v5319_v44 = vsub.f32 %v609_v63, %v625_v18  ;;  %v428_v63 = vsub.s32 1, %v5253_v47  ;;  %v560_v60 = vsub.s32 4, %v5253_v47  ;;  %v8883_v61 = vmov 7  }
  0xc3   :  { %8877 = vst [vmem:[#allocation19_spill] sm:$0xff] %v5313_v19  ;;  %8878 = vst [vmem:[#allocation20_spill] sm:$0xff] %v5317_v21  ;;  %863 = vperm.xlu1 %4649, %v5106_v12   ;;  %v5322_v36 = vpop.permute.xlu1 %279  ;;  %v5324_v56 = vpop.permute.xlu0 %283  ;;  %v8644_v2 = vmov 6   ;;  %v148_v18 = vmin.f32 %v5182_v20, %v5274_v55  ;;  %v596_v19 = vmax.f32 %v5182_v20, %v5274_v55  ;;  %v595_v20 = vmax.f32 %v5191_v24, %v5274_v55 }
  0xc4   :  { %8879 = vst [vmem:[#allocation21_spill] sm:$0xff] %v5322_v36  ;;  %8880 = vst [vmem:[#allocation22_spill] sm:$0xff] %v5324_v56  ;;  %1071 = vperm.xlu0 %4650, %v5094_v10   ;;  %v5346_v10 = vrot.slane %v5265_v51, %v344_v62  ;;  %v5350_v11 = vrot.slane %v5265_v51, %v428_v63  ;;  %v5353_v21 = vrot.slane %v5265_v51, %v560_v60 }
  0xc5   :  { %v149_v62 = vmin.f32 %v5188_v23, %v5274_v55  ;;  %v597_v63 = vmax.f32 %v5188_v23, %v5274_v55  ;;  %v147_v60 = vmin.f32 %v5191_v24, %v5274_v55  ;;  %v598_v23 = vmax.f32 %v5196_v26, %v5274_v55 }
  0xc6   :  { %8886 = vst [vmem:[#allocation27_spill] sm:$0xff] %v5346_v10  ;;  %8887 = vst [vmem:[#allocation28_spill] sm:$0xff] %v5353_v21  ;;  %v151_v21 = vmin.f32 %v5194_v25, %v5274_v55  ;;  %v230_v24 = vmax.f32 %v5230_v39, %v5278_v57  ;;  %v8894_v10 = vmov 6  }
  0xc7   :  { %871 = vperm.xlu1 %4649, %v5118_v14   ;;  %v5328_v37 = vpop.permute.xlu1 %287  ;;  %v5330_v34 = vpop.permute.xlu0 %295 }
  0xc8   :  { %8881 = vst [vmem:[#allocation23_spill] sm:$0xff] %v5328_v37  ;;  %8882 = vst [vmem:[#allocation24_spill] sm:$0xff] %v5330_v34  ;;  %1087 = vperm.xlu0 %4650, %v5118_v14   ;;  %v232_v34 = vmax.f32 %v5233_v40, %v5278_v57 }
  0xcb   :  { %4651 = vset.pattern.permute.xlu1 %v8883_v61  ;;  %v5337_v58 = vpop.permute.xlu1 %291  ;;  %v5339_v59 = vpop.permute.xlu0 %303 }
  0xcc   :  { %8884 = vst [vmem:[#allocation25_spill] sm:$0xff] %v5337_v58  ;;  %8885 = vst [vmem:[#allocation26_spill] sm:$0xff] %v5339_v59  ;;  %1043 = vperm.xlu1 %4651, %v5058_v4   ;;  %4659 = vset.pattern.permute.xlu0 %v8644_v2  ;;  %v146_v2 = vmin.f32 %v5185_v22, %v5274_v55  ;;  %v599_v22 = vmax.f32 %v5194_v25, %v5274_v55 }
  0xcd   :  { %911 = vperm.xlu0 %4659, %v5058_v4   ;;  %v610_v59 = vmin.f32 %v5230_v39, %v5278_v57  ;;  %v233_v25 = vmax.f32 %v5236_v41, %v5278_v57  ;;  %v820_v39 = vsub.s32 5, %v5253_v47 }
  0xce   :  { %v5433_v56 = vsub.f32 %v146_v2, %v230_v24  ;;  %v5530_v24 = vld [vmem:[%s8630_s2] sm:$0xff] }
  0xcf   :  { %v5363_v16 = vpop.permute.xlu1 %299  ;;  %v5365_v4 = vpop.permute.xlu0 %311  ;;  %8904 = vst [vmem:[#allocation40_spill] sm:$0xff] %v5530_v24 }
  0xd0   :  { %8888 = vst [vmem:[#allocation29_spill] sm:$0xff] %v5363_v16  ;;  %8889 = vst [vmem:[#allocation30_spill] sm:$0xff] %v5365_v4  ;;  %1047 = vperm.xlu1 %4651, %v5041_v0   ;;  %v150_v4 = vmin.f32 %v5196_v26, %v5274_v55  ;;  %v231_v26 = vmax.f32 %v5227_v38, %v5278_v57  ;;  %v611_v16 = vmin.f32 %v5227_v38, %v5278_v57 }
  0xd1   :  { %915 = vperm.xlu0 %4659, %v5041_v0   ;;  %v612_v38 = vmin.f32 %v5233_v40, %v5278_v57  ;;  %v613_v0 = vmin.f32 %v5236_v41, %v5278_v57  ;;  %v234_v40 = vmax.f32 %v5239_v42, %v5278_v57  ;;  %v5439_v41 = vsub.f32 %v148_v18, %v232_v34 }
  0xd2   :  { %v627_v37 = vsub.f32 %v595_v20, %v611_v16  ;;  %v605_v16 = vmax.f32 %v5212_v31, %v5274_v55  ;;  %v5452_v34 = vsub.f32 %v149_v62, %v233_v25 }
  0xd3   :  { %v5401_v33 = vpop.permute.xlu1 %307  ;;  %v5403_v58 = vpop.permute.xlu0 %319  ;;  %v628_v36 = vsub.f32 %v596_v19, %v612_v38  ;;  %v629_v19 = vsub.f32 %v597_v63, %v613_v0  ;;  %v5455_v2 = vsub.f32 %v150_v4, %v234_v40  ;;  %v616_v0 = vmin.f32 %v5245_v45, %v5278_v57 }
  0xd4   :  { %8890 = vst [vmem:[#allocation31_spill] sm:$0xff] %v5401_v33  ;;  %8891 = vst [vmem:[#allocation32_spill] sm:$0xff] %v5403_v58  ;;  %1055 = vperm.xlu1 %4651, %v5070_v6   ;;  %v8892_v33 = vlaneseq  ;;  %v614_v6 = vmin.f32 %v5239_v42, %v5278_v57  ;;  %v5431_v58 = vsub.f32 %v147_v60, %v231_v26  ;;  %v235_v42 = vmax.f32 %v5242_v43, %v5278_v57 }
  0xd5   :  { %927 = vperm.xlu0 %4659, %v5065_v5   ;;  %v615_v5 = vmin.f32 %v5242_v43, %v5278_v57  ;;  %8895 = vst [vmem:[#allocation34_spill] sm:$0xff] %v5455_v2  ;;  %v5459_v43 = vrot.slane %v5265_v51, %v820_v39  ;;  %v5462_v20 = vmul.f32 %v627_v37, %v627_v37  ;;  %v8945_v2 = vld [vmem:[#allocation15_spill] sm:$0xff] }
  0xd6   :  { %v5421_v50 = vand.u32 127, %v8892_v33  ;;  %v626_v33 = vsub.f32 %v594_v15, %v610_v59  ;;  %v604_v59 = vmax.f32 %v5214_v32, %v5274_v55  ;;  %v630_v18 = vsub.f32 %v598_v23, %v614_v6 }
  0xd7   :  { %v5437_v13 = vpop.permute.xlu0 %327  ;;  %8896 = vst [vmem:[#allocation35_spill] sm:$0xff] %v5459_v43  ;;  %v5472_v6 = vmul.f32 %v628_v36, %v628_v36  ;;  %v5474_v63 = vsub.f32 %v151_v21, %v235_v42  ;;  %v631_v23 = vsub.f32 %v599_v22, %v615_v5  ;;  %v236_v37 = vmax.f32 %v5245_v45, %v5278_v57 }
  0xd8   :  { %8893 = vst [vmem:[#allocation33_spill] sm:$0xff] %v5421_v50  ;;  %v5435_v50 = vpop.permute.xlu1 %315  ;;  %4652 = vset.pattern.permute.xlu1 %v8894_v10  ;;  %v5465_v26 = vmul.f32 %v626_v33, %v626_v33  ;;  %v237_v38 = vmax.f32 %v5248_v46, %v5278_v57  ;;  %v5484_v39 = vmul.f32 %v629_v19, %v629_v19 }
  0xd9   :  { %907 = vperm.xlu1 %4652, %v5046_v1   ;;  %931 = vperm.xlu0 %4659, %v5082_v8   ;;  %8897 = vst [vmem:[#allocation36_spill] sm:$0xff] %v5474_v63  ;;  %v5487_v21 = vmul.f32 %v630_v18, %v630_v18  ;;  %v617_v5 = vmin.f32 %v5248_v46, %v5278_v57 }
  0xda   :  { %v238_v45 = vmax.f32 %v5255_v48, %v5278_v57  ;;  %v618_v22 = vmin.f32 %v5255_v48, %v5278_v57  ;;  %v619_v40 = vmin.f32 %v5257_v49, %v5278_v57  ;;  %v620_v33 = vmin.f32 %v5268_v53, %v5278_v57 }
  0xdb   :  { %v5469_v1 = vpop.permute.xlu0 %335  ;;  %8898 = vst [vmem:[#allocation37_spill] sm:$0xff] %v5487_v21  ;;  %v5504_v19 = vmul.f32 %v631_v23, %v631_v23  ;;  %v621_v18 = vmin.f32 %v5270_v54, %v5278_v57  ;;  %v8899_v48 = vmin.f32 %v5202_v28, %v5274_v55  ;;  %v8901_v60 = vmax.f32 %v5202_v28, %v5274_v55 }
  0xdc   :  { %v5467_v62 = vpop.permute.xlu1 %323  ;;  %v8902_v23 = vmin.f32 %v5200_v27, %v5274_v55  ;;  %v8906_v28 = vmax.f32 %v5200_v27, %v5274_v55  ;;  %v8909_v27 = vmax.f32 %v5208_v30, %v5274_v55 }
  0xdd   :  { %4653 = vset.pattern.permute.xlu1 %v8883_v61  ;;  %943 = vperm.xlu0 %4659, %v5089_v9   ;;  %v5515_v4 = vsub.f32 %v8899_v48, %v236_v37  ;;  %v632_v25 = vsub.f32 %v8901_v60, %v616_v0  ;;  %v5535_v37 = vld [vmem:[%s8630_s2 + $0x8] sm:$0xff]  ;;  %v241_v0 = vmax.f32 %v5270_v54, %v5278_v57 }
  0xde   :  { %1063 = vperm.xlu1 %4653, %v5082_v8   ;;  %v239_v8 = vmax.f32 %v5257_v49, %v5278_v57  ;;  %v5523_v46 = vsub.f32 %v8902_v23, %v237_v38  ;;  %v240_v49 = vmax.f32 %v5268_v53, %v5278_v57  ;;  %8905 = vst [vmem:[#allocation41_spill] sm:$0xff] %v5535_v37 }
  0xdf   :  { %8900 = vst [vmem:[#allocation38_spill] sm:$0xff] %v5515_v4  ;;  %v633_v60 = vsub.f32 %v8906_v28, %v617_v5  ;;  %v8907_v48 = vmin.f32 %v5208_v30, %v5274_v55  ;;  %v634_v5 = vsub.f32 %v8909_v27, %v618_v22  ;;  %v8910_v54 = vmax.f32 %v5206_v29, %v5274_v55  ;;  %v8942_v4 = vld [vmem:[#allocation31_spill] sm:$0xff] }
  0xe0   :  { %v5501_v42 = vpop.permute.xlu1 %331  ;;  %v5510_v36 = vpop.permute.xlu0 %363  ;;  %8903 = vst [vmem:[#allocation39_spill] sm:$0xff] %v5523_v46  ;;  %v636_v28 = vsub.f32 %v604_v59, %v620_v33  ;;  %v8911_v53 = vmin.f32 %v5206_v29, %v5274_v55  ;;  %v637_v43 = vsub.f32 %v605_v16, %v621_v18  ;;  %v8913_v30 = vand.u32 4294901760, %v5530_v24  ;;  %v5590_v18 = vld [vmem:[%s8630_s2 + $0x18] sm:$0xff]  ;;  %v8933_v59 = vld [vmem:[#allocation23_spill] sm:$0xff] }
  0xe1   :  { %947 = vperm.xlu0 %4659, %v5106_v12   ;;  %v5549_v23 = vsub.f32 %v8907_v48, %v238_v45  ;;  %v635_v57 = vsub.f32 %v8910_v54, %v619_v40  ;;  %v1036_v45 = vsub.s32 7, %v5253_v47  ;;  %v8914_v22 = vand.u32 4294901760, %v5535_v37  ;;  %8920 = vst [vmem:[#allocation48_spill] sm:$0xff] %v5590_v18  ;;  %v8931_v33 = vld [vmem:[#allocation14_spill] sm:$0xff] }
  0xe2   :  { %1067 = vperm.xlu1 %4653, %v5077_v7   ;;  %v5562_v38 = vsub.f32 %v8911_v53, %v239_v8  ;;  %v5574_v40 = vmul.f32 %v632_v25, %v632_v25  ;;  %v8917_v29 = vmin.f32 %v5214_v32, %v5274_v55  ;;  %v5585_v8 = vld [vmem:[%s8630_s2 + $0x10] sm:$0xff]  ;;  %v5592_v53 = vmul.f32 %v633_v60, %v633_v60 }
  0xe3   :  { %8908 = vst [vmem:[#allocation42_spill] sm:$0xff] %v5549_v23  ;;  %v5571_v48 = vpack.c.bf16 %v8914_v22, %v8913_v30  ;;  %8919 = vst [vmem:[#allocation47_spill] sm:$0xff] %v5585_v8  ;;  %v8921_v25 = vmin.f32 %v5212_v31, %v5274_v55  ;;  %v8671_v32 = vand.u32 4294901760, %v5585_v8  ;;  %v5604_v30 = vmul.f32 %v634_v5, %v634_v5  ;;  %v8935_v8 = vld [vmem:[#allocation24_spill] sm:$0xff] }
  0xe4   :  { %v5557_v15 = vpop.permute.xlu1 %339  ;;  %8912 = vst [vmem:[#allocation43_spill] sm:$0xff] %v5562_v38  ;;  %v5564_v63 = vpop.permute.xlu0 %375  ;;  %8916 = vst [vmem:[#allocation45_spill] sm:$0xff] %v5574_v40  ;;  %v5580_v16 = vsub.f32 %v8917_v29, %v240_v49  ;;  %v8670_v49 = vand.u32 4294901760, %v5590_v18  ;;  %v5606_v22 = vmul.f32 %v635_v57, %v635_v57  ;;  %v5608_v60 = vmul.f32 %v636_v28, %v636_v28 }
  0xe5   :  { %8915 = vst [vmem:[#allocation44_spill] sm:$0xff] %v5571_v48  ;;  %v5597_v27 = vsub.f32 %v8921_v25, %v241_v0  ;;  %955 = vperm.xlu0 %4659, %v5118_v14   ;;  %8923 = vst [vmem:[#allocation50_spill] sm:$0xff] %v5604_v30  ;;  %v5612_v55 = vmul.f32 %v637_v43, %v637_v43  ;;  %v5619_v29 = vrot.slane %v5265_v51, %v1036_v45  ;;  %v8932_v25 = vld [vmem:[#allocation22_spill] sm:$0xff] }
  0xe6   :  { %8918 = vst [vmem:[#allocation46_spill] sm:$0xff] %v5580_v16  ;;  %4654 = vset.pattern.permute.xlu1 %v8894_v10  ;;  %8924 = vst [vmem:[#allocation51_spill] sm:$0xff] %v5606_v22  ;;  %4450 = vmatprep.subr.bf16.mxu0 %v5571_v48  ;;  %v5627_v5 = vpack.c.bf16 %v8670_v49, %v8671_v32  ;;  %v5632_v57 = vmul.f32 %v5292_v52, %v5292_v52  ;;  %v8929_v32 = vld [vmem:[#allocation27_spill] sm:$0xff]  ;;  %v8938_v16 = vld [vmem:[#allocation26_spill] sm:$0xff] }
  0xe7   :  { %8922 = vst [vmem:[#allocation49_spill] sm:$0xff] %v5597_v27  ;;  %8925 = vst [vmem:[#allocation52_spill] sm:$0xff] %v5608_v60  ;;  %919 = vperm.xlu1 %4654, %v5053_v3   ;;  %4354 = vmatprep.subr.bf16.mxu1 %v5571_v48  ;;  %v5636_v28 = vmul.f32 %v5296_v17, %v5296_v17  ;;  %v658_v45 = vmin.f32 %v5510_v36, %v5350_v11  ;;  %v8930_v17 = vld [vmem:[#allocation21_spill] sm:$0xff]  ;;  %v8944_v22 = vld [vmem:[#allocation11_spill] sm:$0xff] }
  0xe8   :  { %8926 = vst [vmem:[#allocation53_spill] sm:$0xff] %v5612_v55  ;;  %v5614_v14 = vpop.permute.xlu1 %367  ;;  %v5616_v0 = vpop.permute.xlu0 %383  ;;  %8927 = vst [vmem:[#allocation54_spill] sm:$0xff] %v5619_v29  ;;  %4452 = vmatpush3.bf16.msra.mxu0 %v5571_v48  ;;  %4356 = vmatpush3.bf16.msra.mxu1 %v5571_v48  ;;  %v5645_v49 = vmul.f32 %v5315_v35, %v5315_v35  ;;  %v5649_v52 = vmul.f32 %v5319_v44, %v5319_v44  ;;  %v8934_v48 = vld [vmem:[#allocation17_spill] sm:$0xff] }
  0xe9   :  { %8928 = vst [vmem:[#allocation55_spill] sm:$0xff] %v5627_v5  ;;  %v346_v31 = vmin.f32 %v8930_v17, %v8929_v32  ;;  %959 = vperm.xlu0 %4659, %v8931_v33   ;;  %4454 = vmatprep.subr.bf16.mxu0 %v5627_v5  ;;  %v642_v43 = vmax.f32 %v8930_v17, %v8929_v32 }
  0xea   :  { %v643_v35 = vmax.f32 %v8932_v25, %v8929_v32  ;;  %v430_v17 = vmax.f32 %v5510_v36, %v5350_v11  ;;  %4358 = vmatprep.subr.bf16.mxu1 %v5627_v5  ;;  %v661_v37 = vmin.f32 %v5564_v63, %v5350_v11  ;;  %v8937_v36 = vld [vmem:[#allocation25_spill] sm:$0xff]  ;;  %v659_v27 = vmin.f32 %v5614_v14, %v5350_v11 }
  0xeb   :  { %4655 = vset.pattern.permute.xlu1 %v8883_v61  ;;  %v674_v18 = vsub.f32 %v642_v43, %v658_v45  ;;  %v349_v38 = vmin.f32 %v8937_v36, %v8929_v32  ;;  %v645_v46 = vmax.f32 %v8937_v36, %v8929_v32  ;;  %v8939_v43 = vld [vmem:[#allocation16_spill] sm:$0xff]  ;;  %v8940_v45 = vld [vmem:[#allocation29_spill] sm:$0xff] }
  0xec   :  { %1075 = vperm.xlu1 %4655, %v5089_v9   ;;  %v5672_v54 = vpop.permute.xlu1 %371  ;;  %v5674_v24 = vpop.permute.xlu0 %391  ;;  %4456 = vmatpush3.bf16.msra.mxu0 %v5627_v5  ;;  %v351_v60 = vmin.f32 %v8940_v45, %v8929_v32  ;;  %v446_v55 = vsub.f32 %v346_v31, %v430_v17  ;;  %v675_v21 = vsub.f32 %v643_v35, %v659_v27 }
  0xed   :  { %4360 = vmatpush3.bf16.msra.mxu1 %v5627_v5  ;;  %963 = vperm.xlu0 %4659, %v8939_v43   ;;  %v647_v5 = vmax.f32 %v8940_v45, %v8929_v32  ;;  %v433_v43 = vmax.f32 %v5564_v63, %v5350_v11  ;;  %v706_v36 = vmul.f32 %v674_v18, %v674_v18 }
  0xee   :  { %v677_v40 = vsub.f32 %v645_v46, %v661_v37  ;;  %v431_v37 = vmax.f32 %v5614_v14, %v5350_v11  ;;  %v663_v18 = vmin.f32 %v5616_v0, %v5350_v11  ;;  %v462_v17 = vmax.f32 %v446_v55, 0.0 }
  0xef   :  { %v449_v29 = vsub.f32 %v349_v38, %v433_v43  ;;  %v722_v46 = vadd.f32 %v706_v36, %v5465_v26  ;;  %v359_v38 = vmin.f32 %v5501_v42, %v8929_v32  ;;  %v435_v55 = vmax.f32 %v5616_v0, %v5350_v11  ;;  %v8947_v26 = vld [vmem:[#allocation9_spill] sm:$0xff] }
  0xf0   :  { %4656 = vset.pattern.permute.xlu1 %v8894_v10  ;;  %v5708_v44 = vpop.permute.xlu1 %379  ;;  %v5710_v45 = vpop.permute.xlu0 %399  ;;  %v709_v23 = vmul.f32 %v677_v40, %v677_v40  ;;  %v655_v40 = vmax.f32 %v5501_v42, %v8929_v32  ;;  %v8948_v27 = vmin.f32 %v8932_v25, %v8929_v32  ;;  %v679_v36 = vsub.f32 %v647_v5, %v663_v18  ;;  %v8951_v18 = vld [vmem:[#allocation20_spill] sm:$0xff] }
  0xf1   :  { %923 = vperm.xlu1 %4656, %v8944_v22   ;;  %967 = vperm.xlu0 %4659, %v8945_v2   ;;  %v904_v22 = vsub.s32 6, %v5253_v47  ;;  %v8946_v47 = vld [vmem:[#allocation19_spill] sm:$0xff]  ;;  %v361_v0 = vmin.f32 %v5557_v15, %v8929_v32  ;;  %v465_v31 = vmax.f32 %v449_v29, 0.0  ;;  %v8950_v42 = vmax.f32 %v5433_v56, 0.0 }
  0xf2   :  { %v447_v35 = vsub.f32 %v8948_v27, %v431_v37  ;;  %v725_v25 = vadd.f32 %v709_v23, %v5484_v39  ;;  %v707_v5 = vmul.f32 %v675_v21, %v675_v21  ;;  %v5776_v37 = vadd.f32 1e-07, %v722_v46  ;;  %v5789_v56 = vld [vmem:[%s8630_s2 + $0x20] sm:$0xff] }
  0xf3   :  { %v5761_v43 = vrot.slane %v5265_v51, %v904_v22  ;;  %v5771_v14 = vmul.f32 %v462_v17, %v8950_v42  ;;  %v660_v51 = vmin.f32 %v5672_v54, %v5350_v11  ;;  %v5779_v27 = vsub.f32 %v351_v60, %v435_v55  ;;  %8953 = vst [vmem:[#allocation21_spill] sm:$0xff] %v5789_v56 }
  0xf4   :  { %v5737_v2 = vpop.permute.xlu1 %387  ;;  %v5739_v30 = vpop.permute.xlu0 %407  ;;  %v463_v39 = vmax.f32 %v447_v35, 0.0  ;;  %v711_v21 = vmul.f32 %v679_v36, %v679_v36  ;;  %v432_v23 = vmax.f32 %v5672_v54, %v5350_v11  ;;  %v437_v60 = vmax.f32 %v5674_v24, %v5350_v11 }
  0xf5   :  { %4657 = vset.pattern.permute.xlu1 %v8883_v61  ;;  %2666 = vrot.lane.b32.xlu0 %v8947_v26, %s4998_s14  ;;  %8949 = vst [vmem:[#allocation27_spill] sm:$0xff] %v5761_v43  ;;  %v8952_v43 = vld [vmem:[#allocation13_spill] sm:$0xff]  ;;  %v665_v17 = vmin.f32 %v5674_v24, %v5350_v11  ;;  %v723_v35 = vadd.f32 %v707_v5, %v5462_v20  ;;  %v8957_v20 = vld [vmem:[#allocation10_spill] sm:$0xff] }
  0xf6   :  { %1079 = vperm.xlu1 %4657, %v5106_v12   ;;  %v657_v12 = vmax.f32 %v5557_v15, %v8929_v32  ;;  %v8955_v54 = vmax.f32 %v8933_v59, %v8929_v32  ;;  %v5811_v22 = vmul.f32 %v5776_v37, %v5771_v14  ;;  %v8958_v5 = vmin.f32 %v8933_v59, %v8929_v32 }
  0xf8   :  { %v5767_v63 = vpop.permute.xlu1 %395  ;;  %v416_v26 = vpop.permute.xlu0 %415  ;;  %v676_v36 = vsub.f32 %v8955_v54, %v660_v51  ;;  %8956 = vst [vmem:[#allocation14_spill] sm:$0xff] %v5811_v22  ;;  %v448_v51 = vsub.f32 %v8958_v5, %v432_v23  ;;  %v8961_v54 = vmax.f32 %v8942_v4, %v8929_v32 }
  0xf9   :  { %v443_v15 = vmax.f32 %v416_v26, %v5350_v11  ;;  %v671_v29 = vmin.f32 %v416_v26, %v5350_v11  ;;  %2670 = vrot.lane.b32.xlu0 %v5053_v3, %s4998_s14  ;;  %v8954_v26 = vmax.f32 %v5452_v34, 0.0 }
  0xfa   :  { %1083 = vperm.xlu1 %4657, %v8952_v43   ;;  %v708_v5 = vmul.f32 %v676_v36, %v676_v36 }
  0xfb   :  { %v5797_v46 = vsub.f32 %v359_v38, %v443_v15  ;;  %v687_v55 = vsub.f32 %v655_v40, %v671_v29  ;;  %v5803_v42 = vmul.f32 %v465_v31, %v8954_v26  ;;  %v5821_v31 = vadd.f32 %v711_v21, %v5504_v19 }
  0xfc   :  { %v5799_v3 = vpop.permute.xlu1 %403  ;;  %v424_v43 = vpop.permute.xlu0 %423  ;;  %v8959_v29 = vmin.f32 %v8942_v4, %v8929_v32  ;;  %v681_v19 = vsub.f32 %v8961_v54, %v665_v17  ;;  %v434_v4 = vmax.f32 %v5708_v44, %v5350_v11  ;;  %v5875_v54 = vadd.f32 %v708_v5, %v5472_v6 }
  0xfd   :  { %v719_v40 = vmul.f32 %v687_v55, %v687_v55  ;;  %v445_v15 = vmax.f32 %v424_v43, %v5350_v11  ;;  %v673_v34 = vmin.f32 %v424_v43, %v5350_v11  ;;  %2674 = vrot.lane.b32.xlu0 %v8957_v20, %s4998_s14  ;;  %v8960_v43 = vmax.f32 %v5431_v58, 0.0 }
  0xfe   :  { %4658 = vset.pattern.permute.xlu1 %v8894_v10  ;;  %v5829_v55 = vsub.f32 %v8959_v29, %v437_v60  ;;  %v5848_v58 = vadd.f32 1e-07, %v725_v25  ;;  %v8962_v25 = vmin.f32 %v5437_v13, %v8929_v32  ;;  %v669_v5 = vmin.f32 %v5739_v30, %v5350_v11 }
  0xff   :  { %935 = vperm.xlu1 %4658, %v5077_v7   ;;  %v5834_v26 = vmul.f32 %v463_v39, %v8960_v43  ;;  %v5840_v21 = vadd.f32 %v719_v40, %v5636_v28  ;;  %v5842_v59 = vsub.f32 %v361_v0, %v445_v15  ;;  %v689_v23 = vsub.f32 %v657_v12, %v673_v34 }
 0x100   :  { %v412_v20 = vpop.permute.xlu1 %411  ;;  %v662_v28 = vmin.f32 %v5708_v44, %v5350_v11  ;;  %v667_v0 = vmin.f32 %v5710_v45, %v5350_v11  ;;  %v464_v39 = vmax.f32 %v448_v51, 0.0  ;;  %v8963_v40 = vmax.f32 %v5437_v13, %v8929_v32 }
 0x101   :  { %v442_v60 = vmax.f32 %v412_v20, %v5350_v11  ;;  %v670_v29 = vmin.f32 %v412_v20, %v5350_v11  ;;  %v5846_v38 = vpop.permute.xlu0 %499  ;;  %v721_v12 = vmul.f32 %v689_v23, %v689_v23  ;;  %2678 = vrot.lane.b32.xlu0 %v5077_v7, %s4998_s14  ;;  %v713_v44 = vmul.f32 %v681_v19, %v681_v19 }
 0x102   :  { %v439_v34 = vmax.f32 %v5710_v45, %v5350_v11  ;;  %v664_v7 = vmin.f32 %v5737_v2, %v5350_v11  ;;  %v8964_v45 = vmin.f32 %v8935_v8, %v8929_v32 }
 0x103   :  { %v458_v36 = vsub.f32 %v8962_v25, %v442_v60  ;;  %v686_v15 = vsub.f32 %v8963_v40, %v670_v29  ;;  %4660 = vset.pattern.permute.xlu1 %v8883_v61  ;;  %v5871_v51 = vadd.f32 %v721_v12, %v5649_v52  ;;  %v8965_v52 = vmax.f32 %v8935_v8, %v8929_v32 }
 0x104   :  { %1091 = vperm.xlu1 %4660, %v8931_v33   ;;  %v420_v43 = vpop.permute.xlu1 %419  ;;  %v450_v60 = vsub.f32 %v8964_v45, %v434_v4  ;;  %v8966_v33 = vmax.f32 %v5435_v50, %v8929_v32  ;;  %v8967_v4 = vmin.f32 %v5469_v1, %v8929_v32  ;;  %v8968_v8 = vmax.f32 %v5469_v1, %v8929_v32 }
 0x105   :  { %v718_v13 = vmul.f32 %v686_v15, %v686_v15  ;;  %v444_v23 = vmax.f32 %v420_v43, %v5350_v11  ;;  %v672_v19 = vmin.f32 %v420_v43, %v5350_v11  ;;  %v5879_v20 = vpop.permute.xlu0 %511  ;;  %v678_v29 = vsub.f32 %v8965_v52, %v662_v28  ;;  %2682 = vrot.lane.b32.xlu0 %v5089_v9, %s4998_s14 }
 0x106   :  { %v683_v6 = vsub.f32 %v8966_v33, %v667_v0  ;;  %v474_v12 = vmax.f32 %v458_v36, 0.0  ;;  %v5902_v15 = vadd.f32 %v713_v44, %v5592_v53  ;;  %v436_v0 = vmax.f32 %v5737_v2, %v5350_v11  ;;  %v8971_v53 = vld [vmem:[#allocation12_spill] sm:$0xff] }
 0x107   :  { %v734_v25 = vadd.f32 %v718_v13, %v5632_v57  ;;  %v460_v40 = vsub.f32 %v8967_v4, %v444_v23  ;;  %v688_v28 = vsub.f32 %v8968_v8, %v672_v19  ;;  %v8969_v9 = vmax.f32 %v8938_v16, %v8929_v32 }
 0x108   :  { %v5909_v43 = vadd.f32 1e-07, %v723_v35  ;;  %4661 = vset.pattern.permute.xlu1 %v8894_v10  ;;  %v8970_v57 = vmin.f32 %v5435_v50, %v8929_v32  ;;  %v8972_v2 = vmax.f32 %v5439_v41, 0.0  ;;  %v466_v35 = vmax.f32 %v450_v60, 0.0 }
 0x109   :  { %v680_v36 = vsub.f32 %v8969_v9, %v664_v7  ;;  %v476_v1 = vmax.f32 %v460_v40, 0.0  ;;  %v720_v23 = vmul.f32 %v688_v28, %v688_v28  ;;  %939 = vperm.xlu1 %4661, %v8971_v53   ;;  %v496_v44 = vpop.permute.xlu1 %495  ;;  %v5918_v19 = vpop.permute.xlu0 %519  ;;  %v710_v7 = vmul.f32 %v678_v29, %v678_v29  ;;  %v5974_v53 = vld [vmem:[%s8628_s0 + $0x70] sm:$0xff] }
 0x10a   :  { %v5915_v13 = vsub.f32 %v8970_v57, %v439_v34  ;;  %v5922_v45 = vmul.f32 %v464_v39, %v8972_v2  ;;  %v8973_v52 = vmax.f32 %v5467_v62, %v8929_v32  ;;  %v666_v50 = vmin.f32 %v5767_v63, %v5350_v11  ;;  %v5932_v34 = vld [vmem:[%s8628_s0 + $0x58] sm:$0xff] }
 0x10b   :  { %2686 = vrot.lane.b32.xlu0 %v5932_v34, %s4998_s14  ;;  %v715_v41 = vmul.f32 %v683_v6, %v683_v6  ;;  %v736_v39 = vadd.f32 %v720_v23, %v5645_v49  ;;  %v8974_v60 = vmax.f32 %v8934_v48, 0.0  ;;  %v5941_v4 = vadd.f32 1e-07, %v734_v25 }
 0x10c   :  { %v685_v33 = vsub.f32 %v8973_v52, %v669_v5  ;;  %v8975_v5 = vmin.f32 %v8938_v16, %v8929_v32  ;;  %v712_v8 = vmul.f32 %v680_v36, %v680_v36  ;;  %v441_v28 = vmax.f32 %v5739_v30, %v5350_v11 }
 0x10d   :  { %v5939_v29 = vmul.f32 %v474_v12, %v8974_v60  ;;  %v438_v9 = vmax.f32 %v5767_v63, %v5350_v11  ;;  %v475_v6 = vmax.f32 %v5797_v46, 0.0  ;;  %4662 = vset.pattern.permute.xlu1 %v8883_v61  ;;  %v5952_v48 = vpop.permute.xlu1 %503  ;;  %v5954_v49 = vpop.permute.xlu0 %527  ;;  %v8976_v16 = vmax.f32 %v8946_v47, 0.0  ;;  %v8978_v61 = vld [vmem:[#allocation30_spill] sm:$0xff]  ;;  %v8980_v47 = vld [vmem:[#allocation51_spill] sm:$0xff] }
 0x10e   :  { %v452_v40 = vsub.f32 %v8975_v5, %v436_v0  ;;  %v5964_v30 = vadd.f32 1e-07, %v736_v39  ;;  %v8977_v0 = vld [vmem:[#allocation37_spill] sm:$0xff]  ;;  %v717_v36 = vmul.f32 %v685_v33, %v685_v33  ;;  %v8979_v57 = vmax.f32 %v8978_v61, %v8929_v32  ;;  %1095 = vperm.xlu1 %4662, %v5974_v53   ;;  %v5992_v33 = vld [vmem:[%s8628_s0 + $0x68] sm:$0xff] }
 0x10f   :  { %v5958_v12 = vmul.f32 %v5941_v4, %v5939_v29  ;;  %v5962_v25 = vmul.f32 %v476_v1, %v8976_v16  ;;  %v726_v63 = vadd.f32 %v710_v7, %v8977_v0  ;;  %v5978_v1 = vadd.f32 %v715_v41, %v8980_v47  ;;  %2690 = vrot.lane.b32.xlu0 %v5992_v33, %s4998_s14  ;;  %v8983_v16 = vld [vmem:[#allocation45_spill] sm:$0xff]  ;;  %v8984_v47 = vld [vmem:[#allocation34_spill] sm:$0xff] }
 0x110   :  { %v682_v23 = vsub.f32 %v8979_v57, %v666_v50  ;;  %v477_v2 = vmax.f32 %v5842_v59, 0.0  ;;  %v5983_v7 = vmul.f32 %v5909_v43, %v5834_v26  ;;  %v468_v50 = vmax.f32 %v452_v40, 0.0 }
 0x111   :  { %v5987_v52 = vmul.f32 %v5964_v30, %v5962_v25  ;;  %v8981_v59 = vmin.f32 %v5467_v62, %v8929_v32  ;;  %v8982_v39 = vmin.f32 %v8978_v61, %v8929_v32  ;;  %v440_v5 = vmax.f32 %v5799_v3, %v5350_v11  ;;  %v6015_v62 = vpop.permute.xlu1 %507 }
 0x112   :  { %v728_v0 = vadd.f32 %v712_v8, %v8983_v16  ;;  %v668_v57 = vmin.f32 %v5799_v3, %v5350_v11  ;;  %v8985_v40 = vmax.f32 %v8984_v47, 0.0  ;;  %v714_v24 = vmul.f32 %v682_v23, %v682_v23  ;;  %v8989_v8 = vld [vmem:[#allocation28_spill] sm:$0xff]  ;;  %v6033_v3 = vld [vmem:[%s8628_s0 + $0x78] sm:$0xff] }
 0x113   :  { %v5999_v41 = vsub.f32 %v8981_v59, %v441_v28  ;;  %v6004_v60 = vsub.f32 %v8982_v39, %v438_v9  ;;  %v6017_v28 = vpop.permute.xlu0 %535  ;;  %v8986_v59 = vld [vmem:[#allocation18_spill] sm:$0xff]  ;;  %v8988_v39 = vld [vmem:[#allocation53_spill] sm:$0xff]  ;;  %v563_v16 = vadd.f32 %v8989_v8, %v5846_v38  ;;  %v6028_v11 = vadd.f32 1e-07, %v726_v63  ;;  %1099 = vperm.xlu1 %4662, %v6033_v3   ;;  %2694 = vrot.lane.b32.xlu0 %v6033_v3, %s4998_s14 }
 0x114   :  { %v6013_v46 = vmul.f32 %v466_v35, %v8985_v40  ;;  %v8987_v61 = vmax.f32 %v8986_v59, 0.0  ;;  %v6024_v17 = vadd.f32 %v717_v36, %v8988_v39  ;;  %v6039_v35 = vld [vmem:[%s8630_s2 + $0x28] sm:$0xff]  ;;  %v6044_v36 = vadd.f32 1e-07, %v5840_v21 }
 0x115   :  { %v8990_v38 = vmax.f32 %v8951_v18, 0.0  ;;  %v6051_v23 = vadd.f32 1e-07, %v5871_v51  ;;  %v470_v47 = vmax.f32 %v6004_v60, 0.0  ;;  %v8991_v40 = vld [vmem:[#allocation32_spill] sm:$0xff]  ;;  %v562_v21 = vadd.f32 %v8989_v8, %v496_v44  ;;  %v6069_v51 = vld [vmem:[%s8630_s2 + $0x30] sm:$0xff] }
 0x116   :  { %v6021_v9 = vmul.f32 %v475_v6, %v8987_v61  ;;  %v566_v6 = vadd.f32 %v8989_v8, %v5879_v20  ;;  %v8992_v59 = vmin.f32 %v8991_v40, %v8929_v32  ;;  %v8993_v20 = vld [vmem:[#allocation38_spill] sm:$0xff] }
 0x117   :  { %v6048_v63 = vmul.f32 %v477_v2, %v8990_v38  ;;  %v8994_v39 = vmax.f32 %v8993_v20, 0.0  ;;  %v8995_v2 = vmax.f32 %v8991_v40, %v8929_v32  ;;  %v6074_v38 = vpop.permute.xlu1 %515  ;;  %v544_v22 = vpop.permute.xlu0 %543  ;;  %v8997_v32 = vld [vmem:[#allocation50_spill] sm:$0xff]  ;;  %v6092_v40 = vsub.f32 %v563_v16, %v5834_v26  ;;  %4663 = vset.pattern.permute.xlu1 %v8894_v10 }
 0x118   :  { %v6059_v61 = vsub.f32 %v8992_v59, %v440_v5  ;;  %v6078_v5 = vmul.f32 %v6044_v36, %v6021_v9  ;;  %v6088_v59 = vld [vmem:[%s8630_s2 + $0x38] sm:$0xff]  ;;  %v568_v20 = vadd.f32 %v8989_v8, %v5918_v19  ;;  %951 = vperm.xlu1 %4663, %v5932_v34   ;;  %v9001_v26 = vand.u32 4294901760, %v6039_v35  ;;  %v6127_v34 = vld [vmem:[%s8630_s2 + $0x48] sm:$0xff] }
 0x119   :  { %v6064_v18 = vmul.f32 %v468_v50, %v8994_v39  ;;  %v684_v60 = vsub.f32 %v8995_v2, %v668_v57  ;;  %v6082_v44 = vmul.f32 %v6051_v23, %v6048_v63  ;;  %v730_v57 = vadd.f32 %v714_v24, %v8997_v32  ;;  %8998 = vst [vmem:[#allocation23_spill] sm:$0xff] %v6092_v40  ;;  %v6101_v2 = vld [vmem:[%s8630_s2 + $0x40] sm:$0xff] }
 0x11a   :  { %v574_v39 = vadd.f32 %v8989_v8, %v544_v22  ;;  %v6104_v50 = vsub.f32 %v566_v6, %v6013_v46  ;;  %v9000_v24 = vand.u32 4294901760, %v5789_v56  ;;  %v8701_v10 = vand.u32 4294901760, %v6069_v51 }
 0x11b   :  { %8996 = vst [vmem:[#allocation22_spill] sm:$0xff] %v6082_v44  ;;  %v6106_v44 = vadd.f32 1e-07, %v728_v0  ;;  %v6118_v16 = vsub.f32 %v562_v21, %v5771_v14  ;;  %v8700_v0 = vand.u32 4294901760, %v6088_v59  ;;  %v716_v32 = vmul.f32 %v684_v60, %v684_v60  ;;  %v6134_v22 = vpop.permute.xlu1 %523  ;;  %v552_v14 = vpop.permute.xlu0 %551 }
 0x11c   :  { %8999 = vst [vmem:[#allocation17_spill] sm:$0xff] %v6104_v50  ;;  %v6113_v19 = vpack.c.bf16 %v9001_v26, %v9000_v24  ;;  %v6121_v6 = vsub.f32 %v574_v39, %v5939_v29  ;;  %v6130_v24 = vadd.f32 1e-07, %v5875_v54  ;;  %v564_v26 = vadd.f32 %v8989_v8, %v5952_v48  ;;  %v6151_v39 = vld [vmem:[%s8630_s2 + $0x50] sm:$0xff] }
 0x11d   :  { %v755_v21 = vmul.f32 %v5909_v43, %v6092_v40  ;;  %v6142_v60 = vsub.f32 %v568_v20, %v6064_v18  ;;  %v576_v48 = vadd.f32 %v8989_v8, %v552_v14  ;;  %v758_v29 = vmul.f32 %v6028_v11, %v6104_v50  ;;  %v9007_v40 = vld [vmem:[#allocation42_spill] sm:$0xff] }
 0x11e   :  { %9002 = vst [vmem:[#allocation24_spill] sm:$0xff] %v6113_v19  ;;  %9003 = vst [vmem:[#allocation25_spill] sm:$0xff] %v6121_v6  ;;  %4458 = vmatprep.subr.bf16.mxu0 %v6113_v19  ;;  %4362 = vmatprep.subr.bf16.mxu1 %v6113_v19  ;;  %v766_v54 = vmul.f32 %v5941_v4, %v6121_v6  ;;  %v570_v43 = vadd.f32 %v8989_v8, %v5954_v49  ;;  %v9005_v20 = vmov 5   ;;  %v8702_v14 = vand.u32 4294901760, %v6127_v34 }
 0x11f   :  { %9004 = vst [vmem:[#allocation26_spill] sm:$0xff] %v6142_v60  ;;  %4460 = vmatpush3.bf16.msra.mxu0 %v6113_v19  ;;  %4664 = vset.pattern.permute.xlu1 %v9005_v20  ;;  %v6162_v4 = vpack.c.bf16 %v8700_v0, %v8701_v10  ;;  %v754_v6 = vmul.f32 %v5776_v37, %v6118_v16  ;;  %v9008_v50 = vmax.f32 %v9007_v40, 0.0  ;;  %v6181_v0 = vld [vmem:[%s8630_s2 + $0x58] sm:$0xff]  ;;  %v6186_v37 = vpop.permute.xlu1 %531  ;;  %v6204_v40 = vadd.f32 1e-07, %v730_v57  ;;  %v9020_v57 = vld [vmem:[#allocation52_spill] sm:$0xff] }
 0x120   :  { %4364 = vmatpush3.bf16.msra.mxu1 %v6113_v19  ;;  %v565_v49 = vadd.f32 %v8989_v8, %v6015_v62  ;;  %v6175_v20 = vsub.f32 %v576_v48, %v5962_v25  ;;  %875 = vperm.xlu1 %4664, %v5992_v33   ;;  %v6184_v10 = vsub.f32 %v564_v26, %v5922_v45  ;;  %4668 = vrcp.f32 %v766_v54  ;;  %v6208_v54 = vpop.permute.xlu0 %823 }
 0x121   :  { %9006 = vst [vmem:[#allocation16_spill] sm:$0xff] %v6162_v4  ;;  %v6170_v56 = vmul.f32 %v470_v47, %v9008_v50  ;;  %4462 = vmatprep.subr.bf16.mxu0 %v6162_v4  ;;  %4366 = vmatprep.subr.bf16.mxu1 %v6162_v4  ;;  %v9010_v25 = vand.u32 4294901760, %v6101_v2  ;;  %v6200_v47 = vld [vmem:[%s8630_s2 + $0x60] sm:$0xff]  ;;  %4670 = vrcp.f32 %v755_v21  ;;  %v760_v50 = vmul.f32 %v6106_v44, %v6142_v60  ;;  %v9014_v21 = vld [vmem:[#allocation36_spill] sm:$0xff] }
 0x122   :  { %9009 = vst [vmem:[#allocation29_spill] sm:$0xff] %v6175_v20  ;;  %v768_v26 = vmul.f32 %v5964_v30, %v6175_v20  ;;  %4672 = vrcp.f32 %v758_v29  ;;  %v6222_v30 = vld [vmem:[%s8630_s2 + $0x68] sm:$0xff]  ;;  %v6225_v29 = vsub.f32 %v565_v49, %v5803_v42  ;;  %v756_v62 = vmul.f32 %v6130_v24, %v6184_v10 }
 0x123   :  { %v6194_v33 = vpack.c.bf16 %v8702_v14, %v9010_v25  ;;  %4464 = vmatpush3.bf16.msra.mxu0 %v6162_v4  ;;  %v6212_v48 = vsub.f32 %v570_v43, %v6170_v56  ;;  %v567_v25 = vadd.f32 %v8989_v8, %v6074_v38  ;;  %4674 = vrcp.f32 %v754_v6  ;;  %v6240_v49 = vpop.permute.xlu1 %539 }
 0x124   :  { %4368 = vmatpush3.bf16.msra.mxu1 %v6162_v4  ;;  %9013 = vst [vmem:[#allocation15_spill] sm:$0xff] %v6225_v29  ;;  %v9015_v43 = vmax.f32 %v9014_v21, 0.0  ;;  %v9016_v14 = vmax.f32 %v5779_v27, 0.0  ;;  %879 = vperm.xlu1 %4664, %v5974_v53   ;;  %v572_v6 = vadd.f32 %v8989_v8, %v6017_v28  ;;  %4676 = vrcp.f32 %v768_v26  ;;  %v6258_v28 = vpop.permute.xlu0 %835  ;;  %v9026_v26 = vld [vmem:[#allocation33_spill] sm:$0xff] }
 0x125   :  { %9011 = vst [vmem:[#allocation31_spill] sm:$0xff] %v6194_v33  ;;  %9012 = vst [vmem:[#allocation11_spill] sm:$0xff] %v6212_v48  ;;  %4466 = vmatprep.subr.bf16.mxu0 %v6194_v33  ;;  %4370 = vmatprep.subr.bf16.mxu1 %v6194_v33  ;;  %v9017_v21 = vand.u32 4294901760, %v6151_v39  ;;  %v9018_v27 = vand.u32 4294901760, %v6181_v0  ;;  %v732_v4 = vadd.f32 %v716_v32, %v9020_v57  ;;  %4678 = vrcp.f32 %v760_v50  ;;  %v9022_v57 = vld [vmem:[#allocation46_spill] sm:$0xff] }
 0x126   :  { %v6231_v38 = vmul.f32 %v9016_v14, %v9015_v43  ;;  %v6251_v43 = vld [vmem:[%s8630_s2 + $0x70] sm:$0xff]  ;;  %v6256_v19 = vmul.f32 %v6028_v11, %v6013_v46  ;;  %v762_v32 = vmul.f32 %v6204_v40, %v6212_v48  ;;  %v9023_v46 = vmax.f32 %v9022_v57, 0.0 }
 0x127   :  { %v6246_v14 = vpack.c.bf16 %v9018_v27, %v9017_v21  ;;  %4468 = vmatpush3.bf16.msra.mxu0 %v6194_v33  ;;  %v6265_v21 = vld [vmem:[%s8630_s2 + $0x78] sm:$0xff]  ;;  %v9024_v11 = vmax.f32 %v6059_v61, 0.0  ;;  %vm2806_vm0 = vcmp.lt.s32.totalorder %v9026_v26, 16  ;;  %vm2890_vm1 = vcmp.ge.s32.totalorder %v9026_v26, 16 }
 0x128   :  { %9021 = vst [vmem:[#allocation9_spill] sm:$0xff] %v6265_v21  ;;  %v6275_v20 = vsub.f32 %v567_v25, %v6231_v38  ;;  %4372 = vmatpush3.bf16.msra.mxu1 %v6194_v33  ;;  %vm2891_vm2 = vcmp.lt.s32.totalorder %v9026_v26, 32  ;;  %v757_v27 = vmul.f32 %v5848_v58, %v6225_v29  ;;  %v743_v57 = vadd.f32 1e-07, %v5821_v31  ;;  %883 = vperm.xlu1 %4664, %v6033_v3   ;;  %v548_v29 = vpop.permute.xlu1 %547  ;;  %v9032_v31 = vld [vmem:[#allocation39_spill] sm:$0xff] }
 0x129   :  { %9019 = vst [vmem:[#allocation19_spill] sm:$0xff] %v6246_v14  ;;  %v488_v50 = vmul.f32 %v9024_v11, %v9023_v46  ;;  %4470 = vmatprep.subr.bf16.mxu0 %v6246_v14  ;;  %4374 = vmatprep.subr.bf16.mxu1 %v6246_v14  ;;  %v9027_v61 = vand.u32 4294901760, %v6200_v47  ;;  %v9028_v25 = vand.u32 4294901760, %v6222_v30  ;;  %4680 = vrcp.f32 %v756_v62  ;;  %v6308_v62 = vpop.permute.xlu0 %843  ;;  %vm6433_vm7 = vmand %vm2890_vm1, %vm2891_vm2 }
 0x12a   :  { %9025 = vst [vmem:[#allocation20_spill] sm:$0xff] %v6275_v20  ;;  %v569_v48 = vadd.f32 %v8989_v8, %v6134_v22  ;;  %v6301_v3 = vmul.f32 %v6106_v44, %v6064_v18  ;;  %v6305_v60 = vmul.f32 %v6130_v24, %v5922_v45  ;;  %4682 = vrcp.f32 %v762_v32 }
 0x12b   :  { %v6291_v46 = vpack.c.bf16 %v9028_v25, %v9027_v61  ;;  %v6294_v33 = vsub.f32 %v572_v6, %v488_v50  ;;  %v748_v61 = vadd.f32 1e-07, %v732_v4  ;;  %v575_v25 = vadd.f32 %v8989_v8, %v548_v29  ;;  %4472 = vmatpush3.bf16.msra.mxu0 %v6246_v14  ;;  %v6311_v6 = vpop.eup %4668 }
 0x12c   :  { %9031 = vst [vmem:[#allocation12_spill] sm:$0xff] %v6311_v6  ;;  %v759_v22 = vmul.f32 %v743_v57, %v6275_v20  ;;  %v9033_v11 = vmax.f32 %v9032_v31, 0.0  ;;  %v9034_v18 = vmax.f32 %v5829_v55, 0.0  ;;  %4376 = vmatpush3.bf16.msra.mxu1 %v6246_v14  ;;  %v9035_v45 = vand.u32 4294901760, %v6251_v43  ;;  %v6326_v29 = vpop.eup %4670  ;;  %v4896_v55 = vld [vmem:[%s8628_s0] sm:$0xff] }
 0x12d   :  { %9029 = vst [vmem:[#allocation13_spill] sm:$0xff] %v6291_v46  ;;  %9030 = vst [vmem:[#allocation10_spill] sm:$0xff] %v6294_v33  ;;  %4474 = vmatprep.subr.bf16.mxu0 %v6291_v46  ;;  %v9036_v24 = vand.u32 4294901760, %v6265_v21  ;;  %4684 = vrcp.f32 %v757_v27  ;;  %v571_v32 = vadd.f32 %v8989_v8, %v6186_v37  ;;  %v6331_v31 = vsub.f32 %v575_v25, %v6021_v9  ;;  %v9043_v14 = vld [vmem:[#allocation43_spill] sm:$0xff] }
 0x12e   :  { %v485_v44 = vmul.f32 %v9034_v18, %v9033_v11  ;;  %2664 = vrot.lane.b32.xlu1 %v4896_v55, %s4998_s14  ;;  %v6339_v11 = vmul.f32 %v6311_v6, %v5958_v12  ;;  %4378 = vmatprep.subr.bf16.mxu1 %v6291_v46  ;;  %v6342_v18 = vpop.eup %4672  ;;  %v6346_v37 = vmul.f32 %v6204_v40, %v6170_v56  ;;  %v9044_v21 = vmax.f32 %v9043_v14, 0.0 }
 0x12f   :  { %v6324_v4 = vpack.c.bf16 %v9036_v24, %v9035_v45  ;;  %9038 = vst [vmem:[#allocation30_spill] sm:$0xff] %v6331_v31  ;;  %9040 = vst [vmem:[#allocation45_spill] sm:$0xff] %v6342_v18  ;;  %v6350_v9 = vmul.f32 %v5848_v58, %v5803_v42  ;;  %v764_v27 = vmul.f32 %v748_v61, %v6294_v33  ;;  %v556_v45 = vpop.permute.xlu1 %555  ;;  %v9042_v24 = vmov 0   ;;  %v6356_v12 = vpop.eup %4674  ;;  %4476 = vmatpush3.bf16.msra.mxu0 %v6291_v46 }
 0x130   :  { %9039 = vst [vmem:[#allocation51_spill] sm:$0xff] %v6339_v11  ;;  %v6353_v25 = vsub.f32 %v569_v48, %v485_v44  ;;  %4665 = vset.pattern.permute.xlu1 %v9042_v24  ;;  %v6358_v55 = vmul.f32 %v748_v61, %v488_v50  ;;  %v9045_v56 = vmax.f32 %v5915_v13, 0.0  ;;  %v767_v42 = vmul.f32 %v6044_v36, %v6331_v31  ;;  %v6367_v33 = vpop.permute.xlu0 %851  ;;  %v6370_v48 = vpop.eup %4676  ;;  %v9051_v61 = vld [vmem:[#allocation49_spill] sm:$0xff] }
 0x131   :  { %9037 = vst [vmem:[#allocation37_spill] sm:$0xff] %v6324_v4  ;;  %v577_v58 = vadd.f32 %v8989_v8, %v556_v45  ;;  %9046 = vst [vmem:[#allocation18_spill] sm:$0xff] %v6370_v48  ;;  %4686 = vrcp.f32 %v759_v22  ;;  %v6373_v50 = vmul.f32 %v743_v57, %v6231_v38  ;;  %v745_v14 = vadd.f32 1e-07, %v5902_v15  ;;  %4478 = vmatprep.subr.bf16.mxu0 %v6324_v4  ;;  %v6379_v36 = vpop.eup %4678  ;;  %v6397_v57 = vld [vmem:[%s8631_s3] sm:$0xff] }
 0x132   :  { %9041 = vst [vmem:[#allocation34_spill] sm:$0xff] %v6353_v25  ;;  %v487_v40 = vmul.f32 %v9045_v56, %v9044_v21  ;;  %v747_v13 = vadd.f32 1e-07, %v5978_v1  ;;  %4380 = vmatpush3.bf16.msra.mxu1 %v6291_v46  ;;  %9047 = vst [vmem:[#allocation53_spill] sm:$0xff] %v6379_v36  ;;  %vm2975_vm3 = vcmp.ge.s32.totalorder %v9026_v26, 32  ;;  %vm2976_vm4 = vcmp.lt.s32.totalorder %v9026_v26, 48 }
 0x133   :  { %v573_v38 = vadd.f32 %v8989_v8, %v6240_v49  ;;  %4688 = vrcp.f32 %v767_v42  ;;  %v6388_v15 = vsub.f32 %v577_v58, %v6048_v63  ;;  %v4897_v1 = vld [vmem:[%s8628_s0 + $0x10] sm:$0xff]  ;;  %9050 = vst [vmem:[#allocation38_spill] sm:$0xff] %v6397_v57  ;;  %4382 = vmatprep.subr.bf16.mxu1 %v6324_v4  ;;  %vm3060_vm5 = vcmp.ge.s32.totalorder %v9026_v26, 48  ;;  %v6414_v56 = vpop.permute.xlu1 %827  ;;  %4480 = vmatpush3.bf16.msra.mxu0 %v6324_v4  ;;  %vm6547_vm8 = vmand %vm2975_vm3, %vm2976_vm4 }
 0x134   :  { %v6383_v21 = vsub.f32 %v571_v32, %v487_v40  ;;  %2668 = vrot.lane.b32.xlu1 %v4897_v1, %s4998_s14  ;;  %vm3061_vm6 = vcmp.lt.s32.totalorder %v9026_v26, 64  ;;  %4690 = vrcp.f32 %v764_v27  ;;  %v761_v8 = vmul.f32 %v745_v14, %v6353_v25  ;;  %v6416_v42 = vpop.permute.xlu0 %859 }
 0x135   :  { %9049 = vst [vmem:[#allocation32_spill] sm:$0xff] %v6388_v15  ;;  %v749_v63 = vadd.f32 1e-07, %v6024_v17  ;;  %v6406_v49 = vmul.f32 %v6326_v29, %v5983_v7  ;;  %v9052_v22 = vmax.f32 %v9051_v61, 0.0  ;;  %v9053_v32 = vmax.f32 %v5999_v41, 0.0  ;;  %v6427_v7 = vpop.eup %4680  ;;  %vm6569_vm9 = vmand %vm3060_vm5, %vm3061_vm6 }
 0x136   :  { %9048 = vst [vmem:[#allocation28_spill] sm:$0xff] %v6383_v21  ;;  %v769_v24 = vmul.f32 %v6051_v23, %v6388_v15  ;;  %v6420_v27 = vmul.f32 %v6342_v18, %v6256_v19  ;;  %v6425_v17 = vmul.f32 %v6370_v48, %v5987_v52  ;;  %9055 = vst [vmem:[#allocation42_spill] sm:$0xff] %v6427_v7  ;;  %v9056_v41 = vmov 0  ;;  %v9059_v19 = vld [vmem:[#allocation14_spill] sm:$0xff]  ;;  %4384 = vmatpush3.bf16.msra.mxu1 %v6324_v4 }
 0x137   :  { %v489_v45 = vmul.f32 %v9053_v32, %v9052_v22  ;;  %v9057_v41 = vsel %vm6433_vm7, 4294967295, %v9056_v41  ;;  %v6437_v23 = vmul.f32 %v745_v14, %v485_v44  ;;  %v6441_v58 = vmul.f32 %v6356_v12, %v9059_v19  ;;  %v4898_v14 = vld [vmem:[%s8628_s0 + $0x20] sm:$0xff]  ;;  %v6460_v32 = vpop.eup %4682 }
 0x138   :  { %9054 = vst [vmem:[#allocation50_spill] sm:$0xff] %v6425_v17  ;;  %9058 = vst [vmem:[#allocation36_spill] sm:$0xff] %v9057_v41  ;;  %v2810_v52 = vsel %vm2806_vm0, %v6397_v57, -1e+30  ;;  %v6448_v1 = vmul.f32 %v6379_v36, %v6301_v3  ;;  %v763_v61 = vmul.f32 %v747_v13, %v6383_v21  ;;  %v6452_v22 = vmul.f32 %v747_v13, %v487_v40  ;;  %v9063_v3 = vld [vmem:[#allocation35_spill] sm:$0xff]  ;;  %v6470_v13 = vld [vmem:[%s8631_s3 + $0x8] sm:$0xff]  ;;  %v6491_v48 = vpop.permute.xlu0 %867 }
 0x139   :  { %9060 = vst [vmem:[#allocation52_spill] sm:$0xff] %v6441_v58  ;;  %v6454_v44 = vsub.f32 %v573_v38, %v489_v45  ;;  %4692 = vrcp.f32 %v769_v24  ;;  %2672 = vrot.lane.b32.xlu1 %v4898_v14, %s4998_s14  ;;  %9062 = vst [vmem:[#allocation39_spill] sm:$0xff] %v6460_v32  ;;  %v886_v19 = vsub.f32 %v9063_v3, %v6208_v54  ;;  %v6472_v38 = vpop.eup %4684  ;;  %v6474_v24 = vpop.permute.xlu1 %831  ;;  %2826 = vmax.xlane.f32.xlu0 %v2810_v52  ;;  %v6498_v52 = vld [vmem:[%s8631_s3 + $0x10] sm:$0xff]  ;;  %v6556_v21 = vld [vmem:[%s8631_s3 + $0x18] sm:$0xff] }
 0x13a   :  { %4694 = vrcp.f32 %v761_v8  ;;  %v6464_v4 = vmul.f32 %v749_v63, %v489_v45  ;;  %9064 = vst [vmem:[#allocation43_spill] sm:$0xff] %v6470_v13  ;;  %9065 = vst [vmem:[#allocation49_spill] sm:$0xff] %v6472_v38  ;;  %v6478_v14 = vmul.f32 %v6427_v7, %v6305_v60  ;;  %v2895_v54 = vsel %vm6433_vm7, %v6397_v57, -1e+30  ;;  %v9066_v45 = vld [vmem:[#allocation40_spill] sm:$0xff]  ;;  %v9071_v8 = vld [vmem:[#allocation41_spill] sm:$0xff] }
 0x13b   :  { %9061 = vst [vmem:[#allocation46_spill] sm:$0xff] %v6454_v44  ;;  %v9067_v40 = vand.u32 4294901760, %v9066_v45  ;;  %v889_v15 = vsub.f32 %v9063_v3, %v6258_v28  ;;  %9069 = vst [vmem:[#allocation35_spill] sm:$0xff] %v6491_v48  ;;  %v9072_v17 = vand.u32 4294901760, %v9071_v8  ;;  %4696 = vrcp.f32 %v763_v61  ;;  %v4899_v28 = vld [vmem:[%s8628_s0 + $0x30] sm:$0xff]  ;;  %v6514_v60 = vpop.eup %4686  ;;  %v9091_v36 = vld [vmem:[#allocation48_spill] sm:$0xff] }
 0x13c   :  { %9070 = vst [vmem:[#allocation40_spill] sm:$0xff] %v6498_v52  ;;  %9074 = vst [vmem:[#allocation56_spill] sm:$0xff] %v6514_v60  ;;  %v6516_v48 = vmul.f32 %v886_v19, %v886_v19  ;;  %v2897_v19 = vsel %vm6433_vm7, %v6498_v52, -1e+30  ;;  %v1040_v6 = vpop.permute.xlu0 %1039 }
 0x13d   :  { %v6487_v46 = vsub.f32 %v9066_v45, %v9067_v40  ;;  %v6503_v25 = vsub.f32 %v9071_v8, %v9072_v17  ;;  %v765_v40 = vmul.f32 %v749_v63, %v6454_v44  ;;  %2676 = vrot.lane.b32.xlu1 %v4899_v28, %s4998_s14  ;;  %v2896_v45 = vsel %vm6433_vm7, %v6470_v13, -1e+30  ;;  %v6527_v8 = vpop.eup %4688  ;;  %v6529_v28 = vpop.permute.xlu1 %839  ;;  %2911 = vmax.xlane.f32.xlu0 %v2895_v54 }
 0x13e   :  { %v6520_v17 = vmul.f32 %v6472_v38, %v6350_v9  ;;  %v6524_v63 = vmul.f32 %v6460_v32, %v6346_v37  ;;  %9076 = vst [vmem:[#allocation58_spill] sm:$0xff] %v6527_v8  ;;  %v6538_v9 = vsel %vm2806_vm0, %v6470_v13, -1e+30  ;;  %v6541_v32 = vpop.eup %4690  ;;  %v9079_v44 = vmov 0 }
 0x13f   :  { %9068 = vst [vmem:[#allocation14_spill] sm:$0xff] %v6487_v46  ;;  %9073 = vst [vmem:[#allocation41_spill] sm:$0xff] %v6503_v25  ;;  %v1570_v31 = vand.u32 4294901760, %v6487_v46  ;;  %v1577_v61 = vand.u32 4294901760, %v6503_v25  ;;  %v9080_v44 = vsel %vm6547_vm8, 4294967295, %v9079_v44  ;;  %v6551_v54 = vmul.f32 %v889_v15, %v889_v15 }
 0x140   :  { %9075 = vst [vmem:[#allocation57_spill] sm:$0xff] %v6524_v63  ;;  %9077 = vst [vmem:[#allocation59_spill] sm:$0xff] %v6538_v9  ;;  %v9085_v15 = vmov 0  ;;  %4698 = vrcp.f32 %v765_v40  ;;  %v891_v38 = vsub.f32 %v9063_v3, %v6308_v62 }
 0x141   :  { %v1571_v37 = vsub.f32 %v6487_v46, %v1570_v31  ;;  %9078 = vst [vmem:[#allocation60_spill] sm:$0xff] %v6541_v32  ;;  %9081 = vst [vmem:[#allocation61_spill] sm:$0xff] %v9080_v44  ;;  %v6560_v46 = vmul.f32 %v6527_v8, %v6078_v5  ;;  %v6562_v18 = vpack.c.bf16 %v1577_v61, %v1570_v31  ;;  %v9086_v15 = vsel %vm6569_vm9, 4294967295, %v9085_v15  ;;  %v4900_v5 = vld [vmem:[%s8628_s0 + $0x40] sm:$0xff]  ;;  %v9098_v8 = vld [vmem:[#allocation22_spill] sm:$0xff] }
 0x142   :  { %9082 = vst [vmem:[#allocation62_spill] sm:$0xff] %v6551_v54  ;;  %v1578_v63 = vsub.f32 %v6503_v25, %v1577_v61  ;;  %9087 = vst [vmem:[#allocation65_spill] sm:$0xff] %v9086_v15  ;;  %2680 = vrot.lane.b32.xlu1 %v4900_v5, %s4998_s14  ;;  %v6581_v31 = vmul.f32 %v6514_v60, %v6373_v50  ;;  %v9092_v54 = vand.u32 4294901760, %v9091_v36  ;;  %v848_v50 = vpop.permute.xlu1 %847  ;;  %2913 = vmax.xlane.f32.xlu0 %v2896_v45  ;;  %v4901_v45 = vld [vmem:[%s8628_s0 + $0x50] sm:$0xff]  ;;  %v9107_v60 = vld [vmem:[#allocation54_spill] sm:$0xff] }
 0x143   :  { %9083 = vst [vmem:[#allocation63_spill] sm:$0xff] %v6560_v46  ;;  %9084 = vst [vmem:[#allocation64_spill] sm:$0xff] %v6562_v18  ;;  %v1572_v61 = vand.u32 4294901760, %v1571_v37  ;;  %4482 = vmatprep.subr.bf16.mxu0 %v6562_v18  ;;  %v9088_v46 = vld [vmem:[#allocation47_spill] sm:$0xff]  ;;  %v6595_v5 = vpop.eup %4692  ;;  %v2981_v37 = vsel %vm6547_vm8, %v6470_v13, -1e+30 }
 0x144   :  { %v1579_v40 = vand.u32 4294901760, %v1578_v63  ;;  %v9089_v25 = vand.u32 4294901760, %v9088_v46  ;;  %v6593_v9 = vsub.f32 %v9091_v36, %v9092_v54  ;;  %9094 = vst [vmem:[#allocation66_spill] sm:$0xff] %v6595_v5  ;;  %v6603_v63 = vsel %vm2806_vm0, %v6498_v52, -1e+30  ;;  %v6612_v36 = vpop.eup %4694 }
 0x145   :  { %9095 = vst [vmem:[#allocation67_spill] sm:$0xff] %v6603_v63  ;;  %9097 = vst [vmem:[#allocation69_spill] sm:$0xff] %v6612_v36  ;;  %v6622_v18 = vmul.f32 %v6595_v5, %v9098_v8  ;;  %v6640_v8 = vld [vmem:[%s8631_s3 + $0x20] sm:$0xff]  ;;  %v6656_v5 = vpop.eup %4696  ;;  %v9117_v52 = vand.u32 4294901760, %v6088_v59  ;;  %v9134_v15 = vand.u32 4294901760, %v6181_v0 }
 0x146   :  { %v6588_v62 = vsub.f32 %v9088_v46, %v9089_v25  ;;  %9093 = vst [vmem:[#allocation48_spill] sm:$0xff] %v6593_v9  ;;  %v6610_v25 = vmul.f32 %v6541_v32, %v6358_v55  ;;  %v6624_v63 = vpack.c.bf16 %v1579_v40, %v1572_v61  ;;  %v6626_v46 = vmul.f32 %v891_v38, %v891_v38  ;;  %v6630_v32 = vpop.permute.xlu0 %1051 }
 0x147   :  { %9099 = vst [vmem:[#allocation22_spill] sm:$0xff] %v6622_v18  ;;  %v893_v55 = vsub.f32 %v9063_v3, %v6367_v33  ;;  %2684 = vrot.lane.b32.xlu1 %v4901_v45, %s4998_s14  ;;  %v9101_v38 = vand.u32 4294901760, %v6039_v35  ;;  %v6651_v40 = vsel %vm2806_vm0, %v6556_v21, -1e+30  ;;  %v1591_v54 = vand.u32 4294901760, %v6593_v9  ;;  %9104 = vst [vmem:[#allocation73_spill] sm:$0xff] %v6656_v5  ;;  %v6658_v18 = vpop.permute.xlu1 %855  ;;  %2915 = vmax.xlane.f32.xlu0 %v2897_v19 }
 0x148   :  { %9090 = vst [vmem:[#allocation47_spill] sm:$0xff] %v6588_v62  ;;  %9096 = vst [vmem:[#allocation68_spill] sm:$0xff] %v6610_v25  ;;  %4386 = vmatprep.subr.bf16.mxu1 %v6624_v63  ;;  %v1584_v45 = vand.u32 4294901760, %v6588_v62  ;;  %v4902_v33 = vld [vmem:[%s8628_s0 + $0x60] sm:$0xff]  ;;  %v6842_v26 = vsub.f32 %v6181_v0, %v9134_v15 }
 0x149   :  { %9100 = vst [vmem:[#allocation70_spill] sm:$0xff] %v6624_v63  ;;  %v6645_v61 = vsub.f32 %v6039_v35, %v9101_v38  ;;  %9103 = vst [vmem:[#allocation72_spill] sm:$0xff] %v6651_v40  ;;  %v6662_v35 = vmul.f32 %v6612_v36, %v6437_v23  ;;  %v887_v40 = vsub.f32 %v9063_v3, %v6414_v56  ;;  %v6688_v56 = vsel %vm2806_vm0, %v6640_v8, -1e+30 }
 0x14a   :  { %9105 = vst [vmem:[#allocation74_spill] sm:$0xff] %v6658_v18  ;;  %v895_v18 = vsub.f32 %v9063_v3, %v6416_v42  ;;  %v1102_v23 = vsub.f32 %v9107_v60, %v1040_v6  ;;  %v6679_v38 = vmul.f32 %v893_v55, %v893_v55  ;;  %v1060_v36 = vpop.permute.xlu0 %1059  ;;  %v6693_v6 = vld [vmem:[%s8631_s3 + $0x28] sm:$0xff]  ;;  %v9109_v55 = vand.u32 4294901760, %v6069_v51  ;;  %v6714_v25 = vpop.eup %4698 }
 0x14b   :  { %9102 = vst [vmem:[#allocation71_spill] sm:$0xff] %v6645_v61  ;;  %9106 = vst [vmem:[#allocation75_spill] sm:$0xff] %v6662_v35  ;;  %2688 = vrot.lane.b32.xlu1 %v4902_v33, %s4998_s14  ;;  %v6705_v33 = vmul.f32 %v6656_v5, %v6452_v22  ;;  %v6710_v63 = vsel %vm2806_vm0, %v6693_v6, -1e+30  ;;  %v1592_v13 = vsub.f32 %v6593_v9, %v1591_v54  ;;  %2998 = vmax.xlane.f32.xlu0 %v2981_v37  ;;  %v6723_v22 = vld [vmem:[%s8631_s3 + $0x30] sm:$0xff] }
 0x14c   :  { %9108 = vst [vmem:[#allocation54_spill] sm:$0xff] %v6679_v38  ;;  %v6701_v19 = vsub.f32 %v6069_v51, %v9109_v55  ;;  %v1585_v38 = vsub.f32 %v6588_v62, %v1584_v45  ;;  %9112 = vst [vmem:[#allocation78_spill] sm:$0xff] %v6714_v25  ;;  %v888_v42 = vsub.f32 %v9063_v3, %v6474_v24  ;;  %v6718_v51 = vpop.permute.xlu1 %863  ;;  %v9114_v62 = vld [vmem:[#allocation21_spill] sm:$0xff]  ;;  %v6747_v55 = vsel %vm2806_vm0, %v6723_v22, -1e+30 }
 0x14d   :  { %9111 = vst [vmem:[#allocation77_spill] sm:$0xff] %v6705_v33  ;;  %9113 = vst [vmem:[#allocation79_spill] sm:$0xff] %v6723_v22  ;;  %v9115_v5 = vand.u32 4294901760, %v9114_v62  ;;  %v6736_v24 = vsub.f32 %v6088_v59, %v9117_v52  ;;  %v6738_v37 = vmul.f32 %v887_v40, %v887_v40  ;;  %v6740_v33 = vmul.f32 %v895_v18, %v895_v18  ;;  %v6759_v59 = vld [vmem:[%s8631_s3 + $0x38] sm:$0xff] }
 0x14e   :  { %9110 = vst [vmem:[#allocation76_spill] sm:$0xff] %v6701_v19  ;;  %v6742_v35 = vmul.f32 %v1102_v23, %v1102_v23  ;;  %v6752_v20 = vpop.permute.xlu0 %1071  ;;  %v9120_v52 = vand.u32 4294901760, %v6101_v2  ;;  %v1586_v40 = vand.u32 4294901760, %v1585_v38  ;;  %v1593_v23 = vand.u32 4294901760, %v1592_v13 }
 0x14f   :  { %v6731_v9 = vsub.f32 %v9114_v62, %v9115_v5  ;;  %9118 = vst [vmem:[#allocation80_spill] sm:$0xff] %v6736_v24  ;;  %9119 = vst [vmem:[#allocation81_spill] sm:$0xff] %v6740_v33  ;;  %v890_v62 = vsub.f32 %v9063_v3, %v6529_v28  ;;  %v892_v5 = vsub.f32 %v9063_v3, %v848_v50  ;;  %2692 = vrot.lane.b32.xlu1 %v5974_v53, %s4998_s14 }
 0x150   :  { %v6767_v28 = vsub.f32 %v6101_v2, %v9120_v52  ;;  %v6771_v50 = vmul.f32 %v6714_v25, %v6464_v4  ;;  %v6776_v53 = vsel %vm2806_vm0, %v6759_v59, -1e+30  ;;  %v6778_v33 = vmul.f32 %v888_v42, %v888_v42  ;;  %v6781_v7 = vpop.permute.xlu1 %871 }
 0x151   :  { %9116 = vst [vmem:[#allocation21_spill] sm:$0xff] %v6731_v9  ;;  %9123 = vst [vmem:[#allocation84_spill] sm:$0xff] %v6776_v53  ;;  %v1107_v18 = vsub.f32 %v9107_v60, %v1060_v36  ;;  %v9124_v2 = vsel %vm6433_vm7, %v6556_v21, -1e+30  ;;  %v1598_v4 = vand.u32 4294901760, %v6731_v9  ;;  %v1134_v25 = vsub.f32 %v6742_v35, %v6441_v58  ;;  %v6808_v53 = vld [vmem:[%s8631_s3 + $0x40] sm:$0xff] }
 0x152   :  { %9121 = vst [vmem:[#allocation82_spill] sm:$0xff] %v6767_v28  ;;  %9122 = vst [vmem:[#allocation83_spill] sm:$0xff] %v6771_v50  ;;  %2917 = vmax.xlane.f32.xlu0 %v9124_v2  ;;  %v1626_v52 = vand.u32 4294901760, %v6767_v28  ;;  %v1105_v13 = vsub.f32 %v9107_v60, %v6630_v32  ;;  %v9125_v38 = vand.u32 4294901760, %v6127_v34  ;;  %v6801_v2 = vmul.f32 %v890_v62, %v890_v62  ;;  %v1088_v41 = vpop.permute.xlu0 %1087 }
 0x153   :  { %v6803_v50 = vmul.f32 %v892_v5, %v892_v5  ;;  %9128 = vst [vmem:[#allocation87_spill] sm:$0xff] %v6808_v53  ;;  %v6810_v32 = vpack.c.bf16 %v1591_v54, %v1584_v45  ;;  %v1605_v58 = vand.u32 4294901760, %v6645_v61  ;;  %v1114_v36 = vsub.f32 %v9107_v60, %v1088_v41 }
 0x154   :  { %v6799_v42 = vsub.f32 %v6127_v34, %v9125_v38  ;;  %9127 = vst [vmem:[#allocation86_spill] sm:$0xff] %v6801_v2  ;;  %v6814_v22 = vpack.c.bf16 %v1593_v23, %v1586_v40  ;;  %v6819_v34 = vsel %vm2806_vm0, %v6808_v53, -1e+30  ;;  %v1627_v62 = vsub.f32 %v6767_v28, %v1626_v52 }
 0x155   :  { %9129 = vst [vmem:[#allocation88_spill] sm:$0xff] %v6810_v32  ;;  %v6822_v5 = vmul.f32 %v1107_v18, %v1107_v18  ;;  %v9131_v54 = vsel %vm6569_vm9, %v6397_v57, -1e+30  ;;  %v1599_v45 = vsub.f32 %v6731_v9, %v1598_v4  ;;  %v9132_v40 = vand.u32 4294901760, %v6151_v39  ;;  %v1044_v18 = vpop.permute.xlu1 %1043 }
 0x156   :  { %9126 = vst [vmem:[#allocation85_spill] sm:$0xff] %v6799_v42  ;;  %9130 = vst [vmem:[#allocation89_spill] sm:$0xff] %v6814_v22  ;;  %3081 = vmax.xlane.f32.xlu0 %v9131_v54  ;;  %v1633_v41 = vand.u32 4294901760, %v6799_v42  ;;  %v1150_v38 = vadd.f32 1.0000001, %v1134_v25  ;;  %v6835_v53 = vmul.f32 %v1105_v13, %v1105_v13  ;;  %v6837_v28 = vmul.f32 %v1114_v36, %v1114_v36 }
 0x157   :  { %v6833_v23 = vsub.f32 %v6151_v39, %v9132_v40  ;;  %v1103_v54 = vsub.f32 %v9107_v60, %v1044_v18  ;;  %v6845_v9 = vpack.c.bf16 %v1605_v58, %v1598_v4  ;;  %v912_v40 = vpop.permute.xlu0 %911  ;;  %v1606_v25 = vsub.f32 %v6645_v61, %v1605_v58  ;;  %v9137_v18 = vld [vmem:[#allocation27_spill] sm:$0xff] }
 0x158   :  { %v6847_v22 = vpack.c.bf16 %v1633_v41, %v1626_v52  ;;  %v1634_v39 = vsub.f32 %v6799_v42, %v1633_v41  ;;  %v1628_v13 = vand.u32 4294901760, %v1627_v62  ;;  %v1647_v2 = vand.u32 4294901760, %v6842_v26 }
 0x159   :  { %9133 = vst [vmem:[#allocation90_spill] sm:$0xff] %v6833_v23  ;;  %9135 = vst [vmem:[#allocation91_spill] sm:$0xff] %v6845_v9  ;;  %v1640_v36 = vand.u32 4294901760, %v6833_v23  ;;  %v1139_v0 = vsub.f32 %v6822_v5, %v6581_v31  ;;  %v6855_v15 = vmul.f32 %v1103_v54, %v1103_v54  ;;  %v971_v4 = vsub.f32 %v9137_v18, %v912_v40  ;;  %v1048_v42 = vpop.permute.xlu1 %1047 }
 0x15a   :  { %9136 = vst [vmem:[#allocation92_spill] sm:$0xff] %v6847_v22  ;;  %2834 = vmax.xlane.f32.xlu0 %v6688_v56  ;;  %v1635_v52 = vand.u32 4294901760, %v1634_v39  ;;  %v1146_v41 = vsub.f32 %v6837_v28, %v6339_v11  ;;  %v1648_v61 = vsub.f32 %v6842_v26, %v1647_v2  ;;  %v1104_v9 = vsub.f32 %v9107_v60, %v1048_v42 }
 0x15b   :  { %v6861_v58 = vpack.c.bf16 %v1647_v2, %v1640_v36  ;;  %v1641_v62 = vsub.f32 %v6833_v23, %v1640_v36  ;;  %v1135_v22 = vsub.f32 %v6855_v15, %v6406_v49  ;;  %v1003_v54 = vmul.f32 %v971_v4, %v971_v4  ;;  %v916_v56 = vpop.permute.xlu0 %915 }
 0x15c   :  { %v1600_v40 = vand.u32 4294901760, %v1599_v45  ;;  %4700 = vrcp.f32 %v1150_v38  ;;  %v6868_v39 = vpack.c.bf16 %v1635_v52, %v1628_v13  ;;  %v1649_v57 = vand.u32 4294901760, %v1648_v61 }
 0x15d   :  { %9138 = vst [vmem:[#allocation27_spill] sm:$0xff] %v6861_v58  ;;  %v1642_v32 = vand.u32 4294901760, %v1641_v62  ;;  %v1137_v58 = vsub.f32 %v6835_v53, %v6520_v17  ;;  %v1155_v11 = vadd.f32 1.0000001, %v1139_v0  ;;  %v1151_v36 = vadd.f32 1.0000001, %v1135_v22  ;;  %v1056_v45 = vpop.permute.xlu1 %1055 }
 0x15e   :  { %v6872_v23 = vmul.f32 %v1104_v9, %v1104_v9  ;;  %v9139_v2 = vsel %vm6547_vm8, %v6556_v21, -1e+30  ;;  %v1162_v42 = vadd.f32 1.0000001, %v1146_v41  ;;  %v1607_v38 = vand.u32 4294901760, %v1606_v25 }
 0x15f   :  { %3002 = vmax.xlane.f32.xlu0 %v9139_v2  ;;  %v6878_v4 = vpack.c.bf16 %v1649_v57, %v1642_v32  ;;  %v9140_v13 = vand.u32 4294901760, %v6200_v47  ;;  %4702 = vrcp.f32 %v1151_v36  ;;  %v1019_v22 = vadd.f32 %v1003_v54, %v6738_v37  ;;  %v928_v52 = vpop.permute.xlu0 %927 }
 0x160   :  { %v1136_v9 = vsub.f32 %v6872_v23, %v6478_v14  ;;  %v972_v0 = vsub.f32 %v9137_v18, %v916_v56  ;;  %v1612_v41 = vand.u32 4294901760, %v6701_v19  ;;  %v1153_v37 = vadd.f32 1.0000001, %v1137_v58 }
 0x161   :  { %v6883_v61 = vsub.f32 %v6200_v47, %v9140_v13  ;;  %v9141_v47 = vand.u32 4294901760, %v6222_v30  ;;  %4704 = vrcp.f32 %v1155_v11  ;;  %v896_v62 = vsub.f32 %v9063_v3, %v6718_v51  ;;  %v9143_v13 = vld [vmem:[#allocation23_spill] sm:$0xff]  ;;  %v908_v11 = vpop.permute.xlu1 %907 }
 0x162   :  { %v1152_v54 = vadd.f32 1.0000001, %v1136_v9  ;;  %4706 = vrcp.f32 %v1162_v42  ;;  %v6902_v56 = vpack.c.bf16 %v1607_v38, %v1600_v40  ;;  %v1619_v36 = vand.u32 4294901760, %v6736_v24 }
 0x163   :  { %v1654_v32 = vand.u32 4294901760, %v6883_v61  ;;  %v6897_v25 = vsub.f32 %v6222_v30, %v9141_v47  ;;  %2836 = vmax.xlane.f32.xlu0 %v6710_v63  ;;  %v1215_v57 = vmul.f32 %v1019_v22, %v9143_v13  ;;  %v1004_v30 = vmul.f32 %v972_v0, %v972_v0  ;;  %v932_v63 = vpop.permute.xlu0 %931 }
 0x164   :  { %4708 = vrcp.f32 %v1152_v54  ;;  %v1106_v58 = vsub.f32 %v9107_v60, %v1056_v45  ;;  %v1110_v51 = vsub.f32 %v9107_v60, %v6752_v20  ;;  %v970_v9 = vsub.f32 %v9137_v18, %v908_v11 }
 0x165   :  { %9142 = vst [vmem:[#allocation93_spill] sm:$0xff] %v6897_v25  ;;  %v1661_v2 = vand.u32 4294901760, %v6897_v25  ;;  %v6912_v40 = vsub.f32 %v6701_v19, %v1612_v41  ;;  %4710 = vrcp.f32 %v1153_v37  ;;  %v6916_v38 = vmul.f32 %v896_v62, %v896_v62 }
 0x166   :  { %v975_v22 = vsub.f32 %v9137_v18, %v928_v52  ;;  %v9145_v45 = vsel %vm6547_vm8, %v6640_v8, -1e+30  ;;  %v1655_v20 = vsub.f32 %v6883_v61, %v1654_v32  ;;  %v4701_v0 = vpop.eup %4700  ;;  %v1002_v47 = vmul.f32 %v970_v9, %v970_v9 }
 0x167   :  { %v6914_v42 = vpack.c.bf16 %v1661_v2, %v1654_v32  ;;  %3004 = vmax.xlane.f32.xlu0 %v9145_v45  ;;  %v6924_v54 = vpack.c.bf16 %v1619_v36, %v1612_v41  ;;  %v6927_v13 = vsub.f32 %v6736_v24, %v1619_v36  ;;  %v1662_v37 = vsub.f32 %v6897_v25, %v1661_v2  ;;  %v6937_v45 = vpop.permute.xlu0 %943  ;;  %v1064_v41 = vpop.permute.xlu1 %1063 }
 0x168   :  { %v1231_v62 = vmul.f32 %v6326_v29, %v1215_v57  ;;  %v1020_v52 = vadd.f32 %v1004_v30, %v6778_v33  ;;  %v6932_v11 = vmul.f32 %v1106_v58, %v1106_v58  ;;  %v1656_v19 = vand.u32 4294901760, %v1655_v20 }
 0x169   :  { %9144 = vst [vmem:[#allocation23_spill] sm:$0xff] %v6914_v42  ;;  %v6934_v42 = vmul.f32 %v1110_v51, %v1110_v51  ;;  %v1018_v32 = vadd.f32 %v1002_v47, %v6516_v48  ;;  %v1663_v36 = vand.u32 4294901760, %v1662_v37  ;;  %v4703_v24 = vpop.eup %4702  ;;  %v1182_v2 = vmul.f32 %v4701_v0, %v6742_v35 }
 0x16a   :  { %v898_v29 = vsub.f32 %v9063_v3, %v6781_v7  ;;  %v1007_v33 = vmul.f32 %v975_v22, %v975_v22  ;;  %v976_v57 = vsub.f32 %v9137_v18, %v932_v63  ;;  %v1183_v30 = vmul.f32 %v4703_v24, %v6855_v15 }
 0x16b   :  { %2838 = vmax.xlane.f32.xlu0 %v6747_v55  ;;  %v1214_v48 = vmul.f32 %v1018_v32, %v6118_v16  ;;  %v1108_v58 = vsub.f32 %v9107_v60, %v1064_v41  ;;  %v6948_v51 = vpack.c.bf16 %v1663_v36, %v1656_v19  ;;  %v4705_v20 = vpop.eup %4704  ;;  %v9147_v47 = vsub.f32 1.0, %v6406_v49  ;;  %v6960_v19 = vpop.permute.xlu0 %947 }
 0x16c   :  { %v1216_v37 = vmul.f32 %v1020_v52, %v6184_v10  ;;  %v1138_v7 = vsub.f32 %v6932_v11, %v6420_v27  ;;  %v4707_v55 = vpop.eup %4706  ;;  %v1263_v24 = vmul.f32 %v1183_v30, %v6855_v15  ;;  %v1068_v32 = vpop.permute.xlu1 %1067  ;;  %v9148_v49 = vand.u32 4294901760, %v6251_v43 }
 0x16d   :  { %9146 = vst [vmem:[#allocation94_spill] sm:$0xff] %v6948_v51  ;;  %v1247_v0 = vadd.f32 %v1231_v62, %v9147_v47  ;;  %v1230_v16 = vmul.f32 %v6356_v12, %v1214_v48  ;;  %v6958_v22 = vmul.f32 %v1108_v58, %v1108_v58  ;;  %v1262_v52 = vmul.f32 %v1182_v2, %v6742_v35  ;;  %v9150_v48 = vld [vmem:[#allocation52_spill] sm:$0xff]  ;;  %v9152_v2 = vld [vmem:[#allocation42_spill] sm:$0xff] }
 0x16e   :  { %v6965_v62 = vsub.f32 %v6251_v43, %v9148_v49  ;;  %v4709_v10 = vpop.eup %4708  ;;  %v998_v41 = vmul.f32 %v898_v29, %v898_v29  ;;  %v1023_v36 = vadd.f32 %v1007_v33, %v6626_v46  ;;  %v1008_v47 = vmul.f32 %v976_v57, %v976_v57 }
 0x16f   :  { %v9149_v12 = vsel %vm6547_vm8, %v6693_v6, -1e+30  ;;  %v1184_v15 = vmul.f32 %v4709_v10, %v6872_v23  ;;  %v1140_v30 = vsub.f32 %v6958_v22, %v6448_v1  ;;  %v9151_v43 = vsub.f32 1.0, %v9150_v48  ;;  %v4711_v63 = vpop.eup %4710  ;;  %v956_v9 = vpop.permute.xlu0 %955  ;;  %v9153_v48 = vld [vmem:[#allocation20_spill] sm:$0xff] }
 0x170   :  { %3006 = vmax.xlane.f32.xlu0 %v9149_v12  ;;  %v1279_v49 = vadd.f32 %v1263_v24, %v1247_v0  ;;  %v1187_v35 = vmul.f32 %v4705_v20, %v6822_v5  ;;  %v1232_v46 = vmul.f32 %v9152_v2, %v1216_v37  ;;  %v1154_v29 = vadd.f32 1.0000001, %v1138_v7  ;;  %v920_v24 = vpop.permute.xlu1 %919  ;;  %v9154_v37 = vld [vmem:[#allocation84_spill] sm:$0xff] }
 0x171   :  { %v1246_v58 = vadd.f32 %v1230_v16, %v9151_v43  ;;  %v1109_v33 = vsub.f32 %v9107_v60, %v1068_v32  ;;  %v1194_v57 = vmul.f32 %v4707_v55, %v6837_v28  ;;  %v1156_v12 = vadd.f32 1.0000001, %v1140_v30 }
 0x172   :  { %v6982_v51 = vand.u32 4294901760, %v1279_v49  ;;  %v1264_v25 = vmul.f32 %v1184_v15, %v6872_v23  ;;  %v1219_v16 = vmul.f32 %v1023_v36, %v9153_v48  ;;  %v1024_v0 = vadd.f32 %v1008_v47, %v6803_v50  ;;  %v9156_v47 = vld [vmem:[#allocation59_spill] sm:$0xff] }
 0x173   :  { %v1278_v10 = vadd.f32 %v1262_v52, %v1246_v58  ;;  %v982_v20 = vsub.f32 %v9137_v18, %v956_v9  ;;  %4712 = vrcp.f32 %v1156_v12  ;;  %v973_v7 = vsub.f32 %v9137_v18, %v920_v24  ;;  %2828 = vmax.xlane.f32.xlu1 %v9156_v47 }
 0x174   :  { %2840 = vmax.xlane.f32.xlu0 %v9154_v37  ;;  %v6993_v32 = vsub.f32 %v1279_v49, %v6982_v51  ;;  %v1185_v52 = vmul.f32 %v4711_v63, %v6835_v53  ;;  %v1267_v23 = vmul.f32 %v1187_v35, %v6822_v5  ;;  %v6997_v36 = vmul.f32 %v1109_v33, %v1109_v33  ;;  %v9159_v49 = vld [vmem:[#allocation56_spill] sm:$0xff]  ;;  %v9160_v63 = vld [vmem:[#allocation26_spill] sm:$0xff]  ;;  %v9161_v35 = vld [vmem:[#allocation79_spill] sm:$0xff] }
 0x175   :  { %v6990_v55 = vand.u32 4294901760, %v1278_v10  ;;  %v1014_v50 = vmul.f32 %v982_v20, %v982_v20  ;;  %v9157_v9 = vsub.f32 1.0, %v6478_v14  ;;  %v1005_v30 = vmul.f32 %v973_v7, %v973_v7  ;;  %v1076_v20 = vpop.permute.xlu1 %1075  ;;  %v9164_v37 = vld [vmem:[#allocation75_spill] sm:$0xff] }
 0x176   :  { %9155 = vst [vmem:[#allocation52_spill] sm:$0xff] %v6993_v32  ;;  %v1419_v58 = vand.u32 4294901760, %v6993_v32  ;;  %4714 = vrcp.f32 %v1154_v29  ;;  %v1235_v2 = vmul.f32 %v9159_v49, %v1219_v16  ;;  %v1220_v12 = vmul.f32 %v1024_v0, %v9160_v63  ;;  %v9165_v16 = vld [vmem:[#allocation25_spill] sm:$0xff]  ;;  %v9166_v0 = vld [vmem:[#allocation67_spill] sm:$0xff] }
 0x177   :  { %v1248_v15 = vadd.f32 %v1232_v46, %v9157_v9  ;;  %v7003_v43 = vsub.f32 %v1278_v10, %v6990_v55  ;;  %v1030_v5 = vadd.f32 %v1014_v50, %v998_v41  ;;  %v9162_v33 = vsel %vm6547_vm8, %v9161_v35, -1e+30  ;;  %v9163_v46 = vld [vmem:[#allocation62_spill] sm:$0xff]  ;;  %2830 = vmax.xlane.f32.xlu1 %v9166_v0  ;;  %v9169_v49 = vld [vmem:[#allocation53_spill] sm:$0xff] }
 0x178   :  { %3008 = vmax.xlane.f32.xlu0 %v9162_v33  ;;  %v1274_v14 = vmul.f32 %v1194_v57, %v6837_v28  ;;  %v1021_v48 = vadd.f32 %v1005_v30, %v9163_v46  ;;  %v1141_v29 = vsub.f32 %v6997_v36, %v9164_v37  ;;  %v1111_v41 = vsub.f32 %v9107_v60, %v1076_v20  ;;  %v9167_v57 = vld [vmem:[#allocation15_spill] sm:$0xff]  ;;  %v9171_v20 = vld [vmem:[#allocation49_spill] sm:$0xff] }
 0x179   :  { %9158 = vst [vmem:[#allocation42_spill] sm:$0xff] %v7003_v43  ;;  %v1409_v10 = vand.u32 4294901760, %v7003_v43  ;;  %v1280_v24 = vadd.f32 %v1264_v25, %v1248_v15  ;;  %v1226_v7 = vmul.f32 %v1030_v5, %v9165_v16  ;;  %v1420_v50 = vsub.f32 %v6993_v32, %v1419_v58  ;;  %v9170_v5 = vld [vmem:[#allocation12_spill] sm:$0xff]  ;;  %v9210_v32 = vld [vmem:[#allocation10_spill] sm:$0xff] }
 0x17a   :  { %v979_v28 = vsub.f32 %v9137_v18, %v6937_v45  ;;  %v1217_v47 = vmul.f32 %v1021_v48, %v9167_v57  ;;  %v9168_v15 = vsub.f32 1.0, %v6581_v31  ;;  %v1236_v63 = vmul.f32 %v9169_v49, %v1220_v12 }
 0x17b   :  { %4217 = vmatprep.mubr.f32.mxu0 %v1409_v10  ;;  %v7024_v9 = vand.u32 4294901760, %v1280_v24  ;;  %v1410_v25 = vsub.f32 %v7003_v43, %v1409_v10  ;;  %v1242_v33 = vmul.f32 %v9170_v5, %v1226_v7  ;;  %v7031_v46 = vmul.f32 %v1111_v41, %v1111_v41  ;;  %v9173_v10 = vld [vmem:[#allocation64_spill] sm:$0xff]  ;;  %v9176_v41 = vld [vmem:[#allocation77_spill] sm:$0xff] }
 0x17c   :  { %v1251_v30 = vadd.f32 %v1235_v2, %v9168_v15  ;;  %4218 = vmatmul.mubr.f32.vlgmr.msra.gmra.mrb[0].mxu0 %v1419_v58  ;;  %v980_v45 = vsub.f32 %v9137_v18, %v6960_v19  ;;  %v1233_v48 = vmul.f32 %v9171_v20, %v1217_v47  ;;  %2842 = vmax.xlane.f32.xlu0 %v6819_v34  ;;  %v1157_v31 = vadd.f32 1.0000001, %v1141_v29  ;;  %v9174_v2 = vld [vmem:[#allocation51_spill] sm:$0xff]  ;;  %v9177_v19 = vld [vmem:[#allocation38_spill] sm:$0xff]  ;;  %v924_v47 = vpop.permute.xlu1 %923  ;;  %v9179_v15 = vld [vmem:[#allocation88_spill] sm:$0xff] }
 0x17d   :  { %v7037_v16 = vsub.f32 %v1280_v24, %v7024_v9  ;;  %v1411_v0 = vand.u32 4294901760, %v1410_v25  ;;  %4484 = vmatpush3.bf16.msra.mxu0 %v9173_v10  ;;  %v9175_v12 = vsub.f32 1.0, %v9174_v2  ;;  %v1143_v58 = vsub.f32 %v7031_v46, %v9176_v41  ;;  %v4713_v25 = vpop.eup %4712 }
 0x17e   :  { %v9178_v57 = vsel %vm6547_vm8, %v9177_v19, -1e+30  ;;  %v1421_v24 = vand.u32 4294901760, %v1420_v50  ;;  %4486 = vmatprep.subr.bf16.mxu0 %v9179_v15  ;;  %v1265_v49 = vmul.f32 %v1185_v52, %v6835_v53  ;;  %v9180_v34 = vsub.f32 1.0, %v6520_v17 }
 0x17f   :  { %9172 = vst [vmem:[#allocation20_spill] sm:$0xff] %v7037_v16  ;;  %v1258_v7 = vadd.f32 %v1242_v33, %v9175_v12  ;;  %2996 = vmax.xlane.f32.xlu1 %v9178_v57  ;;  %v1429_v5 = vand.u32 4294901760, %v7037_v16  ;;  %v974_v33 = vsub.f32 %v9137_v18, %v924_v47  ;;  %4049 = vmatprep.mubr.f32.mxu1 %v1411_v0  ;;  %v1159_v10 = vadd.f32 1.0000001, %v1143_v58  ;;  %v9183_v58 = vld [vmem:[#allocation70_spill] sm:$0xff] }
 0x180   :  { %v1249_v29 = vadd.f32 %v1233_v48, %v9180_v34  ;;  %v1188_v20 = vmul.f32 %v4713_v25, %v6958_v22  ;;  %4050 = vmatmul.mubr.f32.vlgmr.msra.gmra.mrb[0].mxu1 %v1421_v24  ;;  %v1283_v2 = vadd.f32 %v1267_v23, %v1251_v30  ;;  %v1011_v50 = vmul.f32 %v979_v28, %v979_v28  ;;  %v4715_v17 = vpop.eup %4714  ;;  %v9182_v25 = vld [vmem:[#allocation72_spill] sm:$0xff]  ;;  %v9189_v34 = vld [vmem:[#allocation91_spill] sm:$0xff] }
 0x181   :  { %v7056_v12 = vadd.f32 %v1274_v14, %v1258_v7  ;;  %4220 = vmatprep.mubr.f32.mxu0 %v1429_v5  ;;  %v1006_v19 = vmul.f32 %v974_v33, %v974_v33  ;;  %v1430_v53 = vsub.f32 %v7037_v16, %v1429_v5  ;;  %v9181_v48 = vsub.f32 1.0, %v6448_v1  ;;  %4388 = vmatpush3.bf16.msra.mxu1 %v9183_v58  ;;  %v7067_v23 = vld [vmem:[%s8631_s3 + $0x48] sm:$0xff]  ;;  %v9184_v14 = vld [vmem:[#allocation86_spill] sm:$0xff]  ;;  %v1080_v7 = vpop.permute.xlu1 %1079  ;;  %v9186_v1 = vld [vmem:[#allocation89_spill] sm:$0xff] }
 0x182   :  { %v1281_v52 = vadd.f32 %v1265_v49, %v1249_v29  ;;  %v1268_v47 = vmul.f32 %v1188_v20, %v6958_v22  ;;  %v1012_v0 = vmul.f32 %v980_v45, %v980_v45  ;;  %4716 = vrcp.f32 %v1157_v31  ;;  %4488 = vmatpush3.bf16.msra.mxu0 %v9179_v15  ;;  %4390 = vmatprep.subr.bf16.mxu1 %v9186_v1  ;;  %v9191_v15 = vld [vmem:[#allocation57_spill] sm:$0xff]  ;;  %v3644_v22 = vld [vmem:[%s8632_s4 + $0x18] sm:$0xff] }
 0x183   :  { %v1252_v57 = vadd.f32 %v1236_v63, %v9181_v48  ;;  %2832 = vmax.xlane.f32.xlu1 %v9182_v25  ;;  %v1022_v28 = vadd.f32 %v1006_v19, %v9184_v14  ;;  %v1431_v30 = vand.u32 4294901760, %v1430_v53  ;;  %v2819_v63 = vsel %vm2806_vm0, %v7067_v23, -1e+30  ;;  %4490 = vmatprep.subr.bf16.mxu0 %v9189_v34  ;;  %v9192_v20 = vld [vmem:[#allocation17_spill] sm:$0xff]  ;;  %v9195_v25 = vld [vmem:[#allocation40_spill] sm:$0xff] }
 0x184   :  { %v7070_v24 = vand.u32 4294901760, %v1281_v52  ;;  %4718 = vrcp.f32 %v1159_v10  ;;  %v1112_v31 = vsub.f32 %v9107_v60, %v1080_v7  ;;  %v7078_v49 = vand.u32 4294901760, %v1283_v2  ;;  %v9194_v53 = vld [vmem:[#allocation81_spill] sm:$0xff] }
 0x185   :  { %v1284_v45 = vadd.f32 %v1268_v47, %v1252_v57  ;;  %v9190_v29 = vsel %vm6547_vm8, %v6759_v59, -1e+30  ;;  %v1142_v5 = vsub.f32 %v6934_v42, %v9191_v15  ;;  %v1186_v33 = vmul.f32 %v4715_v17, %v6932_v11  ;;  %4052 = vmatprep.mubr.f32.mxu1 %v1431_v30  ;;  %4392 = vmatpush3.bf16.msra.mxu1 %v9186_v1  ;;  %v9209_v17 = vld [vmem:[#allocation28_spill] sm:$0xff] }
 0x186   :  { %9185 = vst [vmem:[#allocation84_spill] sm:$0xff] %v7070_v24  ;;  %9188 = vst [vmem:[#allocation59_spill] sm:$0xff] %v7078_v49  ;;  %3010 = vmax.xlane.f32.xlu0 %v9190_v29  ;;  %v1218_v19 = vmul.f32 %v1022_v28, %v9192_v20  ;;  %v7090_v10 = vsub.f32 %v1281_v52, %v7070_v24  ;;  %v1027_v48 = vadd.f32 %v1011_v50, %v9194_v53  ;;  %v9199_v52 = vld [vmem:[#allocation45_spill] sm:$0xff]  ;;  %v1084_v50 = vpop.permute.xlu1 %1083  ;;  %v9202_v20 = vld [vmem:[#allocation68_spill] sm:$0xff] }
 0x187   :  { %v1028_v57 = vadd.f32 %v1012_v0, %v6916_v38  ;;  %v7094_v47 = vmul.f32 %v1112_v31, %v1112_v31  ;;  %v9196_v58 = vsel %vm6547_vm8, %v9195_v25, -1e+30  ;;  %v7104_v28 = vand.u32 4294901760, %v1284_v45  ;;  %4492 = vmatpush3.bf16.msra.mxu0 %v9189_v34  ;;  %4394 = vmatprep.subr.bf16.mxu1 %v6902_v56  ;;  %v9208_v29 = vld [vmem:[#allocation74_spill] sm:$0xff] }
 0x188   :  { %9193 = vst [vmem:[#allocation56_spill] sm:$0xff] %v7090_v10  ;;  %3000 = vmax.xlane.f32.xlu1 %v9196_v58  ;;  %v1234_v30 = vmul.f32 %v9199_v52, %v1218_v19  ;;  %v1439_v38 = vand.u32 4294901760, %v7090_v10  ;;  %v9200_v0 = vand.u32 4294901760, %v6912_v40  ;;  %v9201_v7 = vand.u32 4294901760, %v6927_v13  ;;  %4494 = vmatprep.subr.bf16.mxu0 %v6924_v54  ;;  %v9204_v19 = vld [vmem:[#allocation9_spill] sm:$0xff] }
 0x189   :  { %9198 = vst [vmem:[#allocation26_spill] sm:$0xff] %v7104_v28  ;;  %v1144_v1 = vsub.f32 %v7094_v47, %v9202_v20  ;;  %v7118_v53 = vsub.f32 %v1283_v2, %v7078_v49  ;;  %v9205_v34 = vand.u32 4294901760, %v9204_v19  ;;  %v1266_v40 = vmul.f32 %v1186_v33, %v6932_v11  ;;  %v9211_v11 = vld [vmem:[#allocation43_spill] sm:$0xff]  ;;  %4396 = vmatpush3.bf16.msra.mxu1 %v6902_v56  ;;  %v7151_v56 = vld [vmem:[%s8631_s3 + $0x50] sm:$0xff] }
 0x18a   :  { %v4397_v31 = vpack.c.bf16 %v9201_v7, %v9200_v0  ;;  %2844 = vmax.xlane.f32.xlu0 %v2819_v63  ;;  %v9206_v13 = vsub.f32 1.0, %v6420_v27  ;;  %4221 = vmatmul.mubr.f32.gmra.mrb[2].mxu0 %v1439_v38  ;;  %v1440_v0 = vsub.f32 %v7090_v10, %v1439_v38  ;;  %v9207_v7 = vld [vmem:[#allocation87_spill] sm:$0xff]  ;;  %v894_v63 = vsub.f32 %v9063_v3, %v9208_v29 }
 0x18b   :  { %9203 = vst [vmem:[#allocation79_spill] sm:$0xff] %v7118_v53  ;;  %v7124_v58 = vsub.f32 %v9204_v19, %v9205_v34  ;;  %v2988_v2 = vsel %vm6547_vm8, %v9207_v7, -1e+30  ;;  %v1223_v16 = vmul.f32 %v1027_v48, %v9209_v17  ;;  %v1224_v19 = vmul.f32 %v1028_v57, %v9210_v32  ;;  %4496 = vmatpush3.bf16.msra.mxu0 %v6924_v54  ;;  %v936_v32 = vpop.permute.xlu1 %935  ;;  %v9214_v17 = vld [vmem:[#allocation92_spill] sm:$0xff] }
 0x18c   :  { %v1250_v52 = vadd.f32 %v1234_v30, %v9206_v13  ;;  %v1160_v34 = vadd.f32 1.0000001, %v1144_v1  ;;  %v9212_v27 = vsel %vm6569_vm9, %v9211_v11, -1e+30  ;;  %v1158_v33 = vadd.f32 1.0000001, %v1142_v5  ;;  %4398 = vmatprep.subr.bf16.mxu1 %v4397_v31  ;;  %v4717_v48 = vpop.eup %4716  ;;  %4498 = vmatprep.subr.bf16.mxu0 %v9214_v17 }
 0x18d   :  { %3083 = vmax.xlane.f32.xlu1 %v9212_v27  ;;  %v1441_v30 = vand.u32 4294901760, %v1440_v0  ;;  %v7143_v13 = vsub.f32 %v1284_v45, %v7104_v28  ;;  %v1459_v57 = vand.u32 4294901760, %v7118_v53  ;;  %v1668_v5 = vand.u32 4294901760, %v6965_v62  ;;  %v9217_v11 = vld [vmem:[#allocation60_spill] sm:$0xff]  ;;  %4400 = vmatpush3.bf16.msra.mxu1 %v4397_v31 }
 0x18e   :  { %v1282_v38 = vadd.f32 %v1266_v40, %v1250_v52  ;;  %4720 = vrcp.f32 %v1160_v34  ;;  %3012 = vmax.xlane.f32.xlu0 %v2988_v2  ;;  %v1675_v45 = vand.u32 4294901760, %v7124_v58  ;;  %v1113_v54 = vsub.f32 %v9107_v60, %v1084_v50  ;;  %v4719_v52 = vpop.eup %4718  ;;  %v9216_v34 = vld [vmem:[#allocation73_spill] sm:$0xff]  ;;  %4402 = vmatprep.subr.bf16.mxu1 %v6868_v39 }
 0x18f   :  { %9213 = vst [vmem:[#allocation62_spill] sm:$0xff] %v7143_v13  ;;  %v977_v29 = vsub.f32 %v9137_v18, %v936_v32  ;;  %4053 = vmatmul.mubr.f32.gmra.mrb[2].mxu1 %v1441_v30  ;;  %v2820_v40 = vsel %vm2806_vm0, %v7151_v56, -1e+30  ;;  %v7162_v0 = vmul.f32 %v894_v63, %v894_v63  ;;  %v1239_v2 = vmul.f32 %v9216_v34, %v1223_v16  ;;  %v9220_v34 = vld [vmem:[#allocation27_spill] sm:$0xff]  ;;  %v1092_v28 = vpop.permute.xlu1 %1091 }
 0x190   :  { %v7157_v1 = vand.u32 4294901760, %v1282_v38  ;;  %v1240_v27 = vmul.f32 %v9217_v11, %v1224_v19  ;;  %v9219_v50 = vsel %vm6433_vm7, %v6640_v8, -1e+30  ;;  %v2900_v30 = vsel %vm6433_vm7, %v6693_v6, -1e+30  ;;  %4500 = vmatpush3.bf16.msra.mxu0 %v9214_v17  ;;  %v9221_v11 = vld [vmem:[#allocation54_spill] sm:$0xff] }
 0x191   :  { %2919 = vmax.xlane.f32.xlu1 %v9219_v50  ;;  %v1189_v32 = vmul.f32 %v4717_v48, %v6997_v36  ;;  %v1009_v43 = vmul.f32 %v977_v29, %v977_v29  ;;  %v1469_v16 = vand.u32 4294901760, %v7143_v13  ;;  %4722 = vrcp.f32 %v1158_v33  ;;  %4502 = vmatprep.subr.bf16.mxu0 %v9220_v34 }
 0x192   :  { %9215 = vst [vmem:[#allocation75_spill] sm:$0xff] %v7157_v1  ;;  %v7175_v63 = vsub.f32 %v1282_v38, %v7157_v1  ;;  %v1460_v19 = vsub.f32 %v7118_v53, %v1459_v57  ;;  %2846 = vmax.xlane.f32.xlu0 %v2820_v40  ;;  %v1669_v31 = vsub.f32 %v6965_v62, %v1668_v5  ;;  %v9222_v53 = vsel %vm6569_vm9, %v9195_v25, -1e+30  ;;  %v9226_v1 = vld [vmem:[#allocation34_spill] sm:$0xff] }
 0x193   :  { %v1676_v48 = vsub.f32 %v7124_v58, %v1675_v45  ;;  %v1191_v29 = vmul.f32 %v4719_v52, %v7031_v46  ;;  %v7185_v38 = vmul.f32 %v1113_v54, %v1113_v54  ;;  %v1025_v50 = vadd.f32 %v1009_v43, %v9221_v11  ;;  %4404 = vmatpush3.bf16.msra.mxu1 %v6868_v39  ;;  %v9223_v54 = vld [vmem:[#allocation82_spill] sm:$0xff]  ;;  %v9224_v52 = vld [vmem:[#allocation85_spill] sm:$0xff] }
 0x194   :  { %v1449_v17 = vand.u32 4294901760, %v7175_v63  ;;  %v1115_v33 = vsub.f32 %v9107_v60, %v1092_v28  ;;  %v3068_v40 = vsel %vm6569_vm9, %v6556_v21, -1e+30  ;;  %v7200_v49 = vpack.c.bf16 %v9224_v52, %v9223_v54  ;;  %v9225_v43 = vld [vmem:[#allocation90_spill] sm:$0xff]  ;;  %4504 = vmatpush3.bf16.msra.mxu0 %v9220_v34  ;;  %4406 = vmatprep.subr.bf16.mxu1 %v6878_v4 }
 0x195   :  { %3085 = vmax.xlane.f32.xlu1 %v9222_v53  ;;  %v7204_v11 = vpack.c.bf16 %v6842_v26, %v9225_v43  ;;  %v1207_v28 = vsub.f32 1.0, %v9176_v41  ;;  %v1221_v24 = vmul.f32 %v1025_v50, %v9226_v1  ;;  %v1470_v53 = vsub.f32 %v7143_v13, %v1469_v16  ;;  %v9227_v26 = vld [vmem:[#allocation93_spill] sm:$0xff]  ;;  %v9228_v41 = vld [vmem:[#allocation83_spill] sm:$0xff] }
 0x196   :  { %4223 = vmatprep.mubr.f32.mxu0 %v1449_v17  ;;  %v1450_v25 = vsub.f32 %v7175_v63, %v1449_v17  ;;  %v1269_v21 = vmul.f32 %v1189_v32, %v6997_v36  ;;  %v1670_v39 = vand.u32 4294901760, %v1669_v31  ;;  %v1677_v54 = vand.u32 4294901760, %v1676_v48  ;;  %v9229_v50 = vld [vmem:[#allocation69_spill] sm:$0xff]  ;;  %v9230_v13 = vld [vmem:[#allocation23_spill] sm:$0xff] }
 0x197   :  { %4224 = vmatmul.mubr.f32.gmra.mrb[4].mxu0 %v1459_v57  ;;  %v7215_v52 = vpack.c.bf16 %v9227_v26, %v6883_v61  ;;  %v1145_v1 = vsub.f32 %v7185_v38, %v9228_v41  ;;  %v1237_v17 = vmul.f32 %v9229_v50, %v1221_v24  ;;  %4506 = vmatprep.subr.bf16.mxu0 %v9230_v13  ;;  %v940_v61 = vpop.permute.xlu1 %939  ;;  %v1461_v31 = vand.u32 4294901760, %v1460_v19  ;;  %v9233_v19 = vld [vmem:[#allocation94_spill] sm:$0xff] }
 0x198   :  { %4226 = vmatprep.mubr.f32.mxu0 %v1469_v16  ;;  %v1451_v43 = vand.u32 4294901760, %v1450_v25  ;;  %v7223_v36 = vpack.c.bf16 %v7124_v58, %v6965_v62  ;;  %v4721_v57 = vpop.eup %4720  ;;  %v1271_v32 = vmul.f32 %v1191_v29, %v7031_v46  ;;  %v7226_v34 = vmul.f32 %v1115_v33, %v1115_v33  ;;  %4408 = vmatpush3.bf16.msra.mxu1 %v6878_v4 }
 0x199   :  { %2921 = vmax.xlane.f32.xlu1 %v2900_v30  ;;  %v4509_v48 = vpack.c.bf16 %v1675_v45, %v1668_v5  ;;  %v1192_v24 = vmul.f32 %v4721_v57, %v7094_v47  ;;  %v9231_v16 = vsub.f32 1.0, %v9164_v37  ;;  %v978_v26 = vsub.f32 %v9137_v18, %v940_v61  ;;  %4508 = vmatpush3.bf16.msra.mxu0 %v9230_v13  ;;  %v7241_v45 = vpop.permute.xlu0 %959 }
 0x19a   :  { %4055 = vmatprep.mubr.f32.mxu1 %v1451_v43  ;;  %v1471_v62 = vand.u32 4294901760, %v1470_v53  ;;  %v1255_v46 = vadd.f32 %v1239_v2, %v1207_v28  ;;  %v9232_v58 = vsub.f32 1.0, %v9202_v20  ;;  %4410 = vmatprep.subr.bf16.mxu1 %v9233_v19  ;;  %v2989_v4 = vsel %vm6547_vm8, %v7067_v23, -1e+30  ;;  %v9235_v53 = vld [vmem:[#allocation41_spill] sm:$0xff] }
 0x19b   :  { %v1253_v25 = vadd.f32 %v1237_v17, %v9231_v16  ;;  %4056 = vmatmul.mubr.f32.gmra.mrb[4].mxu1 %v1461_v31  ;;  %v4413_v5 = vpack.c.bf16 %v1677_v54, %v1670_v39  ;;  %v1272_v37 = vmul.f32 %v1192_v24, %v7094_v47  ;;  %v1161_v29 = vadd.f32 1.0000001, %v1145_v1  ;;  %v4723_v2 = vpop.eup %4722  ;;  %v9236_v54 = vld [vmem:[#allocation63_spill] sm:$0xff]  ;;  %4510 = vmatprep.subr.bf16.mxu0 %v4509_v48  ;;  %v9238_v24 = vld [vmem:[#allocation44_spill] sm:$0xff] }
 0x19c   :  { %v1256_v30 = vadd.f32 %v1240_v27, %v9232_v58  ;;  %v1010_v33 = vmul.f32 %v978_v26, %v978_v26  ;;  %4058 = vmatprep.mubr.f32.mxu1 %v1471_v62  ;;  %v1287_v28 = vadd.f32 %v1271_v32, %v1255_v46  ;;  %v2901_v20 = vsel %vm6433_vm7, %v9161_v35, -1e+30  ;;  %4412 = vmatpush3.bf16.msra.mxu1 %v9233_v19  ;;  %v9234_v27 = vld [vmem:[#allocation14_spill] sm:$0xff]  ;;  %v9237_v32 = vld [vmem:[#allocation11_spill] sm:$0xff] }
 0x19d   :  { %v1285_v13 = vadd.f32 %v1269_v21, %v1253_v25  ;;  %3087 = vmax.xlane.f32.xlu1 %v3068_v40  ;;  %v7249_v39 = vpack.c.bf16 %v9235_v53, %v9234_v27  ;;  %v1147_v1 = vsub.f32 %v7226_v34, %v9236_v54  ;;  %v1096_v21 = vpop.permute.xlu1 %1095  ;;  %v7259_v40 = vld [vmem:[%s8631_s3 + $0x58] sm:$0xff]  ;;  %3014 = vmax.xlane.f32.xlu0 %v2989_v4  ;;  %4724 = vrcp.f32 %v1161_v29  ;;  %v964_v46 = vpop.permute.xlu0 %963  ;;  %v9241_v27 = vld [vmem:[#allocation35_spill] sm:$0xff] }
 0x19e   :  { %v1288_v47 = vadd.f32 %v1272_v37, %v1256_v30  ;;  %v1026_v50 = vadd.f32 %v1010_v33, %v7162_v0  ;;  %v1116_v43 = vsub.f32 %v9107_v60, %v1096_v21  ;;  %4512 = vmatpush3.bf16.msra.mxu0 %v4509_v48  ;;  %4414 = vmatprep.subr.bf16.mxu1 %v4413_v5  ;;  %v2821_v57 = vsel %vm2806_vm0, %v7259_v40, -1e+30  ;;  %v9239_v30 = vld [vmem:[#allocation39_spill] sm:$0xff] }
 0x19f   :  { %v7254_v17 = vand.u32 4294901760, %v1285_v13  ;;  %v1190_v0 = vmul.f32 %v4723_v2, %v6934_v42  ;;  %4514 = vmatprep.subr.bf16.mxu0 %v9238_v24  ;;  %v1206_v16 = vsub.f32 1.0, %v9191_v15  ;;  %v7272_v25 = vand.u32 4294901760, %v1287_v28  ;;  %v9240_v15 = vld [vmem:[#allocation50_spill] sm:$0xff] }
 0x1a0   :  { %v1222_v61 = vmul.f32 %v1026_v50, %v9237_v32  ;;  %v7274_v48 = vmul.f32 %v1116_v43, %v1116_v43  ;;  %v3069_v26 = vsel %vm6569_vm9, %v6640_v8, -1e+30  ;;  %4416 = vmatpush3.bf16.msra.mxu1 %v4413_v5  ;;  %v7279_v62 = vand.u32 4294901760, %v1288_v47 }
 0x1a1   :  { %v7268_v31 = vsub.f32 %v1285_v13, %v7254_v17  ;;  %2923 = vmax.xlane.f32.xlu1 %v2901_v20  ;;  %v1163_v58 = vadd.f32 1.0000001, %v1147_v1  ;;  %v1100_v4 = vpop.permute.xlu1 %1099  ;;  %4418 = vmatprep.subr.bf16.mxu1 %v7249_v39  ;;  %v2990_v8 = vsel %vm6547_vm8, %v7151_v56, -1e+30  ;;  %v1270_v5 = vmul.f32 %v1190_v0, %v6934_v42 }
 0x1a2   :  { %v1238_v19 = vmul.f32 %v9239_v30, %v1222_v61  ;;  %2848 = vmax.xlane.f32.xlu0 %v2821_v57  ;;  %v1148_v29 = vsub.f32 %v7274_v48, %v9240_v15  ;;  %v1117_v33 = vsub.f32 %v9107_v60, %v1100_v4  ;;  %v2902_v20 = vsel %vm6433_vm7, %v6759_v59, -1e+30  ;;  %v7308_v59 = vld [vmem:[%s8631_s3 + $0x60] sm:$0xff]  ;;  %v9243_v57 = vld [vmem:[#allocation22_spill] sm:$0xff]  ;;  %v968_v61 = vpop.permute.xlu0 %967 }
 0x1a3   :  { %v1479_v37 = vand.u32 4294901760, %v7268_v31  ;;  %v897_v53 = vsub.f32 %v9063_v3, %v9241_v27  ;;  %v7300_v60 = vsub.f32 %v1287_v28, %v7272_v25  ;;  %4726 = vrcp.f32 %v1163_v58 }
 0x1a4   :  { %v1254_v13 = vadd.f32 %v1238_v19, %v1206_v16  ;;  %v1164_v1 = vadd.f32 1.0000001, %v1148_v29  ;;  %v7297_v50 = vmul.f32 %v1117_v33, %v1117_v33  ;;  %v7303_v43 = vsub.f32 %v1288_v47, %v7279_v62 }
 0x1a5   :  { %4227 = vmatmul.mubr.f32.gmra.mrb[6].mxu0 %v1479_v37  ;;  %v1480_v2 = vsub.f32 %v7268_v31, %v1479_v37  ;;  %3089 = vmax.xlane.f32.xlu1 %v3069_v26  ;;  %v952_v32 = vpop.permute.xlu1 %951  ;;  %v2822_v28 = vsel %vm2806_vm0, %v7308_v59, -1e+30  ;;  %v997_v26 = vmul.f32 %v897_v53, %v897_v53  ;;  %v3070_v58 = vsel %vm6569_vm9, %v6693_v6, -1e+30 }
 0x1a6   :  { %v1286_v21 = vadd.f32 %v1270_v5, %v1254_v13  ;;  %9242 = vst [vmem:[#allocation25_spill] sm:$0xff] %v7303_v43  ;;  %3016 = vmax.xlane.f32.xlu0 %v2990_v8  ;;  %v1149_v0 = vsub.f32 %v7297_v50, %v9243_v57  ;;  %v981_v16 = vsub.f32 %v9137_v18, %v952_v32  ;;  %4728 = vrcp.f32 %v1164_v1  ;;  %v7336_v53 = vpop.permute.xlu0 %2666 }
 0x1a7   :  { %v1481_v42 = vand.u32 4294901760, %v1480_v2  ;;  %v1499_v30 = vand.u32 4294901760, %v7300_v60  ;;  %v4725_v19 = vpop.eup %4724  ;;  %v1509_v33 = vand.u32 4294901760, %v7303_v43  ;;  %v983_v8 = vsub.f32 %v9137_v18, %v7241_v45  ;;  %9244 = vst [vmem:[#allocation67_spill] sm:$0xff] %v7336_v53 }
 0x1a8   :  { %v7316_v47 = vand.u32 4294901760, %v1286_v21  ;;  %v1165_v4 = vadd.f32 1.0000001, %v1149_v0  ;;  %v1013_v37 = vmul.f32 %v981_v16, %v981_v16  ;;  %v2991_v5 = vsel %vm6547_vm8, %v7259_v40, -1e+30 }
 0x1a9   :  { %4059 = vmatmul.mubr.f32.gmra.mrb[6].mxu1 %v1481_v42  ;;  %2925 = vmax.xlane.f32.xlu1 %v2902_v20  ;;  %v984_v6 = vsub.f32 %v9137_v18, %v964_v46  ;;  %v876_v2 = vpop.permute.xlu1 %875  ;;  %v2903_v27 = vsel %vm6433_vm7, %v9207_v7, -1e+30  ;;  %v1193_v1 = vmul.f32 %v4725_v19, %v7185_v38  ;;  %v1500_v42 = vsub.f32 %v7300_v60, %v1499_v30  ;;  %v9245_v46 = vld [vmem:[#allocation46_spill] sm:$0xff] }
 0x1aa   :  { %v7323_v29 = vsub.f32 %v1286_v21, %v7316_v47  ;;  %2850 = vmax.xlane.f32.xlu0 %v2822_v28  ;;  %v1029_v13 = vadd.f32 %v1013_v37, %v997_v26  ;;  %v899_v45 = vsub.f32 %v9063_v3, %v876_v2  ;;  %v7342_v21 = vand.u32 4294901760, %v7056_v12  ;;  %v7350_v28 = vld [vmem:[%s8631_s3 + $0x68] sm:$0xff] }
 0x1ab   :  { %4730 = vrcp.f32 %v1165_v4  ;;  %v1510_v7 = vsub.f32 %v7303_v43, %v1509_v33  ;;  %v1015_v16 = vmul.f32 %v983_v8, %v983_v8  ;;  %v1209_v26 = vsub.f32 1.0, %v9228_v41 }
 0x1ac   :  { %v1489_v20 = vand.u32 4294901760, %v7323_v29  ;;  %v1225_v0 = vmul.f32 %v1029_v13, %v9245_v46  ;;  %v2823_v19 = vsel %vm2806_vm0, %v7350_v28, -1e+30  ;;  %v1016_v37 = vmul.f32 %v984_v6, %v984_v6  ;;  %v9246_v13 = vld [vmem:[#allocation78_spill] sm:$0xff] }
 0x1ad   :  { %3091 = vmax.xlane.f32.xlu1 %v3070_v58  ;;  %v999_v58 = vmul.f32 %v899_v45, %v899_v45  ;;  %v4727_v4 = vpop.eup %4726  ;;  %v985_v8 = vsub.f32 %v9137_v18, %v968_v61  ;;  %v1501_v45 = vand.u32 4294901760, %v1500_v42  ;;  %v1273_v53 = vmul.f32 %v1193_v1, %v7185_v38  ;;  %v9247_v61 = vld [vmem:[#allocation30_spill] sm:$0xff] }
 0x1ae   :  { %4229 = vmatprep.mubr.f32.mxu0 %v1489_v20  ;;  %v1490_v32 = vsub.f32 %v7323_v29, %v1489_v20  ;;  %3018 = vmax.xlane.f32.xlu0 %v2991_v5  ;;  %v1241_v2 = vmul.f32 %v9246_v13, %v1225_v0  ;;  %v880_v20 = vpop.permute.xlu1 %879  ;;  %v3071_v5 = vsel %vm6569_vm9, %v9161_v35, -1e+30  ;;  %v1511_v6 = vand.u32 4294901760, %v1510_v7  ;;  %v7367_v0 = vpop.permute.xlu0 %2670  ;;  %v7383_v13 = vld [vmem:[%s8631_s3 + $0x70] sm:$0xff] }
 0x1af   :  { %4230 = vmatmul.mubr.f32.gmra.mrb[8].mxu0 %v1499_v30  ;;  %v1031_v41 = vadd.f32 %v1015_v16, %v999_v58  ;;  %v900_v30 = vsub.f32 %v9063_v3, %v880_v20  ;;  %v1195_v18 = vmul.f32 %v4727_v4, %v7226_v34  ;;  %v2992_v38 = vsel %vm6547_vm8, %v7308_v59, -1e+30 }
 0x1b0   :  { %4232 = vmatprep.mubr.f32.mxu0 %v1509_v33  ;;  %v1491_v46 = vand.u32 4294901760, %v1490_v32  ;;  %v1257_v43 = vadd.f32 %v1241_v2, %v1209_v26  ;;  %v7365_v33 = vsub.f32 %v7056_v12, %v7342_v21  ;;  %v4729_v35 = vpop.eup %4728  ;;  %v2904_v12 = vsel %vm6433_vm7, %v7067_v23, -1e+30  ;;  %v9248_v26 = vld [vmem:[#allocation58_spill] sm:$0xff] }
 0x1b1   :  { %2927 = vmax.xlane.f32.xlu1 %v2903_v27  ;;  %v1227_v32 = vmul.f32 %v1031_v41, %v9247_v61  ;;  %v1000_v16 = vmul.f32 %v900_v30, %v900_v30  ;;  %v1211_v27 = vsub.f32 1.0, %v9236_v54  ;;  %v1017_v7 = vmul.f32 %v985_v8, %v985_v8 }
 0x1b2   :  { %4061 = vmatprep.mubr.f32.mxu1 %v1491_v46  ;;  %2852 = vmax.xlane.f32.xlu0 %v2823_v19  ;;  %v884_v1 = vpop.permute.xlu1 %883  ;;  %v1289_v42 = vadd.f32 %v1273_v53, %v1257_v43  ;;  %v1196_v54 = vmul.f32 %v4729_v35, %v7274_v48  ;;  %v1529_v20 = vand.u32 4294901760, %v7365_v33  ;;  %v2824_v43 = vsel %vm2806_vm0, %v7383_v13, -1e+30 }
 0x1b3   :  { %4062 = vmatmul.mubr.f32.gmra.mrb[8].mxu1 %v1501_v45  ;;  %v1243_v58 = vmul.f32 %v9248_v26, %v1227_v32  ;;  %v1032_v19 = vadd.f32 %v1016_v37, %v1000_v16  ;;  %v901_v4 = vsub.f32 %v9063_v3, %v884_v1  ;;  %v1275_v53 = vmul.f32 %v1195_v18, %v7226_v34  ;;  %v9249_v37 = vld [vmem:[#allocation29_spill] sm:$0xff]  ;;  %v7398_v45 = vpop.permute.xlu0 %2674  ;;  %v7404_v34 = vld [vmem:[%s8631_s3 + $0x38] sm:$0xff] }
 0x1b4   :  { %4064 = vmatprep.mubr.f32.mxu1 %v1511_v6  ;;  %v7386_v2 = vand.u32 4294901760, %v1289_v42  ;;  %v1212_v41 = vsub.f32 1.0, %v9240_v15  ;;  %v9250_v6 = vld [vmem:[#allocation18_spill] sm:$0xff]  ;;  %v3072_v18 = vsel %vm6569_vm9, %v7404_v34, -1e+30  ;;  %v1276_v15 = vmul.f32 %v1196_v54, %v7274_v48 }
 0x1b5   :  { %3093 = vmax.xlane.f32.xlu1 %v3071_v5  ;;  %v1259_v3 = vadd.f32 %v1243_v58, %v1211_v27  ;;  %v1228_v46 = vmul.f32 %v1032_v19, %v9249_v37  ;;  %v1001_v5 = vmul.f32 %v901_v4, %v901_v4  ;;  %v4731_v8 = vpop.eup %4730  ;;  %v2993_v27 = vsel %vm6547_vm8, %v7350_v28, -1e+30  ;;  %v9252_v19 = vld [vmem:[#allocation66_spill] sm:$0xff] }
 0x1b6   :  { %3020 = vmax.xlane.f32.xlu0 %v2992_v38  ;;  %v7396_v30 = vsub.f32 %v1289_v42, %v7386_v2  ;;  %v1530_v38 = vsub.f32 %v7365_v33, %v1529_v20  ;;  %v1197_v1 = vmul.f32 %v4731_v8, %v7297_v50  ;;  %v9251_v42 = vld [vmem:[#allocation32_spill] sm:$0xff]  ;;  %v1213_v48 = vsub.f32 1.0, %v9243_v57 }
 0x1b7   :  { %v1244_v35 = vmul.f32 %v9250_v6, %v1228_v46  ;;  %v1033_v61 = vadd.f32 %v1017_v7, %v1001_v5  ;;  %v1291_v32 = vadd.f32 %v1275_v53, %v1259_v3  ;;  %v7428_v53 = vld [vmem:[%s8631_s3 + $0x78] sm:$0xff]  ;;  %v2905_v37 = vsel %vm6433_vm7, %v7151_v56, -1e+30  ;;  %v7433_v57 = vpop.permute.xlu0 %2678 }
 0x1b8   :  { %v1519_v16 = vand.u32 4294901760, %v7396_v30  ;;  %v1531_v46 = vand.u32 4294901760, %v1530_v38  ;;  %v1277_v5 = vmul.f32 %v1197_v1, %v7297_v50 }
 0x1b9   :  { %2929 = vmax.xlane.f32.xlu1 %v2904_v12  ;;  %v1260_v12 = vadd.f32 %v1244_v35, %v1212_v41  ;;  %v1229_v7 = vmul.f32 %v1033_v61, %v9251_v42  ;;  %v7417_v26 = vand.u32 4294901760, %v1291_v32 }
 0x1ba   :  { %2854 = vmax.xlane.f32.xlu0 %v2824_v43  ;;  %4233 = vmatmul.mubr.f32.gmra.mrb[10].mxu0 %v1519_v16  ;;  %v1520_v58 = vsub.f32 %v7396_v30, %v1519_v16 }
 0x1bb   :  { %v1245_v4 = vmul.f32 %v9252_v19, %v1229_v7  ;;  %4235 = vmatprep.mubr.f32.mxu0 %v1529_v20  ;;  %v7423_v54 = vsub.f32 %v1291_v32, %v7417_v26  ;;  %v1292_v43 = vadd.f32 %v1276_v15, %v1260_v12  ;;  %v2825_v20 = vsel %vm2806_vm0, %v7428_v53, -1e+30  ;;  %v7449_v32 = vld [vmem:[%s8631_s3 + $0x40] sm:$0xff]  ;;  %v7460_v1 = vpop.permute.xlu0 %2682 }
 0x1bc   :  { %v1521_v3 = vand.u32 4294901760, %v1520_v58  ;;  %v3073_v50 = vsel %vm6569_vm9, %v7449_v32, -1e+30  ;;  %v2906_v7 = vsel %vm6433_vm7, %v7259_v40, -1e+30 }
 0x1bd   :  { %3095 = vmax.xlane.f32.xlu1 %v3072_v18  ;;  %v1261_v8 = vadd.f32 %v1245_v4, %v1213_v48  ;;  %v1539_v41 = vand.u32 4294901760, %v7423_v54  ;;  %v7440_v6 = vand.u32 4294901760, %v1292_v43  ;;  %v2995_v19 = vsel %vm6547_vm8, %v7428_v53, -1e+30 }
 0x1be   :  { %3022 = vmax.xlane.f32.xlu0 %v2993_v27  ;;  %4065 = vmatmul.mubr.f32.gmra.mrb[10].mxu1 %v1521_v3  ;;  %v2994_v27 = vsel %vm6547_vm8, %v7383_v13, -1e+30 }
 0x1bf   :  { %4067 = vmatprep.mubr.f32.mxu1 %v1531_v46  ;;  %v1540_v35 = vsub.f32 %v7423_v54, %v1539_v41  ;;  %v7444_v61 = vsub.f32 %v1292_v43, %v7440_v6  ;;  %v1293_v18 = vadd.f32 %v1277_v5, %v1261_v8  ;;  %4236 = vmatmul.mubr.f32.gmra.mrb[12].mxu0 %v1539_v41  ;;  %v3074_v43 = vsel %vm6569_vm9, %v7067_v23, -1e+30  ;;  %v7477_v3 = vpop.permute.xlu0 %2686  ;;  %v9254_v5 = vld [vmem:[#allocation47_spill] sm:$0xff]  ;;  %v9255_v8 = vld [vmem:[#allocation48_spill] sm:$0xff] }
 0x1c0   :  { %v3080_v46 = vsel %vm6569_vm9, %v7428_v53, -1e+30  ;;  %v2907_v23 = vsel %vm6433_vm7, %v7308_v59, -1e+30  ;;  %v4421_v41 = vpack.c.bf16 %v9255_v8, %v9254_v5 }
 0x1c1   :  { %2931 = vmax.xlane.f32.xlu1 %v2905_v37  ;;  %v1541_v15 = vand.u32 4294901760, %v1540_v35  ;;  %v1549_v16 = vand.u32 4294901760, %v7444_v61  ;;  %v7455_v38 = vand.u32 4294901760, %v1293_v18 }
 0x1c2   :  { %2856 = vmax.xlane.f32.xlu0 %v2825_v20  ;;  %v9253_v20 = vld [vmem:[#allocation55_spill] sm:$0xff] }
 0x1c3   :  { %4068 = vmatmul.mubr.f32.gmra.mrb[12].mxu1 %v1541_v15  ;;  %v1550_v12 = vsub.f32 %v7444_v61, %v1549_v16  ;;  %v7464_v42 = vsub.f32 %v1293_v18, %v7455_v38  ;;  %4238 = vmatprep.mubr.f32.mxu0 %v1549_v16  ;;  %v7493_v35 = vpop.permute.xlu0 %2690  ;;  %v9256_v18 = vld [vmem:[#allocation84_spill] sm:$0xff]  ;;  %v9259_v15 = vld [vmem:[#allocation71_spill] sm:$0xff] }
 0x1c5   :  { %3097 = vmax.xlane.f32.xlu1 %v3073_v50  ;;  %v1551_v58 = vand.u32 4294901760, %v1550_v12  ;;  %v1559_v48 = vand.u32 4294901760, %v7464_v42  ;;  %v9257_v50 = vld [vmem:[#allocation75_spill] sm:$0xff] }
 0x1c6   :  { %3024 = vmax.xlane.f32.xlu0 %v2994_v27  ;;  %v9260_v27 = vld [vmem:[#allocation24_spill] sm:$0xff]  ;;  %v9261_v12 = vld [vmem:[#allocation59_spill] sm:$0xff] }
 0x1c7   :  { %4070 = vmatprep.mubr.f32.mxu1 %v1551_v58  ;;  %v1560_v4 = vsub.f32 %v7464_v42, %v1559_v48  ;;  %4239 = vmatmul.mubr.f32.gmra.mrb[14].mxu0 %v1559_v48  ;;  %v9262_v58 = vld [vmem:[#allocation26_spill] sm:$0xff]  ;;  %v9263_v48 = vld [vmem:[#allocation76_spill] sm:$0xff] }
 0x1c8   :  { %4273 = vmatprep.mubr.f32.mxu0 %v6990_v55 }
 0x1c9   :  { %2933 = vmax.xlane.f32.xlu1 %v2906_v7  ;;  %v1561_v37 = vand.u32 4294901760, %v1560_v4  ;;  %v7508_v7 = vpop.permute.xlu0 %2694 }
 0x1ca   :  { %3026 = vmax.xlane.f32.xlu0 %v2995_v19  ;;  %v9264_v19 = vld [vmem:[#allocation80_spill] sm:$0xff] }
 0x1cb   :  { %4071 = vmatmul.mubr.f32.gmra.mrb[14].mxu1 %v1561_v37  ;;  %4274 = vmatmul.mubr.f32.vlgmr.msra.gmra.mrb[0].mxu0 %v6982_v51  ;;  %v4429_v4 = vpack.c.bf16 %v9264_v19, %v9263_v48  ;;  %v9270_v48 = vld [vmem:[#allocation42_spill] sm:$0xff]  ;;  %v2909_v19 = vsel %vm6433_vm7, %v7383_v13, -1e+30 }
 0x1cc   :  { %4105 = vmatprep.mubr.f32.mxu1 %v6990_v55  ;;  %4276 = vmatprep.mubr.f32.mxu0 %v7024_v9 }
 0x1cd   :  { %3099 = vmax.xlane.f32.xlu1 %v3074_v43  ;;  %4516 = vmatpush3.bf16.msra.mxu0 %v9238_v24  ;;  %v9258_v24 = vld [vmem:[#allocation21_spill] sm:$0xff]  ;;  %v9265_v43 = vld [vmem:[#allocation16_spill] sm:$0xff] }
 0x1ce   :  { %4518 = vmatprep.subr.bf16.mxu0 %v9253_v20  ;;  %3111 = vmax.xlane.f32.xlu0 %v3080_v46  ;;  %v4425_v16 = vpack.c.bf16 %v9259_v15, %v9258_v24  ;;  %v7523_v46 = vpop.xlane.xlu0 %2826 }
 0x1cf   :  { %4106 = vmatmul.mubr.f32.vlgmr.msra.gmra.mrb[0].mxu1 %v6982_v51  ;;  %4277 = vmatmul.mubr.f32.gmra.mrb[2].mxu0 %v9256_v18 }
 0x1d0   :  { %4420 = vmatpush3.bf16.msra.mxu1 %v7249_v39  ;;  %4108 = vmatprep.mubr.f32.mxu1 %v7024_v9  ;;  %v7506_v39 = vpop.permute.xlu1 %2664 }
 0x1d1   :  { %2935 = vmax.xlane.f32.xlu1 %v2907_v23  ;;  %4279 = vmatprep.mubr.f32.mxu0 %v9257_v50  ;;  %v9266_v23 = vld [vmem:[#allocation31_spill] sm:$0xff] }
 0x1d2   :  { %4520 = vmatpush3.bf16.msra.mxu0 %v9253_v20  ;;  %4422 = vmatprep.subr.bf16.mxu1 %v4421_v41  ;;  %v9267_v20 = vld [vmem:[#allocation19_spill] sm:$0xff]  ;;  %v7538_v8 = vpop.xlane.xlu0 %2911 }
 0x1d3   :  { %4109 = vmatmul.mubr.f32.gmra.mrb[2].mxu1 %v9256_v18  ;;  %4522 = vmatprep.subr.bf16.mxu0 %v9260_v27 }
 0x1d4   :  { %4424 = vmatpush3.bf16.msra.mxu1 %v4421_v41  ;;  %4280 = vmatmul.mubr.f32.gmra.mrb[4].mxu0 %v9261_v12  ;;  %v7521_v37 = vpop.permute.xlu1 %2668  ;;  %v9268_v41 = vld [vmem:[#allocation13_spill] sm:$0xff] }
 0x1d5   :  { %4111 = vmatprep.mubr.f32.mxu1 %v9257_v50  ;;  %4282 = vmatprep.mubr.f32.mxu0 %v9262_v58 }
 0x1d6   :  { %4524 = vmatpush3.bf16.msra.mxu0 %v9260_v27  ;;  %4426 = vmatprep.subr.bf16.mxu1 %v4425_v16  ;;  %v7557_v15 = vpop.xlane.xlu0 %2913 }
 0x1d7   :  { %4112 = vmatmul.mubr.f32.gmra.mrb[4].mxu1 %v9261_v12  ;;  %4526 = vmatprep.subr.bf16.mxu0 %v9265_v43 }
 0x1d8   :  { %4428 = vmatpush3.bf16.msra.mxu1 %v4425_v16  ;;  %4283 = vmatmul.mubr.f32.gmra.mrb[6].mxu0 %v7254_v17  ;;  %v7536_v5 = vpop.permute.xlu1 %2672 }
 0x1d9   :  { %4114 = vmatprep.mubr.f32.mxu1 %v9262_v58  ;;  %4285 = vmatprep.mubr.f32.mxu0 %v7316_v47 }
 0x1da   :  { %4528 = vmatpush3.bf16.msra.mxu0 %v9265_v43  ;;  %4430 = vmatprep.subr.bf16.mxu1 %v4429_v4  ;;  %v7576_v27 = vpop.xlane.xlu0 %2915  ;;  %v2910_v43 = vsel %vm6433_vm7, %v7428_v53, -1e+30 }
 0x1db   :  { %4115 = vmatmul.mubr.f32.gmra.mrb[6].mxu1 %v7254_v17  ;;  %4530 = vmatprep.subr.bf16.mxu0 %v9266_v23 }
 0x1dc   :  { %4432 = vmatpush3.bf16.msra.mxu1 %v4429_v4  ;;  %4286 = vmatmul.mubr.f32.gmra.mrb[8].mxu0 %v7272_v25  ;;  %v7555_v24 = vpop.permute.xlu1 %2676  ;;  %v9273_v4 = vld [vmem:[#allocation56_spill] sm:$0xff] }
 0x1dd   :  { %4117 = vmatprep.mubr.f32.mxu1 %v7316_v47  ;;  %4288 = vmatprep.mubr.f32.mxu0 %v7279_v62 }
 0x1de   :  { %4532 = vmatpush3.bf16.msra.mxu0 %v9266_v23  ;;  %4434 = vmatprep.subr.bf16.mxu1 %v7200_v49 }
 0x1df   :  { %4118 = vmatmul.mubr.f32.gmra.mrb[8].mxu1 %v7272_v25  ;;  %4534 = vmatprep.subr.bf16.mxu0 %v9267_v20 }
 0x1e0   :  { %4436 = vmatpush3.bf16.msra.mxu1 %v7200_v49  ;;  %4289 = vmatmul.mubr.f32.gmra.mrb[10].mxu0 %v7386_v2  ;;  %v3075_v49 = vsel %vm6569_vm9, %v7151_v56, -1e+30  ;;  %v2908_v56 = vsel %vm6433_vm7, %v7350_v28, -1e+30  ;;  %v7574_v16 = vpop.permute.xlu1 %2680 }
 0x1e1   :  { %4120 = vmatprep.mubr.f32.mxu1 %v7279_v62  ;;  %4291 = vmatprep.mubr.f32.mxu0 %v7342_v21 }
 0x1e2   :  { %4536 = vmatpush3.bf16.msra.mxu0 %v9267_v20  ;;  %4438 = vmatprep.subr.bf16.mxu1 %v7204_v11  ;;  %v4905_v20 = vld [vmem:[%s8631_s3] sm:$0xff] }
 0x1e3   :  { %4121 = vmatmul.mubr.f32.gmra.mrb[10].mxu1 %v7386_v2  ;;  %4538 = vmatprep.subr.bf16.mxu0 %v9268_v41 }
 0x1e4   :  { %4440 = vmatpush3.bf16.msra.mxu1 %v7204_v11  ;;  %4292 = vmatmul.mubr.f32.gmra.mrb[12].mxu0 %v7417_v26  ;;  %v9269_v11 = vld [vmem:[#allocation37_spill] sm:$0xff] }
 0x1e5   :  { %4123 = vmatprep.mubr.f32.mxu1 %v7342_v21  ;;  %4294 = vmatprep.mubr.f32.mxu0 %v7440_v6 }
 0x1e6   :  { %4540 = vmatpush3.bf16.msra.mxu0 %v9268_v41  ;;  %4442 = vmatprep.subr.bf16.mxu1 %v7215_v52 }
 0x1e7   :  { %3101 = vmax.xlane.f32.xlu1 %v3075_v49  ;;  %4124 = vmatmul.mubr.f32.gmra.mrb[12].mxu1 %v7417_v26 }
 0x1e8   :  { %4444 = vmatpush3.bf16.msra.mxu1 %v7215_v52  ;;  %4295 = vmatmul.mubr.f32.gmra.mrb[14].mxu0 %v7455_v38  ;;  %v3076_v52 = vsel %vm6569_vm9, %v7259_v40, -1e+30  ;;  %v9272_v40 = vld [vmem:[#allocation20_spill] sm:$0xff] }
 0x1e9   :  { %4542 = vmatprep.subr.bf16.mxu0 %v9269_v11  ;;  %4126 = vmatprep.mubr.f32.mxu1 %v7440_v6 }
 0x1ea   :  { %4544 = vmatpush3.bf16.msra.mxu0 %v9269_v11  ;;  %4329 = vmatprep.mubr.f32.mxu0 %v6990_v55  ;;  %v9271_v55 = vld [vmem:[#allocation52_spill] sm:$0xff] }
 0x1eb   :  { %4446 = vmatprep.subr.bf16.mxu1 %v7223_v36  ;;  %2937 = vmax.xlane.f32.xlu1 %v2908_v56 }
 0x1ec   :  { %4127 = vmatmul.mubr.f32.gmra.mrb[14].mxu1 %v7455_v38 }
 0x1ed   :  { %4448 = vmatpush3.bf16.msra.mxu1 %v7223_v36  ;;  %4330 = vmatmul.mubr.f32.vlgmr.msra.gmra.mrb[0].mxu0 %v6982_v51  ;;  %v7589_v36 = vpop.permute.xlu1 %2684  ;;  %v7591_v51 = vpop.xlane.xlu0 %2998 }
 0x1ee   :  { %4161 = vmatprep.mubr.f32.mxu1 %v9270_v48  ;;  %4332 = vmatprep.mubr.f32.mxu0 %v7024_v9  ;;  %v3077_v9 = vsel %vm6569_vm9, %v7308_v59, -1e+30  ;;  %v9275_v59 = vld [vmem:[#allocation62_spill] sm:$0xff]  ;;  %v3029_v49 = vsel %vm6547_vm8, %v7591_v51, 0.0 }
 0x1ef   :  { %3103 = vmax.xlane.f32.xlu1 %v3076_v52 }
 0x1f0   :  { %4162 = vmatmul.mubr.f32.vlgmr.msra.gmra.mrb[0].mxu1 %v9271_v55  ;;  %v2945_v55 = vsel %vm6433_vm7, %v7576_v27, 0.0 }
 0x1f1   :  { %4333 = vmatmul.mubr.f32.gmra.mrb[2].mxu0 %v9256_v18  ;;  %4164 = vmatprep.mubr.f32.mxu1 %v9272_v40  ;;  %v9274_v18 = vld [vmem:[#allocation79_spill] sm:$0xff]  ;;  %v7606_v23 = vpop.xlane.xlu0 %2917 }
 0x1f2   :  { %4335 = vmatprep.mubr.f32.mxu0 %v9257_v50  ;;  %v7601_v50 = vpop.permute.xlu1 %2688 }
 0x1f3   :  { %2939 = vmax.xlane.f32.xlu1 %v2909_v19 }
 0x1f4   :  { %4165 = vmatmul.mubr.f32.gmra.mrb[2].mxu1 %v9273_v4 }
 0x1f5   :  { %4336 = vmatmul.mubr.f32.gmra.mrb[4].mxu0 %v9261_v12  ;;  %4167 = vmatprep.mubr.f32.mxu1 %v7175_v63  ;;  %v3078_v63 = vsel %vm6569_vm9, %v7350_v28, -1e+30 }
 0x1f6   :  { %4338 = vmatprep.mubr.f32.mxu0 %v9262_v58  ;;  %v7618_v12 = vpop.permute.xlu1 %2692 }
 0x1f7   :  { %3105 = vmax.xlane.f32.xlu1 %v3077_v9 }
 0x1f8   :  { %4168 = vmatmul.mubr.f32.gmra.mrb[4].mxu1 %v9274_v18 }
 0x1f9   :  { %4339 = vmatmul.mubr.f32.gmra.mrb[6].mxu0 %v7254_v17  ;;  %4170 = vmatprep.mubr.f32.mxu1 %v9275_v59  ;;  %v7620_v17 = vpop.xlane.xlu0 %3081 }
 0x1fa   :  { %4341 = vmatprep.mubr.f32.mxu0 %v7316_v47  ;;  %v9276_v47 = vld [vmem:[#allocation25_spill] sm:$0xff] }
 0x1fb   :  { %2941 = vmax.xlane.f32.xlu1 %v2910_v43 }
 0x1fc   :  { %4171 = vmatmul.mubr.f32.gmra.mrb[6].mxu1 %v7268_v31  ;;  %v3079_v31 = vsel %vm6569_vm9, %v7383_v13, -1e+30 }
 0x1fd   :  { %4342 = vmatmul.mubr.f32.gmra.mrb[8].mxu0 %v7272_v25  ;;  %4173 = vmatprep.mubr.f32.mxu1 %v7323_v29  ;;  %v7629_v25 = vpop.xlane.xlu0 %2834  ;;  %v2943_v29 = vsel %vm6433_vm7, %v7538_v8, 0.0 }
 0x1fe   :  { %4344 = vmatprep.mubr.f32.mxu0 %v7279_v62 }
 0x1ff   :  { %3107 = vmax.xlane.f32.xlu1 %v3078_v63  ;;  %v7698_v63 = vld [vmem:[%s8631_s3 + $0x8] sm:$0xff] }
 0x200   :  { %4174 = vmatmul.mubr.f32.gmra.mrb[8].mxu1 %v7300_v60  ;;  %v7632_v62 = vpop.xlane.xlu1 %2828  ;;  %v2858_v60 = vsel %vm2806_vm0, %v7523_v46, 0.0 }
 0x201   :  { %4345 = vmatmul.mubr.f32.gmra.mrb[10].mxu0 %v7386_v2  ;;  %4176 = vmatprep.mubr.f32.mxu1 %v9276_v47  ;;  %v7646_v28 = vpop.xlane.xlu0 %3002 }
 0x202   :  { %4347 = vmatprep.mubr.f32.mxu0 %v7342_v21 }
 0x203   :  { %3109 = vmax.xlane.f32.xlu1 %v3079_v31 }
 0x204   :  { %4177 = vmatmul.mubr.f32.gmra.mrb[10].mxu1 %v7396_v30  ;;  %v7644_v21 = vpop.xlane.xlu1 %2830  ;;  %v3113_v30 = vsel %vm6569_vm9, %v7620_v17, 0.0 }
 0x205   :  { %4348 = vmatmul.mubr.f32.gmra.mrb[12].mxu0 %v7417_v26  ;;  %4179 = vmatprep.mubr.f32.mxu1 %v7365_v33  ;;  %v2959_v33 = vadd.f32 %v2943_v29, %v2858_v60  ;;  %v2860_v19 = vsel %vm2806_vm0, %v7644_v21, 0.0 }
 0x206   :  { %4350 = vmatprep.mubr.f32.mxu0 %v7440_v6  ;;  %v2944_v6 = vsel %vm6433_vm7, %v7557_v15, 0.0  ;;  %v2961_v9 = vadd.f32 %v2945_v55, %v2860_v19 }
 0x208   :  { %4180 = vmatmul.mubr.f32.gmra.mrb[12].mxu1 %v7423_v54  ;;  %v7659_v54 = vpop.xlane.xlu0 %2836 }
 0x209   :  { %4351 = vmatmul.mubr.f32.gmra.mrb[14].mxu0 %v7455_v38  ;;  %4182 = vmatprep.mubr.f32.mxu1 %v7444_v61  ;;  %v2859_v61 = vsel %vm2806_vm0, %v7632_v62, 0.0 }
 0x20a   :  { %v2960_v58 = vadd.f32 %v2944_v6, %v2859_v61 }
 0x20c   :  { %4183 = vmatmul.mubr.f32.gmra.mrb[14].mxu1 %v7464_v42  ;;  %v7651_v13 = vpop.xlane.xlu1 %2996  ;;  %v7677_v52 = vpop.xlane.xlu0 %3004  ;;  %v3045_v48 = vadd.f32 %v3029_v49, %v2960_v58  ;;  %v4907_v49 = vld [vmem:[%s8631_s3 + $0x10] sm:$0xff] }
 0x20d   :  { %v3028_v2 = vsel %vm6547_vm8, %v7651_v13, 0.0  ;;  %9277 = vst [vmem:[#allocation15_spill] sm:$0xff] %v7677_v52 }
 0x20e   :  { %v3044_v26 = vadd.f32 %v3028_v2, %v2959_v33  ;;  %v2946_v33 = vsel %vm6433_vm7, %v7606_v23, 0.0 }
 0x210   :  { %v3129_v38 = vadd.f32 %v3113_v30, %v3044_v26  ;;  %v7667_v42 = vpop.xlane.xlu1 %2832  ;;  %v7690_v43 = vpop.xlane.xlu0 %2838 }
 0x211   :  { %9279 = vst [vmem:[#allocation12_spill] sm:$0xff] %v7690_v43  ;;  %v2861_v2 = vsel %vm2806_vm0, %v7667_v42, 0.0 }
 0x212   :  { %v3145_v41 = vsub.f32 %v4905_v20, %v3129_v38  ;;  %v2962_v58 = vadd.f32 %v2946_v33, %v2861_v2 }
 0x214   :  { %v3161_v56 = vmul.f32 1.442695, %v3145_v41  ;;  %v7713_v6 = vpop.xlane.xlu0 %3006  ;;  %v3031_v41 = vsel %vm6547_vm8, %v7646_v28, 0.0 }
 0x215   :  { %v7675_v11 = vpop.xlane.xlu1 %3000  ;;  %9281 = vst [vmem:[#allocation64_spill] sm:$0xff] %v7713_v6  ;;  %v3047_v19 = vadd.f32 %v3031_v41, %v2962_v58 }
 0x216   :  { %4732 = vpow2.f32 %v3161_v56  ;;  %v3030_v59 = vsel %vm6547_vm8, %v7675_v11, 0.0 }
 0x217   :  { %v3046_v60 = vadd.f32 %v3030_v59, %v2961_v9 }
 0x21a   :  { %v7685_v40 = vpop.xlane.xlu1 %3083 }
 0x21b   :  { %9278 = vst [vmem:[#allocation53_spill] sm:$0xff] %v7685_v40  ;;  %v3114_v4 = vsel %vm6569_vm9, %v7685_v40, 0.0 }
 0x21c   :  { %v3130_v18 = vadd.f32 %v3114_v4, %v3045_v48  ;;  %v7729_v4 = vpop.xlane.xlu0 %2840 }
 0x21d   :  { %9282 = vst [vmem:[#allocation51_spill] sm:$0xff] %v7729_v4 }
 0x21e   :  { %v3146_v31 = vsub.f32 %v7698_v63, %v3130_v18  ;;  %v7701_v47 = vpop.xlane.xlu1 %2919  ;;  %v2862_v18 = vsel %vm2806_vm0, %v7629_v25, 0.0 }
 0x21f   :  { %v2947_v9 = vsel %vm6433_vm7, %v7701_v47, 0.0 }
 0x220   :  { %v3163_v29 = vmul.f32 1.442695, %v3146_v31  ;;  %v7709_v30 = vpop.eup %4732  ;;  %v7755_v41 = vpop.xlane.xlu0 %3008 }
 0x221   :  { %v3193_v38 = vsel %vm2806_vm0, %v7709_v30, 0.0  ;;  %9285 = vst [vmem:[#allocation88_spill] sm:$0xff] %v7755_v41 }
 0x222   :  { %4734 = vpow2.f32 %v3163_v29  ;;  %v7711_v26 = vpop.xlane.xlu1 %3085  ;;  %3209 = vadd.xlane.f32.xlu1 %v3193_v38  ;;  %v2963_v29 = vadd.f32 %v2947_v9, %v2862_v18  ;;  %v4908_v38 = vld [vmem:[%s8631_s3 + $0x18] sm:$0xff] }
 0x223   :  { %9280 = vst [vmem:[#allocation49_spill] sm:$0xff] %v7711_v26  ;;  %v3115_v61 = vsel %vm6569_vm9, %v7711_v26, 0.0 }
 0x224   :  { %v3131_v20 = vadd.f32 %v3115_v61, %v3046_v60  ;;  %v3032_v61 = vsel %vm6547_vm8, %v7677_v52, 0.0 }
 0x226   :  { %v3147_v56 = vsub.f32 %v4907_v49, %v3131_v20  ;;  %v7727_v48 = vpop.xlane.xlu1 %2921 }
 0x228   :  { %v3165_v55 = vmul.f32 1.442695, %v3147_v56  ;;  %v3048_v56 = vadd.f32 %v3032_v61, %v2963_v29  ;;  %v7770_v29 = vpop.xlane.xlu0 %2842 }
 0x229   :  { %9287 = vst [vmem:[#allocation70_spill] sm:$0xff] %v7770_v29 }
 0x22a   :  { %4736 = vpow2.f32 %v3165_v55  ;;  %v7737_v59 = vpop.xlane.xlu1 %3087  ;;  %v2948_v55 = vsel %vm6433_vm7, %v7727_v48, 0.0 }
 0x22b   :  { %9283 = vst [vmem:[#allocation77_spill] sm:$0xff] %v7737_v59  ;;  %v3116_v31 = vsel %vm6569_vm9, %v7737_v59, 0.0 }
 0x22c   :  { %v7742_v60 = vpop.eup %4734  ;;  %v3132_v33 = vadd.f32 %v3116_v31, %v3047_v19  ;;  %v2863_v19 = vsel %vm2806_vm0, %v7659_v54, 0.0 }
 0x22d   :  { %v3194_v2 = vsel %vm2806_vm0, %v7742_v60, 0.0 }
 0x22e   :  { %v3148_v58 = vsub.f32 %v4908_v38, %v3132_v33  ;;  %v7753_v20 = vpop.xlane.xlu1 %2923  ;;  %3211 = vadd.xlane.f32.xlu0 %v3194_v2  ;;  %v2964_v33 = vadd.f32 %v2948_v55, %v2863_v19  ;;  %v3033_v38 = vsel %vm6547_vm8, %v7713_v6, 0.0  ;;  %v2864_v6 = vsel %vm2806_vm0, %v7690_v43, 0.0 }
 0x22f   :  { %9284 = vst [vmem:[#allocation38_spill] sm:$0xff] %v7753_v20 }
 0x230   :  { %v3167_v49 = vmul.f32 1.442695, %v3148_v58  ;;  %v4909_v58 = vld [vmem:[%s8631_s3 + $0x20] sm:$0xff]  ;;  %v3049_v19 = vadd.f32 %v3033_v38, %v2964_v33 }
 0x232   :  { %4738 = vpow2.f32 %v3167_v49  ;;  %v7763_v9 = vpop.xlane.xlu1 %3089 }
 0x233   :  { %9286 = vst [vmem:[#allocation72_spill] sm:$0xff] %v7763_v9  ;;  %v3117_v18 = vsel %vm6569_vm9, %v7763_v9, 0.0 }
 0x234   :  { %v7768_v31 = vpop.eup %4736  ;;  %v3133_v2 = vadd.f32 %v3117_v18, %v3048_v56  ;;  %v3305_v56 = vsel %vm6433_vm7, %v7709_v30, 0.0  ;;  %v2949_v18 = vsel %vm6433_vm7, %v7753_v20, 0.0  ;;  %v2865_v20 = vsel %vm2806_vm0, %v7729_v4, 0.0 }
 0x235   :  { %v3195_v61 = vsel %vm2806_vm0, %v7768_v31, 0.0  ;;  %v2965_v33 = vadd.f32 %v2949_v18, %v2864_v6  ;;  %v3306_v6 = vsel %vm6433_vm7, %v7742_v60, 0.0 }
 0x236   :  { %v3149_v49 = vsub.f32 %v4909_v58, %v3133_v2  ;;  %v7781_v9 = vpop.xlane.xlu1 %2925  ;;  %3213 = vadd.xlane.f32.xlu1 %v3195_v61  ;;  %v7794_v2 = vpop.xlane.xlu0 %3010 }
 0x237   :  { %9288 = vst [vmem:[#allocation86_spill] sm:$0xff] %v7781_v9  ;;  %9290 = vst [vmem:[#allocation33_spill] sm:$0xff] %v7794_v2 }
 0x238   :  { %v3169_v55 = vmul.f32 1.442695, %v3149_v49 }
 0x23a   :  { %4740 = vpow2.f32 %v3169_v55  ;;  %v7792_v59 = vpop.xlane.xlu1 %3091  ;;  %3321 = vadd.xlane.f32.xlu1 %v3305_v56  ;;  %v3034_v55 = vsel %vm6547_vm8, %v7755_v41, 0.0  ;;  %v7810_v56 = vld [vmem:[%s8631_s3 + $0x28] sm:$0xff]  ;;  %v2950_v41 = vsel %vm6433_vm7, %v7781_v9, 0.0 }
 0x23b   :  { %9289 = vst [vmem:[#allocation89_spill] sm:$0xff] %v7792_v59  ;;  %v3118_v61 = vsel %vm6569_vm9, %v7792_v59, 0.0  ;;  %v3050_v18 = vadd.f32 %v3034_v55, %v2965_v33  ;;  %v2966_v55 = vadd.f32 %v2950_v41, %v2865_v20 }
 0x23c   :  { %v7799_v58 = vpop.eup %4738  ;;  %v3134_v38 = vadd.f32 %v3118_v61, %v3049_v19  ;;  %v7818_v61 = vpop.xlane.xlu0 %2844 }
 0x23d   :  { %v3196_v49 = vsel %vm2806_vm0, %v7799_v58, 0.0  ;;  %9292 = vst [vmem:[#allocation57_spill] sm:$0xff] %v7818_v61  ;;  %v3308_v20 = vsel %vm6433_vm7, %v7799_v58, 0.0 }
 0x23e   :  { %v3150_v26 = vsub.f32 %v7810_v56, %v3134_v38  ;;  %v7813_v59 = vpop.xlane.xlu1 %2927  ;;  %3215 = vadd.xlane.f32.xlu0 %v3196_v49 }
 0x23f   :  { %9291 = vst [vmem:[#allocation91_spill] sm:$0xff] %v7813_v59 }
 0x240   :  { %v3171_v19 = vmul.f32 1.442695, %v3150_v26  ;;  %v3307_v26 = vsel %vm6433_vm7, %v7768_v31, 0.0  ;;  %v7847_v40 = vpop.xlane.xlu0 %3012 }
 0x241   :  { %9295 = vst [vmem:[#allocation40_spill] sm:$0xff] %v7847_v40 }
 0x242   :  { %4742 = vpow2.f32 %v3171_v19  ;;  %v7826_v38 = vpop.xlane.xlu1 %3093  ;;  %3323 = vadd.xlane.f32.xlu0 %v3306_v6  ;;  %v3035_v6 = vsel %vm6547_vm8, %v7794_v2, 0.0  ;;  %v4911_v19 = vld [vmem:[%s8631_s3 + $0x30] sm:$0xff] }
 0x243   :  { %9293 = vst [vmem:[#allocation17_spill] sm:$0xff] %v7826_v38  ;;  %v3119_v49 = vsel %vm6569_vm9, %v7826_v38, 0.0 }
 0x244   :  { %v7834_v33 = vpop.eup %4740  ;;  %v3135_v9 = vadd.f32 %v3119_v49, %v3050_v18  ;;  %v3051_v18 = vadd.f32 %v3035_v6, %v2966_v55  ;;  %v2951_v49 = vsel %vm6433_vm7, %v7813_v59, 0.0  ;;  %v7868_v2 = vpop.xlane.xlu0 %2846 }
 0x245   :  { %v3197_v4 = vsel %vm2806_vm0, %v7834_v33, 0.0  ;;  %9297 = vst [vmem:[#allocation68_spill] sm:$0xff] %v7868_v2 }
 0x246   :  { %v3151_v38 = vsub.f32 %v4911_v19, %v3135_v9  ;;  %v7845_v52 = vpop.xlane.xlu1 %2929  ;;  %3325 = vadd.xlane.f32.xlu0 %v3307_v26  ;;  %3217 = vadd.xlane.f32.xlu1 %v3197_v4  ;;  %v2866_v9 = vsel %vm2806_vm0, %v7770_v29, 0.0 }
 0x247   :  { %9294 = vst [vmem:[#allocation81_spill] sm:$0xff] %v7845_v52  ;;  %v2967_v55 = vadd.f32 %v2951_v49, %v2866_v9  ;;  %v3417_v49 = vsel %vm6547_vm8, %v7709_v30, 0.0 }
 0x248   :  { %v3173_v41 = vmul.f32 1.442695, %v3151_v38  ;;  %v3418_v38 = vsel %vm6547_vm8, %v7742_v60, 0.0 }
 0x24a   :  { %4744 = vpow2.f32 %v3173_v41  ;;  %v7858_v19 = vpop.xlane.xlu1 %3095  ;;  %3327 = vadd.xlane.f32.xlu0 %v3308_v20  ;;  %v3036_v20 = vsel %vm6547_vm8, %v7847_v40, 0.0  ;;  %v2952_v40 = vsel %vm6433_vm7, %v7845_v52, 0.0 }
 0x24b   :  { %9296 = vst [vmem:[#allocation45_spill] sm:$0xff] %v7858_v19  ;;  %v3120_v4 = vsel %vm6569_vm9, %v7858_v19, 0.0 }
 0x24c   :  { %v7866_v26 = vpop.eup %4742  ;;  %v3136_v6 = vadd.f32 %v3120_v4, %v3051_v18  ;;  %v3309_v18 = vsel %vm6433_vm7, %v7834_v33, 0.0  ;;  %v3052_v4 = vadd.f32 %v3036_v20, %v2967_v55 }
 0x24d   :  { %v3198_v41 = vsel %vm2806_vm0, %v7866_v26, 0.0 }
 0x24e   :  { %v3152_v19 = vsub.f32 %v7404_v34, %v3136_v6  ;;  %v7877_v59 = vpop.xlane.xlu1 %2931  ;;  %3435 = vadd.xlane.f32.xlu0 %v3418_v38  ;;  %3219 = vadd.xlane.f32.xlu1 %v3198_v41  ;;  %v2867_v34 = vsel %vm2806_vm0, %v7818_v61, 0.0  ;;  %v7893_v6 = vpop.xlane.xlu0 %3014  ;;  %v4999_v41 = vmov 0.0  }
 0x24f   :  { %9298 = vst [vmem:[#allocation9_spill] sm:$0xff] %v7877_v59  ;;  %9300 = vst [vmem:[#allocation74_spill] sm:$0xff] %v7893_v6  ;;  %v2968_v20 = vadd.f32 %v2952_v40, %v2867_v34  ;;  %v3419_v40 = vsel %vm6547_vm8, %v7768_v31, 0.0 }
 0x250   :  { %v3175_v9 = vmul.f32 1.442695, %v3152_v19  ;;  %30 = vst.msk [vmem:[#allocation2 + $0x8] sm:$0xff] %vm28_vm10, %v4999_v41  ;;  %29 = vst.msk [vmem:[#allocation2] sm:$0xff] %vm28_vm10, %v4999_v41 }
 0x251   :  { %31 = vst.msk [vmem:[#allocation2 + $0x10] sm:$0xff] %vm28_vm10, %v4999_v41  ;;  %32 = vst.msk [vmem:[#allocation2 + $0x18] sm:$0xff] %vm28_vm10, %v4999_v41 }
 0x252   :  { %4746 = vpow2.f32 %v3175_v9  ;;  %v7891_v38 = vpop.xlane.xlu1 %3097  ;;  %3329 = vadd.xlane.f32.xlu0 %v3309_v18  ;;  %3433 = vadd.xlane.f32.xlu1 %v3417_v49  ;;  %33 = vst.msk [vmem:[#allocation2 + $0x20] sm:$0xff] %vm28_vm10, %v4999_v41  ;;  %34 = vst.msk [vmem:[#allocation2 + $0x28] sm:$0xff] %vm28_vm10, %v4999_v41  ;;  %v3037_v9 = vsel %vm6547_vm8, %v7893_v6, 0.0 }
 0x253   :  { %9299 = vst [vmem:[#allocation87_spill] sm:$0xff] %v7891_v38  ;;  %35 = vst.msk [vmem:[#allocation2 + $0x30] sm:$0xff] %vm28_vm10, %v4999_v41  ;;  %v3121_v19 = vsel %vm6569_vm9, %v7891_v38, 0.0  ;;  %v3053_v34 = vadd.f32 %v3037_v9, %v2968_v20  ;;  %v7948_v20 = vld [vmem:[%s8631_s3 + $0x48] sm:$0xff] }
 0x254   :  { %36 = vst.msk [vmem:[#allocation2 + $0x38] sm:$0xff] %vm28_vm10, %v4999_v41  ;;  %37 = vst.msk [vmem:[#allocation2 + $0x40] sm:$0xff] %vm28_vm10, %v4999_v41  ;;  %v7914_v55 = vpop.eup %4744  ;;  %v3137_v18 = vadd.f32 %v3121_v19, %v3052_v4 }
 0x255   :  { %38 = vst.msk [vmem:[#allocation2 + $0x48] sm:$0xff] %vm28_vm10, %v4999_v41  ;;  %39 = vst.msk [vmem:[#allocation2 + $0x50] sm:$0xff] %vm28_vm10, %v4999_v41  ;;  %v3199_v49 = vsel %vm2806_vm0, %v7914_v55, 0.0 }
 0x256   :  { %40 = vst.msk [vmem:[#allocation2 + $0x58] sm:$0xff] %vm28_vm10, %v4999_v41  ;;  %41 = vst.msk [vmem:[#allocation2 + $0x60] sm:$0xff] %vm28_vm10, %v4999_v41  ;;  %v3153_v52 = vsub.f32 %v7449_v32, %v3137_v18  ;;  %v7923_v61 = vpop.xlane.xlu1 %2933  ;;  %3221 = vadd.xlane.f32.xlu1 %v3199_v49  ;;  %v3310_v32 = vsel %vm6433_vm7, %v7866_v26, 0.0 }
 0x257   :  { %42 = vst.msk [vmem:[#allocation2 + $0x68] sm:$0xff] %vm28_vm10, %v4999_v41  ;;  %43 = vst.msk [vmem:[#allocation2 + $0x70] sm:$0xff] %vm28_vm10, %v4999_v41  ;;  %v2954_v43 = vsel %vm6433_vm7, %v7923_v61, 0.0 }
 0x258   :  { %44 = vst.msk [vmem:[#allocation2 + $0x78] sm:$0xff] %vm28_vm10, %v4999_v41  ;;  %9301 = vst [vmem:[#allocation28_spill] sm:$0xff] %v7923_v61  ;;  %v7925_v41 = vpop.xlane.xlu0 %2848  ;;  %v3177_v4 = vmul.f32 1.442695, %v3153_v52 }
 0x259   :  { %9302 = vst [vmem:[#allocation10_spill] sm:$0xff] %v7925_v41 }
 0x25a   :  { %4748 = vpow2.f32 %v3177_v4  ;;  %v7930_v19 = vpop.xlane.xlu1 %3099  ;;  %3437 = vadd.xlane.f32.xlu1 %v3419_v40  ;;  %v3529_v40 = vsel %vm6569_vm9, %v7709_v30, 0.0 }
 0x25b   :  { %9303 = vst [vmem:[#allocation43_spill] sm:$0xff] %v7930_v19  ;;  %v3122_v38 = vsel %vm6569_vm9, %v7930_v19, 0.0 }
 0x25c   :  { %v7938_v18 = vpop.eup %4746  ;;  %v3138_v49 = vadd.f32 %v3122_v38, %v3053_v34  ;;  %v7940_v6 = vpop.xlane.xlu0 %3016  ;;  %v3420_v38 = vsel %vm6547_vm8, %v7799_v58, 0.0 }
 0x25d   :  { %9304 = vst [vmem:[#allocation92_spill] sm:$0xff] %v7938_v18  ;;  %9305 = vst [vmem:[#allocation73_spill] sm:$0xff] %v7940_v6  ;;  %v3200_v52 = vsel %vm2806_vm0, %v7938_v18, 0.0 }
 0x25e   :  { %v3154_v9 = vsub.f32 %v7948_v20, %v3138_v49  ;;  %3331 = vadd.xlane.f32.xlu1 %v3310_v32  ;;  %3223 = vadd.xlane.f32.xlu0 %v3200_v52  ;;  %v3530_v49 = vsel %vm6569_vm9, %v7742_v60, 0.0  ;;  %v3311_v52 = vsel %vm6433_vm7, %v7914_v55, 0.0  ;;  %v3531_v60 = vsel %vm6569_vm9, %v7768_v31, 0.0 }
 0x25f   :  { %v3312_v31 = vsel %vm6433_vm7, %v7938_v18, 0.0 }
 0x260   :  { %v3179_v4 = vmul.f32 1.442695, %v3154_v9  ;;  %v7957_v34 = vpop.xlane.xlu0 %2850  ;;  %v3421_v9 = vsel %vm6547_vm8, %v7834_v33, 0.0 }
 0x261   :  { %9306 = vst [vmem:[#allocation60_spill] sm:$0xff] %v7957_v34 }
 0x262   :  { %4750 = vpow2.f32 %v3179_v4  ;;  %3545 = vadd.xlane.f32.xlu1 %v3529_v40  ;;  %3439 = vadd.xlane.f32.xlu0 %v3420_v38  ;;  %v2953_v4 = vsel %vm6433_vm7, %v7877_v59, 0.0  ;;  %v7997_v59 = vpop.xlane.xlu1 %2935 }
 0x263   :  { %9311 = vst [vmem:[#allocation85_spill] sm:$0xff] %v7997_v59 }
 0x264   :  { %v7962_v32 = vpop.eup %4748  ;;  %v7973_v40 = vpop.xlane.xlu0 %3018 }
 0x265   :  { %9307 = vst [vmem:[#allocation36_spill] sm:$0xff] %v7962_v32  ;;  %v3201_v30 = vsel %vm2806_vm0, %v7962_v32, 0.0  ;;  %9308 = vst [vmem:[#allocation27_spill] sm:$0xff] %v7973_v40 }
 0x266   :  { %3547 = vadd.xlane.f32.xlu0 %v3530_v49  ;;  %3225 = vadd.xlane.f32.xlu1 %v3201_v30  ;;  %v2868_v49 = vsel %vm2806_vm0, %v7868_v2, 0.0  ;;  %v3038_v2 = vsel %vm6547_vm8, %v7940_v6, 0.0  ;;  %v3039_v6 = vsel %vm6547_vm8, %v7973_v40, 0.0  ;;  %v2870_v40 = vsel %vm2806_vm0, %v7957_v34, 0.0 }
 0x267   :  { %v2969_v19 = vadd.f32 %v2953_v4, %v2868_v49  ;;  %v2869_v4 = vsel %vm2806_vm0, %v7925_v41, 0.0 }
 0x26a   :  { %3333 = vadd.xlane.f32.xlu0 %v3311_v52  ;;  %3441 = vadd.xlane.f32.xlu1 %v3421_v9  ;;  %v7989_v52 = vpop.xlane.xlu0 %2852  ;;  %v3422_v9 = vsel %vm6547_vm8, %v7866_v26, 0.0 }
 0x26b   :  { %9310 = vst [vmem:[#allocation82_spill] sm:$0xff] %v7989_v52 }
 0x26c   :  { %v7978_v38 = vpop.eup %4750 }
 0x26d   :  { %9309 = vst [vmem:[#allocation54_spill] sm:$0xff] %v7978_v38  ;;  %v3202_v30 = vsel %vm2806_vm0, %v7978_v38, 0.0 }
 0x26e   :  { %3549 = vadd.xlane.f32.xlu0 %v3531_v60  ;;  %3227 = vadd.xlane.f32.xlu1 %v3202_v30  ;;  %v3532_v60 = vsel %vm6569_vm9, %v7799_v58, 0.0  ;;  %v3054_v30 = vadd.f32 %v3038_v2, %v2969_v19  ;;  %v8005_v29 = vpop.xlane.xlu0 %3020  ;;  %v3313_v2 = vsel %vm6433_vm7, %v7962_v32, 0.0  ;;  %v2970_v58 = vadd.f32 %v2954_v43, %v2869_v4 }
 0x26f   :  { %9312 = vst [vmem:[#allocation90_spill] sm:$0xff] %v8005_v29  ;;  %v3533_v43 = vsel %vm6569_vm9, %v7834_v33, 0.0 }
 0x270   :  { %v3055_v4 = vadd.f32 %v3039_v6, %v2970_v58  ;;  %v3040_v58 = vsel %vm6547_vm8, %v8005_v29, 0.0  ;;  %v2871_v29 = vsel %vm2806_vm0, %v7989_v52, 0.0 }
 0x272   :  { %3335 = vadd.xlane.f32.xlu0 %v3312_v31  ;;  %3443 = vadd.xlane.f32.xlu1 %v3422_v9  ;;  %v8021_v9 = vpop.xlane.xlu0 %2854 }
 0x273   :  { %9314 = vst [vmem:[#allocation93_spill] sm:$0xff] %v8021_v9 }
 0x274   :  { %v8013_v49 = vpop.xlane.xlu1 %3101 }
 0x275   :  { %9313 = vst [vmem:[#allocation34_spill] sm:$0xff] %v8013_v49  ;;  %v3123_v31 = vsel %vm6569_vm9, %v8013_v49, 0.0 }
 0x276   :  { %3551 = vadd.xlane.f32.xlu0 %v3532_v60  ;;  %v3139_v19 = vadd.f32 %v3123_v31, %v3054_v30  ;;  %v8029_v60 = vld [vmem:[%s8631_s3 + $0x50] sm:$0xff]  ;;  %v2955_v31 = vsel %vm6433_vm7, %v7997_v59, 0.0 }
 0x277   :  { %9315 = vst [vmem:[#allocation83_spill] sm:$0xff] %v8029_v60  ;;  %v2971_v6 = vadd.f32 %v2955_v31, %v2870_v40 }
 0x278   :  { %v3155_v61 = vsub.f32 %v8029_v60, %v3139_v19  ;;  %v8032_v49 = vpop.xlane.xlu1 %2937  ;;  %v8045_v19 = vpop.xlane.xlu0 %3022 }
 0x279   :  { %9316 = vst [vmem:[#allocation69_spill] sm:$0xff] %v8032_v49  ;;  %9318 = vst [vmem:[#allocation94_spill] sm:$0xff] %v8045_v19 }
 0x27a   :  { %3337 = vadd.xlane.f32.xlu0 %v3313_v2  ;;  %v3181_v30 = vmul.f32 1.442695, %v3155_v61  ;;  %v3314_v61 = vsel %vm6433_vm7, %v7978_v38, 0.0 }
 0x27c   :  { %4752 = vpow2.f32 %v3181_v30  ;;  %v8043_v41 = vpop.xlane.xlu1 %3103  ;;  %v8067_v31 = vpop.xlane.xlu0 %2856 }
 0x27d   :  { %9317 = vst [vmem:[#allocation23_spill] sm:$0xff] %v8043_v41  ;;  %v3124_v33 = vsel %vm6569_vm9, %v8043_v41, 0.0  ;;  %v3534_v41 = vsel %vm6569_vm9, %v7866_v26, 0.0  ;;  %9320 = vst [vmem:[#allocation41_spill] sm:$0xff] %v8067_v31 }
 0x27e   :  { %3553 = vadd.xlane.f32.xlu0 %v3533_v43  ;;  %v3140_v2 = vadd.f32 %v3124_v33, %v3055_v4  ;;  %v8059_v43 = vld [vmem:[%s8631_s3 + $0x58] sm:$0xff]  ;;  %v3056_v4 = vadd.f32 %v3040_v58, %v2971_v6  ;;  %v2956_v33 = vsel %vm6433_vm7, %v8032_v49, 0.0 }
 0x27f   :  { %v2972_v6 = vadd.f32 %v2956_v33, %v2871_v29  ;;  %v8097_v29 = vld [vmem:[%s8631_s3 + $0x60] sm:$0xff] }
 0x280   :  { %v3156_v30 = vsub.f32 %v8059_v43, %v3140_v2  ;;  %v8062_v59 = vpop.xlane.xlu1 %2939  ;;  %9322 = vst [vmem:[#allocation11_spill] sm:$0xff] %v8097_v29 }
 0x281   :  { %9319 = vst [vmem:[#allocation14_spill] sm:$0xff] %v8062_v59 }
 0x282   :  { %3339 = vadd.xlane.f32.xlu0 %v3314_v61  ;;  %v3183_v40 = vmul.f32 1.442695, %v3156_v30  ;;  %v2957_v30 = vsel %vm6433_vm7, %v8062_v59, 0.0 }
 0x284   :  { %4754 = vpow2.f32 %v3183_v40  ;;  %v8075_v2 = vpop.xlane.xlu1 %3105  ;;  %v3041_v40 = vsel %vm6547_vm8, %v8045_v19, 0.0 }
 0x285   :  { %9321 = vst [vmem:[#allocation63_spill] sm:$0xff] %v8075_v2  ;;  %v3125_v26 = vsel %vm6569_vm9, %v8075_v2, 0.0  ;;  %v3535_v2 = vsel %vm6569_vm9, %v7914_v55, 0.0  ;;  %v3057_v49 = vadd.f32 %v3041_v40, %v2972_v6  ;;  %v2873_v6 = vsel %vm2806_vm0, %v8067_v31, 0.0  ;;  %v8131_v40 = vld [vmem:[%s8631_s3 + $0x68] sm:$0xff] }
 0x286   :  { %3555 = vadd.xlane.f32.xlu0 %v3534_v41  ;;  %v8080_v61 = vpop.eup %4752  ;;  %v3141_v58 = vadd.f32 %v3125_v26, %v3056_v4  ;;  %v2872_v41 = vsel %vm2806_vm0, %v8021_v9, 0.0  ;;  %v8102_v26 = vpop.xlane.xlu0 %3024 }
 0x287   :  { %v3315_v34 = vsel %vm6433_vm7, %v8080_v61, 0.0  ;;  %9324 = vst [vmem:[#allocation39_spill] sm:$0xff] %v8102_v26  ;;  %v2973_v9 = vadd.f32 %v2957_v30, %v2872_v41  ;;  %v3042_v19 = vsel %vm6547_vm8, %v8102_v26, 0.0 }
 0x288   :  { %v3157_v4 = vsub.f32 %v8097_v29, %v3141_v58  ;;  %v8100_v33 = vpop.xlane.xlu1 %2941 }
 0x289   :  { %9323 = vst [vmem:[#allocation44_spill] sm:$0xff] %v8100_v33  ;;  %v2958_v58 = vsel %vm6433_vm7, %v8100_v33, 0.0 }
 0x28a   :  { %3341 = vadd.xlane.f32.xlu0 %v3315_v34  ;;  %v3185_v59 = vmul.f32 1.442695, %v3157_v4  ;;  %v8112_v34 = vpop.xlane.xlu0 %3026 }
 0x28b   :  { %9326 = vst [vmem:[#allocation35_spill] sm:$0xff] %v8112_v34 }
 0x28c   :  { %4756 = vpow2.f32 %v3185_v59  ;;  %v8110_v52 = vpop.xlane.xlu1 %3107 }
 0x28d   :  { %9325 = vst [vmem:[#allocation50_spill] sm:$0xff] %v8110_v52  ;;  %v3126_v4 = vsel %vm6569_vm9, %v8110_v52, 0.0  ;;  %v2974_v52 = vadd.f32 %v2958_v58, %v2873_v6  ;;  %v8150_v58 = vld [vmem:[%s8631_s3 + $0x70] sm:$0xff] }
 0x28e   :  { %3557 = vadd.xlane.f32.xlu0 %v3535_v2  ;;  %v8123_v30 = vpop.eup %4754  ;;  %v3142_v59 = vadd.f32 %v3126_v4, %v3057_v49  ;;  %v3058_v2 = vadd.f32 %v3042_v19, %v2973_v9  ;;  %v3536_v49 = vsel %vm6569_vm9, %v7938_v18, 0.0  ;;  %v3043_v19 = vsel %vm6547_vm8, %v8112_v34, 0.0  ;;  %v8145_v29 = vpop.xlane.xlu0 %3111  ;;  %9330 = vst [vmem:[#allocation30_spill] sm:$0xff] %v8150_v58 }
 0x28f   :  { %9327 = vst [vmem:[#allocation22_spill] sm:$0xff] %v8123_v30  ;;  %v3316_v41 = vsel %vm6433_vm7, %v8123_v30, 0.0  ;;  %9329 = vst [vmem:[#allocation78_spill] sm:$0xff] %v8145_v29 }
 0x290   :  { %v3158_v26 = vsub.f32 %v8131_v40, %v3142_v59  ;;  %v8134_v33 = vpop.xlane.xlu1 %3109  ;;  %v3059_v59 = vadd.f32 %v3043_v19, %v2974_v52  ;;  %v3642_v52 = vld [vmem:[%s8632_s4 + $0x8] sm:$0xff] }
 0x291   :  { %9328 = vst [vmem:[#allocation46_spill] sm:$0xff] %v8134_v33  ;;  %v3127_v9 = vsel %vm6569_vm9, %v8134_v33, 0.0 }
 0x292   :  { %3343 = vadd.xlane.f32.xlu0 %v3316_v41  ;;  %v3187_v4 = vmul.f32 1.442695, %v3158_v26  ;;  %v3143_v31 = vadd.f32 %v3127_v9, %v3058_v2  ;;  %v3128_v41 = vsel %vm6569_vm9, %v8145_v29, 0.0  ;;  %v3537_v9 = vsel %vm6569_vm9, %v7962_v32, 0.0 }
 0x294   :  { %4758 = vpow2.f32 %v3187_v4  ;;  %v3159_v6 = vsub.f32 %v8150_v58, %v3143_v31  ;;  %v3658_v31 = vmul.f32 %v7698_v63, %v3642_v52  ;;  %v3539_v63 = vsel %vm6569_vm9, %v8080_v61, 0.0  ;;  %v1294_v58 = vld [vmem:[#allocation2] sm:$0xff] }
 0x296   :  { %3559 = vadd.xlane.f32.xlu0 %v3536_v49  ;;  %v8156_v33 = vpop.eup %4756  ;;  %v3189_v2 = vmul.f32 1.442695, %v3159_v6  ;;  %v3144_v49 = vadd.f32 %v3128_v41, %v3059_v59  ;;  %v3538_v41 = vsel %vm6569_vm9, %v7978_v38, 0.0 }
 0x297   :  { %9331 = vst [vmem:[#allocation58_spill] sm:$0xff] %v8156_v33  ;;  %v3317_v26 = vsel %vm6433_vm7, %v8156_v33, 0.0  ;;  %v1296_v33 = vld [vmem:[#allocation2 + $0x10] sm:$0xff] }
 0x298   :  { %4760 = vpow2.f32 %v3189_v2  ;;  %v3160_v19 = vsub.f32 %v7428_v53, %v3144_v49 }
 0x29a   :  { %3345 = vadd.xlane.f32.xlu0 %v3317_v26  ;;  %v3191_v6 = vmul.f32 1.442695, %v3160_v19  ;;  %v3646_v19 = vld [vmem:[%s8632_s4 + $0x28] sm:$0xff] }
 0x29b   :  { %v3662_v10 = vmul.f32 %v7810_v56, %v3646_v19 }
 0x29c   :  { %4762 = vpow2.f32 %v3191_v6 }
 0x29e   :  { %3561 = vadd.xlane.f32.xlu0 %v3537_v9  ;;  %v8169_v4 = vpop.eup %4758  ;;  %v3540_v9 = vsel %vm6569_vm9, %v8123_v30, 0.0 }
 0x29f   :  { %9332 = vst [vmem:[#allocation29_spill] sm:$0xff] %v8169_v4  ;;  %v3318_v59 = vsel %vm6433_vm7, %v8169_v4, 0.0 }
 0x2a2   :  { %3675 = vadd.xlane.f32.xlu0 %v3658_v31  ;;  %v8177_v26 = vpop.eup %4760 }
 0x2a3   :  { %9333 = vst [vmem:[#allocation18_spill] sm:$0xff] %v8177_v26  ;;  %v3319_v53 = vsel %vm6433_vm7, %v8177_v26, 0.0  ;;  %v3431_v31 = vsel %vm6547_vm8, %v8177_v26, 0.0  ;;  %v3543_v19 = vsel %vm6569_vm9, %v8177_v26, 0.0 }
 0x2a6   :  { %3347 = vadd.xlane.f32.xlu0 %v3318_v59  ;;  %v8185_v2 = vpop.eup %4762 }
 0x2a7   :  { %9334 = vst [vmem:[#allocation32_spill] sm:$0xff] %v8185_v2  ;;  %v3320_v49 = vsel %vm6433_vm7, %v8185_v2, 0.0 }
 0x2aa   :  { %3563 = vadd.xlane.f32.xlu0 %v3538_v41 }
 0x2ae   :  { %3349 = vadd.xlane.f32.xlu0 %v3319_v53 }
 0x2af   :  { %v3210_v52 = vpop.xlane.xlu1 %3209 }
 0x2b0   :  { %4764 = vlog2.f32 %v3210_v52 }
 0x2b2   :  { %3565 = vadd.xlane.f32.xlu0 %v3539_v63  ;;  %v3542_v63 = vsel %vm6569_vm9, %v8169_v4, 0.0  ;;  %v1297_v4 = vld [vmem:[#allocation2 + $0x18] sm:$0xff] }
 0x2b6   :  { %3351 = vadd.xlane.f32.xlu0 %v3320_v49  ;;  %v1295_v49 = vld [vmem:[#allocation2 + $0x8] sm:$0xff] }
 0x2ba   :  { %3567 = vadd.xlane.f32.xlu0 %v3540_v9 }
 0x2bb   :  { %v3212_v6 = vpop.xlane.xlu0 %3211 }
 0x2bc   :  { %4766 = vlog2.f32 %v3212_v6 }
 0x2be   :  { %3461 = vadd.xlane.f32.xlu0 %v3431_v31 }
 0x2c0   :  { %v4331_v59 = vpop.f32.mrb[0].mxu0 }
 0x2c1   :  { %v2518_v41 = vpop.f32.mrb[1].mxu0 }
 0x2c2   :  { %3683 = vadd.xlane.f32.xlu0 %v3662_v10  ;;  %v4765_v10 = vpop.eup %4764 }
 0x2c3   :  { %v3214_v53 = vpop.xlane.xlu1 %3213  ;;  %v4163_v9 = vpop.f32.mrb[0].mxu1 }
 0x2c4   :  { %v4545_v29 = vadd.f32 %v4331_v59, %v4163_v9  ;;  %v4334_v34 = vpop.f32.mrb[2].mxu0  ;;  %v1908_v60 = vpop.f32.mrb[1].mxu1  ;;  %4768 = vlog2.f32 %v3214_v53 }
 0x2c5   :  { %v4546_v52 = vadd.f32 %v2518_v41, %v1908_v60  ;;  %v2530_v56 = vpop.f32.mrb[3].mxu0  ;;  %v3258_v60 = vmul.f32 0.6931472, %v4765_v10  ;;  %v1298_v10 = vld [vmem:[#allocation2 + $0x20] sm:$0xff] }
 0x2c6   :  { %3571 = vadd.xlane.f32.xlu0 %v3542_v63  ;;  %v2613_v6 = vadd.f32 %v4545_v29, %v1295_v49  ;;  %v3544_v29 = vsel %vm6569_vm9, %v8185_v2, 0.0  ;;  %v4767_v49 = vpop.eup %4766  ;;  %v1301_v2 = vld [vmem:[#allocation2 + $0x38] sm:$0xff] }
 0x2c7   :  { %v3322_v31 = vpop.xlane.xlu1 %3321  ;;  %v2612_v38 = vadd.f32 %v4546_v52, %v1294_v58  ;;  %v4166_v32 = vpop.f32.mrb[2].mxu1 }
 0x2c8   :  { %4770 = vlog2.f32 %v3322_v31  ;;  %2630 = vst.msk [vmem:[#allocation2 + $0x8] sm:$0xff] %vm28_vm10, %v2613_v6  ;;  %v4547_v59 = vadd.f32 %v4334_v34, %v4166_v32  ;;  %v4337_v9 = vpop.f32.mrb[4].mxu0  ;;  %v1922_v63 = vpop.f32.mrb[3].mxu1  ;;  %v1299_v31 = vld [vmem:[#allocation2 + $0x28] sm:$0xff] }
 0x2c9   :  { %2629 = vst.msk [vmem:[#allocation2] sm:$0xff] %vm28_vm10, %v2612_v38  ;;  %v4548_v41 = vadd.f32 %v2530_v56, %v1922_v63  ;;  %v2542_v53 = vpop.f32.mrb[5].mxu0  ;;  %v3289_v38 = vadd.f32 %v3258_v60, %v7523_v46 }
 0x2ca   :  { %3573 = vadd.xlane.f32.xlu0 %v3543_v19  ;;  %v2615_v58 = vadd.f32 %v4547_v59, %v1297_v4  ;;  %v3260_v4 = vmul.f32 0.6931472, %v4767_v49 }
 0x2cb   :  { %v3216_v18 = vpop.xlane.xlu0 %3215  ;;  %v2614_v52 = vadd.f32 %v4548_v41, %v1296_v33  ;;  %v4169_v32 = vpop.f32.mrb[4].mxu1  ;;  %v3353_v49 = vadd.f32 %v3289_v38, %v7538_v8 }
 0x2cc   :  { %4772 = vlog2.f32 %v3216_v18  ;;  %2632 = vst.msk [vmem:[#allocation2 + $0x18] sm:$0xff] %vm28_vm10, %v2615_v58  ;;  %v4549_v34 = vadd.f32 %v4337_v9, %v4169_v32  ;;  %v4340_v19 = vpop.f32.mrb[6].mxu0  ;;  %v1936_v6 = vpop.f32.mrb[5].mxu1  ;;  %v9335_v32 = vld [vmem:[#allocation67_spill] sm:$0xff] }
 0x2cd   :  { %2631 = vst.msk [vmem:[#allocation2 + $0x10] sm:$0xff] %vm28_vm10, %v2614_v52  ;;  %v4550_v56 = vadd.f32 %v2542_v53, %v1936_v6  ;;  %v2554_v63 = vpop.f32.mrb[7].mxu0  ;;  %v3290_v6 = vadd.f32 %v3260_v4, %v7632_v62  ;;  %v1302_v4 = vld [vmem:[#allocation2 + $0x40] sm:$0xff] }
 0x2ce   :  { %3575 = vadd.xlane.f32.xlu0 %v3544_v29  ;;  %v2617_v59 = vadd.f32 %v4549_v34, %v1299_v31  ;;  %v4769_v18 = vpop.eup %4768  ;;  %v1300_v29 = vld [vmem:[#allocation2 + $0x30] sm:$0xff] }
 0x2cf   :  { %v3324_v14 = vpop.xlane.xlu0 %3323  ;;  %v2649_v33 = vld [vmem:[#allocation2 + $0x8] sm:$0xff]  ;;  %v2616_v41 = vadd.f32 %v4550_v56, %v1298_v10  ;;  %v4172_v58 = vpop.f32.mrb[6].mxu1  ;;  %v3262_v56 = vmul.f32 0.6931472, %v4769_v18 }
 0x2d0   :  { %4774 = vlog2.f32 %v3324_v14  ;;  %v2713_v26 = vmul.f32 %v9335_v32, %v2649_v33  ;;  %v2648_v30 = vld [vmem:[#allocation2] sm:$0xff]  ;;  %2634 = vst.msk [vmem:[#allocation2 + $0x28] sm:$0xff] %vm28_vm10, %v2617_v59  ;;  %v4551_v46 = vadd.f32 %v4340_v19, %v4172_v58  ;;  %v4343_v60 = vpop.f32.mrb[8].mxu0  ;;  %v1950_v53 = vpop.f32.mrb[7].mxu1 }
 0x2d1   :  { %v2712_v52 = vmul.f32 %v7506_v39, %v2648_v30  ;;  %2633 = vst.msk [vmem:[#allocation2 + $0x20] sm:$0xff] %vm28_vm10, %v2616_v41  ;;  %v4552_v31 = vadd.f32 %v2554_v63, %v1950_v53  ;;  %v2566_v34 = vpop.f32.mrb[9].mxu0  ;;  %v1303_v39 = vld [vmem:[#allocation2 + $0x48] sm:$0xff]  ;;  %v3354_v53 = vadd.f32 %v3290_v6, %v7557_v15 }
 0x2d2   :  { %v4771_v9 = vpop.eup %4770  ;;  %v2619_v33 = vadd.f32 %v4551_v46, %v1301_v2  ;;  %v2745_v19 = vsel %vm28_vm10, %v2713_v26, 0.0 }
 0x2d3   :  { %v3370_v14 = vmul.f32 0.6931472, %v4771_v9  ;;  %v3218_v10 = vpop.xlane.xlu1 %3217  ;;  %v3326_v32 = vpop.xlane.xlu0 %3325  ;;  %v2651_v58 = vld [vmem:[#allocation2 + $0x18] sm:$0xff]  ;;  %v2618_v44 = vadd.f32 %v4552_v31, %v1300_v29  ;;  %v2744_v30 = vsel %vm28_vm10, %v2712_v52, 0.0  ;;  %v3650_v29 = vld [vmem:[%s8632_s4 + $0x48] sm:$0xff] }
 0x2d4   :  { %4776 = vlog2.f32 %v3326_v32  ;;  %v4175_v8 = vpop.f32.mrb[8].mxu1  ;;  %v2650_v38 = vld [vmem:[#allocation2 + $0x10] sm:$0xff]  ;;  %2636 = vst.msk [vmem:[#allocation2 + $0x38] sm:$0xff] %vm28_vm10, %v2619_v33  ;;  %v4346_v62 = vpop.f32.mrb[10].mxu0  ;;  %v2715_v18 = vmul.f32 %v7367_v0, %v2651_v58  ;;  %v3291_v0 = vadd.f32 %v3262_v56, %v7644_v21 }
 0x2d5   :  { %v8221_v59 = vadd.f32 %v3370_v14, %v3353_v49  ;;  %4778 = vlog2.f32 %v3218_v10  ;;  %v4553_v63 = vadd.f32 %v4343_v60, %v4175_v8  ;;  %v1964_v2 = vpop.f32.mrb[9].mxu1  ;;  %v2714_v41 = vmul.f32 %v7521_v37, %v2650_v38  ;;  %2635 = vst.msk [vmem:[#allocation2 + $0x30] sm:$0xff] %vm28_vm10, %v2618_v44  ;;  %v2578_v46 = vpop.f32.mrb[11].mxu0  ;;  %v1305_v37 = vld [vmem:[#allocation2 + $0x58] sm:$0xff]  ;;  %v1304_v44 = vld [vmem:[#allocation2 + $0x50] sm:$0xff] }
 0x2d6   :  { %v4773_v26 = vpop.eup %4772  ;;  %v4554_v9 = vadd.f32 %v2566_v34, %v1964_v2  ;;  %v2746_v49 = vadd.f32 %v2745_v19, %v2744_v30  ;;  %v3666_v14 = vmul.f32 %v7948_v20, %v3650_v29  ;;  %v2749_v20 = vsel %vm28_vm10, %v2715_v18, 0.0  ;;  %v1307_v29 = vld [vmem:[#allocation2 + $0x68] sm:$0xff] }
 0x2d7   :  { %v2621_v52 = vadd.f32 %v4553_v63, %v1303_v39  ;;  %v3328_v60 = vpop.xlane.xlu0 %3327  ;;  %v4178_v10 = vpop.f32.mrb[10].mxu1  ;;  %v2653_v34 = vld [vmem:[#allocation2 + $0x28] sm:$0xff]  ;;  %v2747_v33 = vsel %vm28_vm10, %v2714_v41, 0.0  ;;  %v3264_v58 = vmul.f32 0.6931472, %v4773_v26 }
 0x2d8   :  { %v2620_v31 = vadd.f32 %v4554_v9, %v1302_v4  ;;  %4780 = vlog2.f32 %v3328_v60  ;;  %v4555_v15 = vadd.f32 %v4346_v62, %v4178_v10  ;;  %v4349_v6 = vpop.f32.mrb[12].mxu0  ;;  %v1978_v39 = vpop.f32.mrb[11].mxu1  ;;  %v2652_v19 = vld [vmem:[#allocation2 + $0x20] sm:$0xff]  ;;  %v2748_v8 = vadd.f32 %v2747_v33, %v2746_v49  ;;  %3691 = vadd.xlane.f32.xlu0 %v3666_v14 }
 0x2d9   :  { %2638 = vst.msk [vmem:[#allocation2 + $0x48] sm:$0xff] %vm28_vm10, %v2621_v52  ;;  %v4556_v56 = vadd.f32 %v2578_v46, %v1978_v39  ;;  %v2590_v30 = vpop.f32.mrb[13].mxu0  ;;  %v2716_v63 = vmul.f32 %v7536_v5, %v2652_v19  ;;  %v2717_v4 = vmul.f32 %v7398_v45, %v2653_v34  ;;  %v3292_v46 = vadd.f32 %v3264_v58, %v7667_v42  ;;  %v1306_v14 = vld [vmem:[#allocation2 + $0x60] sm:$0xff] }
 0x2da   :  { %v4775_v32 = vpop.eup %4774  ;;  %2637 = vst.msk [vmem:[#allocation2 + $0x40] sm:$0xff] %vm28_vm10, %v2620_v31  ;;  %v2623_v2 = vadd.f32 %v4555_v15, %v1305_v37  ;;  %v2750_v62 = vadd.f32 %v2749_v20, %v2748_v8  ;;  %v3355_v49 = vadd.f32 %v3291_v0, %v7576_v27  ;;  %v1309_v8 = vld [vmem:[#allocation2 + $0x78] sm:$0xff] }
 0x2db   :  { %v3372_v21 = vmul.f32 0.6931472, %v4775_v32  ;;  %v3220_v38 = vpop.xlane.xlu1 %3219  ;;  %v3436_v26 = vpop.xlane.xlu0 %3435  ;;  %v2622_v9 = vadd.f32 %v4556_v56, %v1304_v44  ;;  %v2655_v52 = vld [vmem:[#allocation2 + $0x38] sm:$0xff]  ;;  %v2751_v60 = vsel %vm28_vm10, %v2716_v63, 0.0  ;;  %v2753_v27 = vsel %vm28_vm10, %v2717_v4, 0.0 }
 0x2dc   :  { %4782 = vlog2.f32 %v3436_v26  ;;  %v4181_v18 = vpop.f32.mrb[12].mxu1  ;;  %2640 = vst.msk [vmem:[#allocation2 + $0x58] sm:$0xff] %vm28_vm10, %v2623_v2  ;;  %v4352_v45 = vpop.f32.mrb[14].mxu0  ;;  %v2654_v37 = vld [vmem:[#allocation2 + $0x30] sm:$0xff]  ;;  %v2719_v42 = vmul.f32 %v7433_v57, %v2655_v52 }
 0x2dd   :  { %v8240_v41 = vadd.f32 %v3372_v21, %v3354_v53  ;;  %v4557_v5 = vadd.f32 %v4349_v6, %v4181_v18  ;;  %v1992_v31 = vpop.f32.mrb[13].mxu1  ;;  %v2752_v53 = vadd.f32 %v2751_v60, %v2750_v62  ;;  %2639 = vst.msk [vmem:[#allocation2 + $0x50] sm:$0xff] %vm28_vm10, %v2622_v9  ;;  %v2602_v34 = vpop.f32.mrb[15].mxu0  ;;  %v2718_v32 = vmul.f32 %v7555_v24, %v2654_v37  ;;  %v1308_v24 = vld [vmem:[#allocation2 + $0x70] sm:$0xff] }
 0x2de   :  { %v4777_v10 = vpop.eup %4776  ;;  %v4558_v44 = vadd.f32 %v2590_v30, %v1992_v31  ;;  %v3356_v9 = vadd.f32 %v3292_v46, %v7606_v23 }
 0x2df   :  { %v3434_v33 = vpop.xlane.xlu1 %3433  ;;  %v4779_v0 = vpop.eup %4778  ;;  %v3374_v58 = vmul.f32 0.6931472, %v4777_v10  ;;  %v2625_v15 = vadd.f32 %v4557_v5, %v1307_v29  ;;  %v2754_v39 = vadd.f32 %v2753_v27, %v2752_v53  ;;  %v2755_v56 = vsel %vm28_vm10, %v2718_v32, 0.0 }
 0x2e0   :  { %4784 = vlog2.f32 %v3434_v33  ;;  %v3330_v6 = vpop.xlane.xlu0 %3329  ;;  %v2624_v19 = vadd.f32 %v4558_v44, %v1306_v14  ;;  %v4184_v20 = vpop.f32.mrb[14].mxu1  ;;  %v2657_v21 = vld [vmem:[#allocation2 + $0x48] sm:$0xff]  ;;  %v3266_v62 = vmul.f32 0.6931472, %v4779_v0  ;;  %v2757_v5 = vsel %vm28_vm10, %v2719_v42, 0.0  ;;  %v3652_v33 = vld [vmem:[%s8632_s4 + $0x58] sm:$0xff] }
 0x2e1   :  { %4786 = vlog2.f32 %v3330_v6  ;;  %v8251_v30 = vadd.f32 %v3374_v58, %v3355_v49  ;;  %2642 = vst.msk [vmem:[#allocation2 + $0x68] sm:$0xff] %vm28_vm10, %v2625_v15  ;;  %v4559_v57 = vadd.f32 %v4352_v45, %v4184_v20  ;;  %v2006_v63 = vpop.f32.mrb[15].mxu1  ;;  %v2656_v4 = vld [vmem:[#allocation2 + $0x40] sm:$0xff]  ;;  %v2756_v2 = vadd.f32 %v2755_v56, %v2754_v39 }
 0x2e2   :  { %4788 = vlog2.f32 %v3220_v38  ;;  %v4781_v26 = vpop.eup %4780  ;;  %2641 = vst.msk [vmem:[#allocation2 + $0x60] sm:$0xff] %vm28_vm10, %v2624_v19  ;;  %v4560_v29 = vadd.f32 %v2602_v34, %v2006_v63  ;;  %v2720_v52 = vmul.f32 %v7574_v16, %v2656_v4  ;;  %v2721_v38 = vmul.f32 %v7460_v1, %v2657_v21 }
 0x2e3   :  { %v3222_v18 = vpop.xlane.xlu1 %3221  ;;  %v3376_v60 = vmul.f32 0.6931472, %v4781_v26  ;;  %v2627_v49 = vadd.f32 %v4559_v57, %v1309_v8  ;;  %v2659_v14 = vld [vmem:[#allocation2 + $0x58] sm:$0xff]  ;;  %v2758_v31 = vadd.f32 %v2757_v5, %v2756_v2  ;;  %v3293_v10 = vadd.f32 %v3266_v62, %v7629_v25 }
 0x2e4   :  { %v2626_v45 = vadd.f32 %v4560_v29, %v1308_v24  ;;  %v2759_v37 = vsel %vm28_vm10, %v2720_v52, 0.0  ;;  %v2658_v23 = vld [vmem:[#allocation2 + $0x50] sm:$0xff]  ;;  %v3466_v16 = vadd.f32 %v8240_v41, %v7591_v51  ;;  %v2723_v42 = vmul.f32 %v7477_v3, %v2659_v14 }
 0x2e5   :  { %v8260_v53 = vadd.f32 %v3376_v60, %v3356_v9  ;;  %2644 = vst.msk [vmem:[#allocation2 + $0x78] sm:$0xff] %vm28_vm10, %v2627_v49  ;;  %v2722_v44 = vmul.f32 %v7589_v36, %v2658_v23  ;;  %v2760_v34 = vadd.f32 %v2759_v37, %v2758_v31  ;;  %v2761_v27 = vsel %vm28_vm10, %v2721_v38, 0.0 }
 0x2e6   :  { %v4783_v46 = vpop.eup %4782  ;;  %2643 = vst.msk [vmem:[#allocation2 + $0x70] sm:$0xff] %vm28_vm10, %v2626_v45  ;;  %v3668_v41 = vmul.f32 %v8059_v43, %v3652_v33  ;;  %v3465_v36 = vadd.f32 %v8221_v59, %v7651_v13  ;;  %v3357_v8 = vadd.f32 %v3293_v10, %v7701_v47  ;;  %v2765_v63 = vsel %vm28_vm10, %v2723_v42, 0.0 }
 0x2e7   :  { %v3438_v1 = vpop.xlane.xlu1 %3437  ;;  %v3484_v32 = vmul.f32 0.6931472, %v4783_v46  ;;  %v2762_v0 = vadd.f32 %v2761_v27, %v2760_v34  ;;  %v2763_v51 = vsel %vm28_vm10, %v2722_v44, 0.0 }
 0x2e8   :  { %4790 = vlog2.f32 %v3438_v1  ;;  %v2661_v25 = vld [vmem:[#allocation2 + $0x68] sm:$0xff]  ;;  %3695 = vadd.xlane.f32.xlu0 %v3668_v41 }
 0x2e9   :  { %v8275_v15 = vadd.f32 %v3484_v32, %v3466_v16  ;;  %v2660_v6 = vld [vmem:[#allocation2 + $0x60] sm:$0xff]  ;;  %v2764_v56 = vadd.f32 %v2763_v51, %v2762_v0  ;;  %v2725_v43 = vmul.f32 %v7493_v35, %v2661_v25 }
 0x2ea   :  { %v4785_v58 = vpop.eup %4784  ;;  %v2724_v21 = vmul.f32 %v7601_v50, %v2660_v6 }
 0x2eb   :  { %v4787_v39 = vpop.eup %4786  ;;  %v3482_v19 = vmul.f32 0.6931472, %v4785_v58  ;;  %v3332_v3 = vpop.xlane.xlu1 %3331  ;;  %v2766_v59 = vadd.f32 %v2765_v63, %v2764_v56  ;;  %v2769_v60 = vsel %vm28_vm10, %v2725_v43, 0.0 }
 0x2ec   :  { %v3224_v20 = vpop.xlane.xlu0 %3223  ;;  %v4789_v57 = vpop.eup %4788  ;;  %v3378_v24 = vmul.f32 0.6931472, %v4787_v39  ;;  %4792 = vlog2.f32 %v3332_v3  ;;  %v2663_v13 = vld [vmem:[#allocation2 + $0x78] sm:$0xff]  ;;  %v2767_v2 = vsel %vm28_vm10, %v2724_v21, 0.0  ;;  %v9336_v3 = vld [vmem:[#allocation12_spill] sm:$0xff] }
 0x2ed   :  { %v3513_v4 = vadd.f32 %v3482_v19, %v3465_v36  ;;  %4794 = vlog2.f32 %v3222_v18  ;;  %v2662_v47 = vld [vmem:[#allocation2 + $0x70] sm:$0xff]  ;;  %v3268_v62 = vmul.f32 0.6931472, %v4789_v57  ;;  %v2768_v52 = vadd.f32 %v2767_v2, %v2766_v59 }
 0x2ee   :  { %v8284_v26 = vadd.f32 %v3378_v24, %v3357_v8  ;;  %v2726_v29 = vmul.f32 %v7618_v12, %v2662_v47  ;;  %v2727_v35 = vmul.f32 %v7508_v7, %v2663_v13  ;;  %v3467_v18 = vadd.f32 %v8251_v30, %v7675_v11  ;;  %v3654_v11 = vld [vmem:[%s8632_s4 + $0x68] sm:$0xff]  ;;  %v9337_v24 = vld [vmem:[#allocation53_spill] sm:$0xff]  ;;  %v9338_v13 = vld [vmem:[#allocation15_spill] sm:$0xff] }
 0x2ef   :  { %v3546_v50 = vpop.xlane.xlu1 %3545  ;;  %v2770_v49 = vadd.f32 %v2769_v60, %v2768_v52  ;;  %v3294_v45 = vadd.f32 %v3268_v62, %v7659_v54  ;;  %v3670_v33 = vmul.f32 %v8131_v40, %v3654_v11  ;;  %v3577_v58 = vadd.f32 %v3513_v4, %v7620_v17  ;;  %v9339_v47 = vld [vmem:[#allocation38_spill] sm:$0xff] }
 0x2f0   :  { %v3440_v9 = vpop.xlane.xlu0 %3439  ;;  %4796 = vlog2.f32 %v3546_v50  ;;  %v2771_v38 = vsel %vm28_vm10, %v2726_v29, 0.0  ;;  %v2773_v23 = vsel %vm28_vm10, %v2727_v35, 0.0  ;;  %v3468_v36 = vadd.f32 %v8260_v53, %v7646_v28  ;;  %v4918_v52 = vld [vmem:[%s8631_s3 + $0x78] sm:$0xff] }
 0x2f1   :  { %4798 = vlog2.f32 %v3440_v9  ;;  %v2772_v37 = vadd.f32 %v2771_v38, %v2770_v49  ;;  %v3358_v16 = vadd.f32 %v3294_v45, %v7727_v48  ;;  %3699 = vadd.xlane.f32.xlu0 %v3670_v33  ;;  %v3578_v43 = vadd.f32 %v8275_v15, %v9337_v24  ;;  %v3656_v9 = vld [vmem:[%s8632_s4 + $0x78] sm:$0xff]  ;;  %v9340_v38 = vld [vmem:[#allocation51_spill] sm:$0xff] }
 0x2f2   :  { %v4791_v5 = vpop.eup %4790  ;;  %v3469_v59 = vadd.f32 %v8284_v26, %v9338_v13  ;;  %v3672_v35 = vmul.f32 %v4918_v52, %v3656_v9  ;;  %v3423_v33 = vsel %vm6547_vm8, %v7914_v55, 0.0  ;;  %v4923_v52 = vld [vmem:[%s8631_s3 + $0x30] sm:$0xff] }
 0x2f3   :  { %v3486_v14 = vmul.f32 0.6931472, %v4791_v5  ;;  %v8293_v31 = vpop.xlane.xlu1 %3225  ;;  %v2774_v46 = vadd.f32 %v2773_v23, %v2772_v37  ;;  %v9342_v23 = vld [vmem:[#allocation86_spill] sm:$0xff] }
 0x2f4   :  { %v3548_v12 = vpop.xlane.xlu0 %3547 }
 0x2f5   :  { %v3515_v7 = vadd.f32 %v3486_v14, %v3467_v18  ;;  %4800 = vlog2.f32 %v3548_v12  ;;  %v2775_v34 = vrot.slane %v2774_v46, 4  ;;  %3703 = vadd.xlane.f32.xlu0 %v3672_v35  ;;  %v9341_v18 = vld [vmem:[#allocation49_spill] sm:$0xff] }
 0x2f6   :  { %v4793_v10 = vpop.eup %4792  ;;  %4802 = vlog2.f32 %v3224_v20 }
 0x2f7   :  { %v3380_v1 = vmul.f32 0.6931472, %v4793_v10  ;;  %v3442_v44 = vpop.xlane.xlu1 %3441  ;;  %v4795_v30 = vpop.eup %4794  ;;  %v2776_v42 = vadd.f32 %v2775_v34, %v2774_v46  ;;  %v3579_v14 = vadd.f32 %v3515_v7, %v9341_v18  ;;  %v3649_v18 = vld [vmem:[%s8632_s4 + $0x40] sm:$0xff]  ;;  %v3655_v7 = vld [vmem:[%s8632_s4 + $0x70] sm:$0xff] }
 0x2f8   :  { %v3334_v54 = vpop.xlane.xlu0 %3333  ;;  %4804 = vlog2.f32 %v3442_v44  ;;  %v3270_v25 = vmul.f32 0.6931472, %v4795_v30  ;;  %v3203_v30 = vsel %vm2806_vm0, %v8080_v61, 0.0 }
 0x2f9   :  { %v8301_v32 = vadd.f32 %v3380_v1, %v3358_v16  ;;  %4806 = vlog2.f32 %v3334_v54  ;;  %v2777_v41 = vrot.slane %v2776_v42, 2  ;;  %v9343_v54 = vld [vmem:[#allocation77_spill] sm:$0xff] }
 0x2fa   :  { %v4797_v27 = vpop.eup %4796  ;;  %v3295_v20 = vadd.f32 %v3270_v25, %v9336_v3  ;;  %v3641_v3 = vld [vmem:[%s8632_s4] sm:$0xff] }
 0x2fb   :  { %v4799_v48 = vpop.eup %4798  ;;  %v3594_v0 = vmul.f32 0.6931472, %v4797_v27  ;;  %v2778_v39 = vadd.f32 %v2777_v41, %v2776_v42  ;;  %v9345_v42 = vld [vmem:[#allocation22_spill] sm:$0xff]  ;;  %v9348_v41 = vld [vmem:[#allocation36_spill] sm:$0xff] }
 0x2fc   :  { %v3550_v51 = vpop.xlane.xlu0 %3549  ;;  %v3488_v6 = vmul.f32 0.6931472, %v4799_v48  ;;  %v3359_v62 = vadd.f32 %v3295_v20, %v9339_v47  ;;  %v3204_v27 = vsel %vm2806_vm0, %v9345_v42, 0.0  ;;  %v9346_v48 = vld [vmem:[#allocation92_spill] sm:$0xff]  ;;  %v3425_v55 = vsel %vm6547_vm8, %v9348_v41, 0.0  ;;  %v4922_v47 = vld [vmem:[%s8631_s3 + $0x20] sm:$0xff] }
 0x2fd   :  { %4808 = vlog2.f32 %v3550_v51  ;;  %v8306_v40 = vadd.f32 %v3594_v0, %v3577_v58  ;;  %v2779_v56 = vrot.slane %v2778_v39, 1  ;;  %v3424_v25 = vsel %vm6547_vm8, %v9346_v48, 0.0  ;;  %v9347_v0 = vld [vmem:[#allocation58_spill] sm:$0xff]  ;;  %v9349_v58 = vld [vmem:[#allocation29_spill] sm:$0xff] }
 0x2fe   :  { %v3516_v19 = vadd.f32 %v3488_v6, %v3468_v36  ;;  %v3205_v51 = vsel %vm2806_vm0, %v9347_v0, 0.0  ;;  %v3206_v36 = vsel %vm2806_vm0, %v9349_v58, 0.0  ;;  %v9350_v6 = vld [vmem:[#allocation54_spill] sm:$0xff]  ;;  %v3427_v20 = vsel %vm6547_vm8, %v8080_v61, 0.0 }
 0x2ff   :  { %v4801_v8 = vpop.eup %4800  ;;  %v2780_v17 = vadd.f32 %v2779_v56, %v2778_v39  ;;  %v3426_v39 = vsel %vm6547_vm8, %v9350_v6, 0.0  ;;  %v3428_v61 = vsel %vm6547_vm8, %v9345_v42, 0.0  ;;  %v3541_v9 = vsel %vm6569_vm9, %v9347_v0, 0.0 }
 0x300   :  { %v3336_v21 = vpop.xlane.xlu0 %3335  ;;  %v3596_v57 = vmul.f32 0.6931472, %v4801_v8  ;;  %v4803_v63 = vpop.eup %4802  ;;  %v3580_v34 = vadd.f32 %v3516_v19, %v9343_v54  ;;  %v9351_v19 = vld [vmem:[#allocation18_spill] sm:$0xff]  ;;  %v5000_v41 = vmov 8  }
 0x301   :  { %4810 = vlog2.f32 %v3336_v21  ;;  %2783 = vperm.xlu1 %4665, %v2780_v17   ;;  %v3272_v15 = vmul.f32 0.6931472, %v4803_v63  ;;  %v3207_v8 = vsel %vm2806_vm0, %v9351_v19, 0.0  ;;  %v4919_v21 = vld [vmem:[%s8631_s3] sm:$0xff]  ;;  %v4920_v63 = vld [vmem:[%s8631_s3 + $0x10] sm:$0xff]  ;;  %4667 = vset.pattern.permute.xlu0 %v5000_v41 }
 0x302   :  { %v4805_v4 = vpop.eup %4804  ;;  %v8311_v28 = vadd.f32 %v3596_v57, %v3578_v43  ;;  %v3657_v56 = vmul.f32 %v4919_v21, %v3641_v3  ;;  %v9352_v57 = vld [vmem:[#allocation32_spill] sm:$0xff]  ;;  %v3643_v43 = vld [vmem:[%s8632_s4 + $0x10] sm:$0xff] }
 0x303   :  { %v4807_v53 = vpop.eup %4806  ;;  %v3490_v2 = vmul.f32 0.6931472, %v4805_v4  ;;  %v3296_v5 = vadd.f32 %v3272_v15, %v9340_v38  ;;  %v3208_v24 = vsel %vm2806_vm0, %v9352_v57, 0.0  ;;  %v3659_v17 = vmul.f32 %v4920_v63, %v3643_v43  ;;  %v3647_v15 = vld [vmem:[%s8632_s4 + $0x30] sm:$0xff]  ;;  %v4924_v38 = vld [vmem:[%s8631_s3 + $0x38] sm:$0xff] }
 0x304   :  { %v3552_v50 = vpop.xlane.xlu0 %3551  ;;  %v3382_v29 = vmul.f32 0.6931472, %v4807_v53  ;;  %v3429_v4 = vsel %vm6547_vm8, %v9347_v0, 0.0  ;;  %v4921_v53 = vld [vmem:[%s8631_s3 + $0x18] sm:$0xff]  ;;  %v3663_v35 = vmul.f32 %v4923_v52, %v3647_v15 }
 0x305   :  { %4812 = vlog2.f32 %v3552_v50  ;;  %v8322_v60 = vadd.f32 %v3490_v2, %v3469_v59  ;;  %v3360_v46 = vadd.f32 %v3296_v5, %v9342_v23  ;;  %v3660_v13 = vmul.f32 %v4921_v53, %v3644_v22  ;;  %v3645_v59 = vld [vmem:[%s8632_s4 + $0x20] sm:$0xff]  ;;  %v3651_v23 = vld [vmem:[%s8632_s4 + $0x50] sm:$0xff]  ;;  %4666 = vset.pattern.permute.xlu1 %v5000_v41 }
 0x306   :  { %v8324_v26 = vadd.f32 %v3382_v29, %v3359_v62  ;;  %v3430_v2 = vsel %vm6547_vm8, %v9349_v58, 0.0  ;;  %v3661_v62 = vmul.f32 %v4922_v47, %v3645_v59  ;;  %v3432_v29 = vsel %vm6547_vm8, %v9352_v57, 0.0  ;;  %v4928_v41 = vld [vmem:[%s8628_s0 + $0x10] sm:$0xff] }
 0x307   :  { %v4809_v49 = vpop.eup %4808  ;;  %4814 = vlog2.f32 %v8293_v31  ;;  %v4927_v31 = vld [vmem:[%s8628_s0] sm:$0xff] }
 0x308   :  { %v3598_v45 = vmul.f32 0.6931472, %v4809_v49  ;;  %v3648_v49 = vld [vmem:[%s8632_s4 + $0x38] sm:$0xff] }
 0x309   :  { %v3664_v5 = vmul.f32 %v4924_v38, %v3648_v49 }
 0x30a   :  { %v8328_v12 = vadd.f32 %v3598_v45, %v3579_v14  ;;  %v3228_v45 = vpop.xlane.xlu1 %3227  ;;  %v4925_v14 = vld [vmem:[%s8631_s3 + $0x40] sm:$0xff] }
 0x30b   :  { %v4811_v37 = vpop.eup %4810  ;;  %4816 = vlog2.f32 %v3228_v45 }
 0x30c   :  { %v3384_v10 = vmul.f32 0.6931472, %v4811_v37  ;;  %v3665_v37 = vmul.f32 %v4925_v14, %v3649_v18 }
 0x30e   :  { %v8331_v1 = vadd.f32 %v3384_v10, %v3360_v46  ;;  %v3444_v46 = vpop.xlane.xlu1 %3443  ;;  %v9354_v10 = vld [vmem:[#allocation83_spill] sm:$0xff] }
 0x30f   :  { %v4813_v16 = vpop.eup %4812  ;;  %4818 = vlog2.f32 %v3444_v46  ;;  %v9357_v46 = vld [vmem:[#allocation70_spill] sm:$0xff] }
 0x310   :  { %v3600_v44 = vmul.f32 0.6931472, %v4813_v16  ;;  %v3667_v16 = vmul.f32 %v9354_v10, %v3651_v23 }
 0x312   :  { %v8334_v11 = vadd.f32 %v3600_v44, %v3580_v34  ;;  %v3653_v44 = vld [vmem:[%s8632_s4 + $0x60] sm:$0xff] }
 0x313   :  { %v9355_v34 = vld [vmem:[#allocation11_spill] sm:$0xff] }
 0x325   :  { %3229 = vadd.xlane.f32.xlu1 %v3203_v30  ;;  %v3669_v30 = vmul.f32 %v9355_v34, %v3653_v44  ;;  %v9358_v34 = vld [vmem:[#allocation57_spill] sm:$0xff] }
 0x329   :  { %3445 = vadd.xlane.f32.xlu1 %v3423_v33  ;;  %v9356_v33 = vld [vmem:[#allocation30_spill] sm:$0xff] }
 0x32a   :  { %v3671_v42 = vmul.f32 %v9356_v33, %v3655_v7 }
 0x32d   :  { %3231 = vadd.xlane.f32.xlu1 %v3204_v27  ;;  %v3338_v27 = vpop.xlane.xlu0 %3337 }
 0x32e   :  { %4820 = vlog2.f32 %v3338_v27 }
 0x331   :  { %3447 = vadd.xlane.f32.xlu1 %v3424_v25  ;;  %v3554_v48 = vpop.xlane.xlu0 %3553 }
 0x332   :  { %4822 = vlog2.f32 %v3554_v48 }
 0x335   :  { %3233 = vadd.xlane.f32.xlu1 %v3205_v51  ;;  %v3340_v25 = vpop.xlane.xlu0 %3339 }
 0x336   :  { %4824 = vlog2.f32 %v3340_v25  ;;  %v9359_v25 = vld [vmem:[#allocation64_spill] sm:$0xff] }
 0x339   :  { %3449 = vadd.xlane.f32.xlu1 %v3425_v55  ;;  %v3556_v0 = vpop.xlane.xlu0 %3555 }
 0x33a   :  { %4826 = vlog2.f32 %v3556_v0  ;;  %v3470_v0 = vadd.f32 %v8301_v32, %v9359_v25 }
 0x33d   :  { %3235 = vadd.xlane.f32.xlu1 %v3206_v36  ;;  %v3342_v51 = vpop.xlane.xlu0 %3341 }
 0x33e   :  { %4828 = vlog2.f32 %v3342_v51 }
 0x341   :  { %3451 = vadd.xlane.f32.xlu1 %v3426_v39  ;;  %v3558_v55 = vpop.xlane.xlu0 %3557 }
 0x342   :  { %4830 = vlog2.f32 %v3558_v55 }
 0x345   :  { %3237 = vadd.xlane.f32.xlu1 %v3207_v8  ;;  %v3344_v58 = vpop.xlane.xlu0 %3343 }
 0x346   :  { %4832 = vlog2.f32 %v3344_v58 }
 0x349   :  { %3453 = vadd.xlane.f32.xlu1 %v3427_v20  ;;  %v3560_v36 = vpop.xlane.xlu0 %3559 }
 0x34a   :  { %4834 = vlog2.f32 %v3560_v36  ;;  %v9360_v36 = vld [vmem:[#allocation91_spill] sm:$0xff] }
 0x34d   :  { %3673 = vadd.xlane.f32.xlu1 %v3657_v56  ;;  %v3346_v39 = vpop.xlane.xlu0 %3345 }
 0x351   :  { %3239 = vadd.xlane.f32.xlu1 %v3208_v24  ;;  %v8438_v3 = vpop.xlane.xlu0 %3561 }
 0x355   :  { %3455 = vadd.xlane.f32.xlu1 %v3428_v61  ;;  %v3676_v21 = vpop.xlane.xlu0 %3675 }
 0x356   :  { %v3706_v53 = vsub.f32 %v8311_v28, %v3676_v21 }
 0x359   :  { %3677 = vadd.xlane.f32.xlu1 %v3659_v17  ;;  %v3348_v24 = vpop.xlane.xlu0 %3347 }
 0x35d   :  { %3457 = vadd.xlane.f32.xlu1 %v3429_v4  ;;  %v3564_v61 = vpop.xlane.xlu0 %3563 }
 0x361   :  { %3679 = vadd.xlane.f32.xlu1 %v3660_v13  ;;  %v8448_v22 = vpop.xlane.xlu0 %3349 }
 0x365   :  { %3459 = vadd.xlane.f32.xlu1 %v3430_v2  ;;  %v8454_v13 = vpop.xlane.xlu0 %3565  ;;  %v4926_v2 = vld [vmem:[%s8628_s0 + $0x8] sm:$0xff] }
 0x366   :  { %v3722_v47 = vmul.f32 %v4926_v2, %v3706_v53 }
 0x368   :  { %v3755_v15 = vsel %vm3753_vm11, %v3722_v47, 0.0 }
 0x369   :  { %3681 = vadd.xlane.f32.xlu1 %v3661_v62 }
 0x36d   :  { %3569 = vadd.xlane.f32.xlu1 %v3541_v9  ;;  %v4815_v9 = vpop.eup %4814 }
 0x36e   :  { %v4817_v52 = vpop.eup %4816  ;;  %v3274_v38 = vmul.f32 0.6931472, %v4815_v9  ;;  %v9363_v9 = vld [vmem:[#allocation89_spill] sm:$0xff] }
 0x36f   :  { %v4819_v49 = vpop.eup %4818  ;;  %v3276_v18 = vmul.f32 0.6931472, %v4817_v52 }
 0x370   :  { %v4821_v45 = vpop.eup %4820  ;;  %v3297_v10 = vadd.f32 %v3274_v38, %v9357_v46  ;;  %v3492_v7 = vmul.f32 0.6931472, %v4819_v49  ;;  %v9365_v38 = vld [vmem:[#allocation33_spill] sm:$0xff] }
 0x371   :  { %3463 = vadd.xlane.f32.xlu1 %v3432_v29  ;;  %v4823_v14 = vpop.eup %4822  ;;  %v3386_v27 = vmul.f32 0.6931472, %v4821_v45 }
 0x375   :  { %3685 = vadd.xlane.f32.xlu1 %v3663_v35  ;;  %v8465_v35 = vpop.xlane.xlu0 %3351 }
 0x379   :  { %3687 = vadd.xlane.f32.xlu1 %v3664_v5 }
 0x37d   :  { %3689 = vadd.xlane.f32.xlu1 %v3665_v37  ;;  %v4825_v37 = vpop.eup %4824 }
 0x37e   :  { %v4827_v23 = vpop.eup %4826  ;;  %v3388_v51 = vmul.f32 0.6931472, %v4825_v37  ;;  %v9367_v37 = vld [vmem:[#allocation74_spill] sm:$0xff] }
 0x37f   :  { %v3604_v2 = vmul.f32 0.6931472, %v4827_v23 }
 0x380   :  { %v2784_v54 = vpop.permute.xlu1 %2783 }
 0x381   :  { %2786 = vst [vmem:[#allocation3] sm:$0xff] %v2784_v54  ;;  %3693 = vadd.xlane.f32.xlu1 %v3667_v16  ;;  %v8468_v16 = vpop.xlane.xlu0 %3567  ;;  %v4829_v54 = vpop.eup %4828 }
 0x385   :  { %3697 = vadd.xlane.f32.xlu1 %v3669_v30  ;;  %v3298_v30 = vadd.f32 %v3276_v18, %v9358_v34 }
 0x389   :  { %3701 = vadd.xlane.f32.xlu1 %v3671_v42  ;;  %v4831_v42 = vpop.eup %4830 }
 0x38a   :  { %v4833_v48 = vpop.eup %4832 }
 0x38b   :  { %v4835_v58 = vpop.eup %4834  ;;  %v3392_v25 = vmul.f32 0.6931472, %v4833_v48 }
 0x3b2   :  { %v3230_v6 = vpop.xlane.xlu1 %3229 }
 0x3b6   :  { %v3446_v19 = vpop.xlane.xlu1 %3445 }
 0x3ba   :  { %v3232_v8 = vpop.xlane.xlu1 %3231 }
 0x3bb   :  { %4836 = vlog2.f32 %v3232_v8  ;;  %v9361_v8 = vld [vmem:[#allocation81_spill] sm:$0xff] }
 0x3bc   :  { %4838 = vlog2.f32 %v3346_v39 }
 0x3bd   :  { %4840 = vlog2.f32 %v3348_v24  ;;  %v3602_v24 = vmul.f32 0.6931472, %v4823_v14 }
 0x3be   :  { %v3448_v20 = vpop.xlane.xlu1 %3447  ;;  %4842 = vlog2.f32 %v3564_v61 }
 0x3bf   :  { %4844 = vlog2.f32 %v3230_v6  ;;  %v3361_v6 = vadd.f32 %v3297_v10, %v9360_v36  ;;  %v9369_v36 = vld [vmem:[#allocation68_spill] sm:$0xff] }
 0x3c2   :  { %v8440_v56 = vpop.xlane.xlu1 %3233 }
 0x3c5   :  { %v4837_v39 = vpop.eup %4836 }
 0x3c6   :  { %v8442_v57 = vpop.xlane.xlu1 %3449  ;;  %v4839_v21 = vpop.eup %4838  ;;  %v3280_v47 = vmul.f32 0.6931472, %v4837_v39  ;;  %v9370_v39 = vld [vmem:[#allocation28_spill] sm:$0xff] }
 0x3c7   :  { %v4841_v53 = vpop.eup %4840 }
 0x3ca   :  { %v3236_v43 = vpop.xlane.xlu1 %3235 }
 0x3cb   :  { %4846 = vlog2.f32 %v3236_v43  ;;  %v3462_v43 = vpop.xlane.xlu0 %3461 }
 0x3cc   :  { %4848 = vlog2.f32 %v3446_v19  ;;  %v3518_v19 = vadd.f32 %v3492_v7, %v3470_v0  ;;  %v8513_v0 = vmul.f32 0.6931472, %v4835_v58 }
 0x3cd   :  { %4850 = vlog2.f32 %v3448_v20  ;;  %v3362_v20 = vadd.f32 %v3298_v30, %v9361_v8 }
 0x3ce   :  { %v8444_v63 = vpop.xlane.xlu1 %3451  ;;  %4852 = vlog2.f32 %v8440_v56  ;;  %v3409_v56 = vadd.f32 %v3386_v27, %v3361_v6 }
 0x3cf   :  { %4854 = vlog2.f32 %v8444_v63  ;;  %v4843_v63 = vpop.eup %4842  ;;  %v3684_v46 = vpop.xlane.xlu0 %3683 }
 0x3d2   :  { %v8446_v17 = vpop.xlane.xlu1 %3237 }
 0x3d3   :  { %4856 = vlog2.f32 %v8446_v17  ;;  %v4845_v17 = vpop.eup %4844  ;;  %v3572_v6 = vpop.xlane.xlu0 %3571 }
 0x3d4   :  { %v3278_v10 = vmul.f32 0.6931472, %v4845_v17  ;;  %v9372_v17 = vld [vmem:[#allocation9_spill] sm:$0xff] }
 0x3d5   :  { %v4847_v49 = vpop.eup %4846 }
 0x3d6   :  { %v8451_v4 = vpop.xlane.xlu1 %3453  ;;  %v4849_v18 = vpop.eup %4848  ;;  %v3284_v7 = vmul.f32 0.6931472, %v4847_v49 }
 0x3d7   :  { %v4851_v23 = vpop.eup %4850 }
 0x3d8   :  { %v4853_v30 = vpop.eup %4852  ;;  %v3496_v8 = vmul.f32 0.6931472, %v4851_v23 }
 0x3d9   :  { %v4855_v27 = vpop.eup %4854 }
 0x3da   :  { %v3674_v59 = vpop.xlane.xlu1 %3673 }
 0x3db   :  { %v3705_v62 = vsub.f32 %v8306_v40, %v3674_v59  ;;  %v3410_v59 = vadd.f32 %v3388_v51, %v3362_v20  ;;  %v8515_v51 = vmul.f32 0.6931472, %v4839_v21  ;;  %v9371_v20 = vld [vmem:[#allocation82_spill] sm:$0xff] }
 0x3dd   :  { %v3721_v28 = vmul.f32 %v4927_v31, %v3705_v62  ;;  %v9362_v31 = vld [vmem:[#allocation72_spill] sm:$0xff] }
 0x3de   :  { %v3240_v50 = vpop.xlane.xlu1 %3239 }
 0x3df   :  { %v3754_v29 = vsel %vm3753_vm11, %v3721_v28, 0.0  ;;  %4858 = vlog2.f32 %v3240_v50  ;;  %v3581_v28 = vadd.f32 %v8322_v60, %v9362_v31  ;;  %v8494_v50 = vadd.f32 %v8331_v1, %v9365_v38  ;;  %v9373_v38 = vld [vmem:[#allocation69_spill] sm:$0xff] }
 0x3e0   :  { %v3756_v40 = vadd.f32 %v3755_v15, %v3754_v29  ;;  %4860 = vlog2.f32 %v8438_v3  ;;  %v3582_v15 = vadd.f32 %v3518_v19, %v9363_v9  ;;  %v9364_v29 = vld [vmem:[#allocation88_spill] sm:$0xff]  ;;  %v8505_v1 = vmul.f32 0.6931472, %v4829_v54 }
 0x3e1   :  { %v3471_v52 = vadd.f32 %v8324_v26, %v9364_v29  ;;  %v9366_v3 = vld [vmem:[#allocation40_spill] sm:$0xff]  ;;  %v3629_v60 = vadd.f32 %v3602_v24, %v3581_v28  ;;  %v3474_v26 = vadd.f32 %v3410_v59, %v9367_v37  ;;  %v3520_v49 = vadd.f32 %v3496_v8, %v8494_v50  ;;  %v9382_v8 = vld [vmem:[#allocation14_spill] sm:$0xff] }
 0x3e2   :  { %v3456_v5 = vpop.xlane.xlu1 %3455  ;;  %v8497_v45 = vadd.f32 %v3409_v56, %v9366_v3  ;;  %v3630_v14 = vadd.f32 %v3604_v2, %v3582_v15  ;;  %v3500_v56 = vmul.f32 0.6931472, %v4855_v27 }
 0x3e3   :  { %4862 = vlog2.f32 %v3456_v5 }
 0x3e4   :  { %4864 = vlog2.f32 %v8442_v57  ;;  %v9368_v57 = vld [vmem:[#allocation10_spill] sm:$0xff]  ;;  %v3522_v3 = vadd.f32 %v3500_v56, %v3474_v26  ;;  %v9377_v26 = vld [vmem:[#allocation41_spill] sm:$0xff] }
 0x3e5   :  { %4866 = vlog2.f32 %v8448_v22  ;;  %v8509_v22 = vmul.f32 0.6931472, %v4831_v42  ;;  %v3396_v42 = vmul.f32 0.6931472, %v4841_v53 }
 0x3e6   :  { %v3678_v44 = vpop.xlane.xlu1 %3677  ;;  %4868 = vlog2.f32 %v8454_v13  ;;  %v4857_v13 = vpop.eup %4856 }
 0x3e7   :  { %v3707_v33 = vsub.f32 %v8328_v12, %v3678_v44  ;;  %v3300_v44 = vadd.f32 %v3280_v47, %v9368_v57  ;;  %4870 = vlog2.f32 %v8451_v4  ;;  %v3299_v4 = vadd.f32 %v3278_v10, %v9369_v36  ;;  %v9379_v36 = vld [vmem:[#allocation43_spill] sm:$0xff] }
 0x3e8   :  { %v3286_v53 = vmul.f32 0.6931472, %v4857_v13 }
 0x3e9   :  { %v3723_v55 = vmul.f32 %v4928_v41, %v3707_v33  ;;  %v3710_v41 = vsub.f32 %v3630_v14, %v3684_v46  ;;  %v3364_v19 = vadd.f32 %v3300_v44, %v9370_v39  ;;  %v4859_v58 = vpop.eup %4858  ;;  %v3363_v9 = vadd.f32 %v3299_v4, %v9372_v17  ;;  %v9374_v14 = vld [vmem:[#allocation60_spill] sm:$0xff]  ;;  %v9376_v44 = vld [vmem:[#allocation17_spill] sm:$0xff] }
 0x3ea   :  { %v8480_v12 = vpop.xlane.xlu1 %3457  ;;  %v8522_v24 = vpop.eup %4860 }
 0x3eb   :  { %v3757_v32 = vsel %vm3753_vm11, %v3723_v55, 0.0  ;;  %v3494_v55 = vmul.f32 0.6931472, %v4849_v18  ;;  %v3412_v15 = vadd.f32 %v3392_v25, %v3364_v19 }
 0x3ec   :  { %v3758_v61 = vadd.f32 %v3757_v32, %v3756_v40  ;;  %v3302_v32 = vadd.f32 %v3284_v7, %v9371_v20 }
 0x3ed   :  { %v4863_v59 = vpop.eup %4862  ;;  %v3519_v47 = vadd.f32 %v3494_v55, %v3471_v52 }
 0x3ee   :  { %v3680_v62 = vpop.xlane.xlu1 %3679  ;;  %v4865_v28 = vpop.eup %4864  ;;  %v3366_v52 = vadd.f32 %v3302_v32, %v9373_v38  ;;  %v3504_v23 = vmul.f32 0.6931472, %v4863_v59 }
 0x3ef   :  { %v3708_v40 = vsub.f32 %v8334_v11, %v3680_v62  ;;  %v4929_v11 = vld [vmem:[%s8628_s0 + $0x18] sm:$0xff]  ;;  %v4931_v62 = vld [vmem:[%s8628_s0 + $0x20] sm:$0xff] }
 0x3f0   :  { %v3414_v4 = vadd.f32 %v3396_v42, %v3366_v52  ;;  %v9383_v42 = vld [vmem:[#allocation44_spill] sm:$0xff] }
 0x3f1   :  { %v3724_v5 = vmul.f32 %v4929_v11, %v3708_v40  ;;  %v4867_v40 = vpop.eup %4866  ;;  %v9375_v11 = vld [vmem:[#allocation93_spill] sm:$0xff] }
 0x3f2   :  { %v3460_v34 = vpop.xlane.xlu1 %3459  ;;  %v4869_v18 = vpop.eup %4868  ;;  %v3398_v59 = vmul.f32 0.6931472, %v4867_v40 }
 0x3f3   :  { %v3759_v33 = vsel %vm3753_vm11, %v3724_v5, 0.0  ;;  %4872 = vlog2.f32 %v3460_v34  ;;  %v3303_v5 = vadd.f32 %v3286_v53, %v9375_v11  ;;  %v4871_v10 = vpop.eup %4870  ;;  %v3583_v34 = vadd.f32 %v3519_v47, %v9376_v44 }
 0x3f4   :  { %v3760_v54 = vadd.f32 %v3759_v33, %v3758_v61  ;;  %4874 = vlog2.f32 %v8465_v35  ;;  %v3612_v35 = vmul.f32 0.6931472, %v4843_v63  ;;  %v3282_v61 = vmul.f32 0.6931472, %v4853_v30  ;;  %v3574_v63 = vpop.xlane.xlu0 %3573  ;;  %v9378_v33 = vld [vmem:[#allocation27_spill] sm:$0xff] }
 0x3f5   :  { %4876 = vlog2.f32 %v8468_v16  ;;  %v4930_v16 = vld [vmem:[%s8628_s0 + $0x28] sm:$0xff]  ;;  %v3411_v30 = vadd.f32 %v8505_v1, %v3363_v9  ;;  %v3476_v27 = vadd.f32 %v3412_v15, %v9378_v33  ;;  %v3367_v20 = vadd.f32 %v3303_v5, %v9382_v8  ;;  %v9385_v9 = vld [vmem:[#allocation94_spill] sm:$0xff] }
 0x3f6   :  { %v3682_v48 = vpop.xlane.xlu1 %3681  ;;  %4878 = vlog2.f32 %v3462_v43  ;;  %v3726_v2 = vmul.f32 %v4930_v16, %v3710_v41  ;;  %v3288_v43 = vmul.f32 0.6931472, %v4859_v58  ;;  %v3301_v37 = vadd.f32 %v3282_v61, %v9374_v14 }
 0x3f7   :  { %v3709_v21 = vsub.f32 %v3629_v60, %v3682_v48  ;;  %4880 = vlog2.f32 %v3572_v6  ;;  %v9380_v6 = vld [vmem:[#allocation45_spill] sm:$0xff]  ;;  %v3524_v1 = vadd.f32 %v3504_v23, %v3476_v27  ;;  %v3502_v56 = vmul.f32 0.6931472, %v4871_v10 }
 0x3f8   :  { %4882 = vlog2.f32 %v8480_v12  ;;  %v3763_v57 = vsel %vm3753_vm11, %v3726_v2, 0.0  ;;  %v3498_v12 = vmul.f32 0.6931472, %v4865_v28  ;;  %v3304_v7 = vadd.f32 %v3288_v43, %v9377_v26  ;;  %v3576_v55 = vpop.xlane.xlu0 %3575  ;;  %v9381_v48 = vld [vmem:[#allocation85_spill] sm:$0xff] }
 0x3f9   :  { %v3725_v31 = vmul.f32 %v4931_v62, %v3709_v21  ;;  %4884 = vlog2.f32 %v3574_v63  ;;  %v3584_v39 = vadd.f32 %v3520_v49, %v9380_v6  ;;  %v3365_v58 = vadd.f32 %v3301_v37, %v9381_v48  ;;  %v9392_v48 = vld [vmem:[#allocation35_spill] sm:$0xff] }
 0x3fa   :  { %v3570_v29 = vpop.xlane.xlu1 %3569  ;;  %v3521_v32 = vadd.f32 %v3498_v12, %v8497_v45  ;;  %v3631_v61 = vadd.f32 %v8509_v22, %v3583_v34  ;;  %v3368_v2 = vadd.f32 %v3304_v7, %v9383_v42  ;;  %v3478_v63 = vadd.f32 %v3414_v4, %v9385_v9  ;;  %v9386_v22 = vld [vmem:[#allocation23_spill] sm:$0xff]  ;;  %v9388_v34 = vld [vmem:[#allocation90_spill] sm:$0xff] }
 0x3fb   :  { %v3761_v60 = vsel %vm3753_vm11, %v3725_v31, 0.0  ;;  %v9384_v31 = vld [vmem:[#allocation73_spill] sm:$0xff]  ;;  %v3415_v45 = vadd.f32 %v3398_v59, %v3367_v20  ;;  %v3413_v49 = vadd.f32 %v8515_v51, %v3365_v58  ;;  %v3588_v38 = vadd.f32 %v3524_v1, %v9386_v22  ;;  %v9389_v7 = vld [vmem:[#allocation39_spill] sm:$0xff]  ;;  %v4934_v20 = vld [vmem:[%s8628_s0 + $0x48] sm:$0xff] }
 0x3fc   :  { %v3762_v46 = vadd.f32 %v3761_v60, %v3760_v54  ;;  %v3586_v54 = vadd.f32 %v3522_v3, %v9379_v36  ;;  %v3475_v28 = vadd.f32 %v3411_v30, %v9384_v31  ;;  %v3632_v40 = vadd.f32 %v8513_v0, %v3584_v39  ;;  %v4932_v60 = vld [vmem:[%s8628_s0 + $0x30] sm:$0xff] }
 0x3fd   :  { %v4873_v50 = vpop.eup %4872  ;;  %v3610_v11 = vmul.f32 0.6931472, %v8522_v24  ;;  %v3614_v5 = vmul.f32 0.6931472, %v4869_v18  ;;  %v3479_v33 = vadd.f32 %v3415_v45, %v9389_v7  ;;  %v4933_v18 = vld [vmem:[%s8628_s0 + $0x38] sm:$0xff] }
 0x3fe   :  { %v3464_v25 = vpop.xlane.xlu1 %3463  ;;  %v3764_v13 = vadd.f32 %v3763_v57, %v3762_v46  ;;  %v4875_v41 = vpop.eup %4874  ;;  %v3508_v21 = vmul.f32 0.6931472, %v4873_v50  ;;  %v3634_v17 = vadd.f32 %v3612_v35, %v3586_v54  ;;  %v3523_v52 = vadd.f32 %v3502_v56, %v3475_v28  ;;  %v9387_v35 = vld [vmem:[#allocation87_spill] sm:$0xff]  ;;  %v9391_v54 = vld [vmem:[#allocation34_spill] sm:$0xff] }
 0x3ff   :  { %4886 = vlog2.f32 %v3464_v25  ;;  %v4877_v19 = vpop.eup %4876  ;;  %v3400_v16 = vmul.f32 0.6931472, %v4875_v41  ;;  %v3585_v37 = vadd.f32 %v3521_v32, %v9387_v35  ;;  %v3477_v50 = vadd.f32 %v3413_v49, %v9388_v34  ;;  %v9390_v41 = vld [vmem:[#allocation50_spill] sm:$0xff]  ;;  %v9394_v49 = vld [vmem:[#allocation63_spill] sm:$0xff] }
 0x400   :  { %4888 = vlog2.f32 %v3570_v29  ;;  %v4879_v53 = vpop.eup %4878  ;;  %v3692_v29 = vpop.xlane.xlu0 %3691  ;;  %v3526_v3 = vadd.f32 %v3508_v21, %v3478_v63  ;;  %v3616_v23 = vmul.f32 0.6931472, %v4877_v19  ;;  %v3587_v4 = vadd.f32 %v3523_v52, %v9391_v54  ;;  %v9393_v63 = vld [vmem:[#allocation78_spill] sm:$0xff] }
 0x401   :  { %4890 = vlog2.f32 %v3576_v55  ;;  %v4881_v62 = vpop.eup %4880  ;;  %v3416_v46 = vadd.f32 %v3400_v16, %v3368_v2  ;;  %v3714_v57 = vsub.f32 %v3634_v17, %v3692_v29  ;;  %v3633_v36 = vadd.f32 %v3610_v11, %v3585_v37  ;;  %v4937_v37 = vld [vmem:[%s8628_s0 + $0x50] sm:$0xff]  ;;  %v4940_v54 = vld [vmem:[%s8628_s0 + $0x78] sm:$0xff] }
 0x402   :  { %v3686_v47 = vpop.xlane.xlu1 %3685  ;;  %v4883_v15 = vpop.eup %4882  ;;  %v3636_v30 = vadd.f32 %v3616_v23, %v3588_v38  ;;  %v3590_v24 = vadd.f32 %v3526_v3, %v9390_v41  ;;  %v3510_v39 = vmul.f32 0.6931472, %v4879_v53  ;;  %v3620_v19 = vmul.f32 0.6931472, %v4881_v62  ;;  %v4935_v62 = vld [vmem:[%s8628_s0 + $0x40] sm:$0xff] }
 0x403   :  { %v3711_v43 = vsub.f32 %v3631_v61, %v3686_v47  ;;  %v4885_v51 = vpop.eup %4884  ;;  %v3506_v12 = vmul.f32 0.6931472, %v4883_v15  ;;  %v3480_v58 = vadd.f32 %v3416_v46, %v9392_v48  ;;  %v3730_v1 = vmul.f32 %v4934_v20, %v3714_v57 }
 0x404   :  { %v3696_v25 = vpop.xlane.xlu0 %3695  ;;  %v3527_v2 = vadd.f32 %v3510_v39, %v3479_v33  ;;  %v3638_v47 = vadd.f32 %v3620_v19, %v3590_v24  ;;  %v3635_v28 = vadd.f32 %v3614_v5, %v3587_v4  ;;  %v3622_v46 = vmul.f32 0.6931472, %v4885_v51  ;;  %v4939_v51 = vld [vmem:[%s8628_s0 + $0x60] sm:$0xff] }
 0x405   :  { %v3727_v14 = vmul.f32 %v4932_v60, %v3711_v43  ;;  %v3525_v32 = vadd.f32 %v3506_v12, %v3477_v50  ;;  %v3716_v59 = vsub.f32 %v3636_v30, %v3696_v25  ;;  %v3771_v38 = vsel %vm3753_vm11, %v3730_v1, 0.0  ;;  %v9395_v60 = vld [vmem:[#allocation46_spill] sm:$0xff] }
 0x406   :  { %v3688_v10 = vpop.xlane.xlu1 %3687 }
 0x407   :  { %v3765_v0 = vsel %vm3753_vm11, %v3727_v14, 0.0  ;;  %v3712_v44 = vsub.f32 %v3632_v40, %v3688_v10  ;;  %v3589_v22 = vadd.f32 %v3525_v32, %v9394_v49  ;;  %v4936_v40 = vld [vmem:[%s8628_s0 + $0x58] sm:$0xff]  ;;  %v3591_v14 = vadd.f32 %v3527_v2, %v9395_v60 }
 0x408   :  { %v3766_v26 = vadd.f32 %v3765_v0, %v3764_v13  ;;  %v3700_v17 = vpop.xlane.xlu0 %3699  ;;  %v3732_v52 = vmul.f32 %v4936_v40, %v3716_v59 }
 0x409   :  { %v4887_v27 = vpop.eup %4886  ;;  %v3728_v55 = vmul.f32 %v4933_v18, %v3712_v44  ;;  %v3718_v35 = vsub.f32 %v3638_v47, %v3700_v17  ;;  %v3639_v50 = vadd.f32 %v3622_v46, %v3591_v14 }
 0x40a   :  { %v4889_v6 = vpop.eup %4888  ;;  %v3512_v13 = vmul.f32 0.6931472, %v4887_v27  ;;  %v3690_v8 = vpop.xlane.xlu1 %3689  ;;  %v3775_v30 = vsel %vm3753_vm11, %v3732_v52, 0.0 }
 0x40b   :  { %v3767_v56 = vsel %vm3753_vm11, %v3728_v55, 0.0  ;;  %v3713_v21 = vsub.f32 %v3633_v36, %v3690_v8  ;;  %v4891_v61 = vpop.eup %4890  ;;  %v3618_v53 = vmul.f32 0.6931472, %v4889_v6  ;;  %v4941_v6 = vld [vmem:[%s8628_s0 + $0x70] sm:$0xff] }
 0x40c   :  { %v3528_v16 = vadd.f32 %v3512_v13, %v3480_v58  ;;  %v3768_v42 = vadd.f32 %v3767_v56, %v3766_v26  ;;  %v3624_v15 = vmul.f32 0.6931472, %v4891_v61  ;;  %v3704_v57 = vpop.xlane.xlu0 %3703  ;;  %v4938_v26 = vld [vmem:[%s8628_s0 + $0x68] sm:$0xff] }
 0x40d   :  { %v3729_v31 = vmul.f32 %v4935_v62, %v3713_v21  ;;  %v3637_v23 = vadd.f32 %v3618_v53, %v3589_v22  ;;  %v3734_v7 = vmul.f32 %v4938_v26, %v3718_v35 }
 0x40e   :  { %v3694_v9 = vpop.xlane.xlu1 %3693  ;;  %v3592_v43 = vadd.f32 %v3528_v16, %v9393_v63 }
 0x40f   :  { %v3769_v45 = vsel %vm3753_vm11, %v3729_v31, 0.0  ;;  %v3715_v29 = vsub.f32 %v3635_v28, %v3694_v9  ;;  %v3779_v36 = vsel %vm3753_vm11, %v3734_v7, 0.0 }
 0x410   :  { %v3770_v3 = vadd.f32 %v3769_v45, %v3768_v42  ;;  %v3640_v5 = vadd.f32 %v3624_v15, %v3592_v43 }
 0x411   :  { %v3731_v11 = vmul.f32 %v4937_v37, %v3715_v29 }
 0x412   :  { %v3772_v10 = vadd.f32 %v3771_v38, %v3770_v3  ;;  %v3698_v12 = vpop.xlane.xlu1 %3697  ;;  %v3720_v33 = vsub.f32 %v3640_v5, %v3704_v57 }
 0x413   :  { %v3773_v0 = vsel %vm3753_vm11, %v3731_v11, 0.0  ;;  %v3717_v44 = vsub.f32 %v3637_v23, %v3698_v12 }
 0x414   :  { %v3774_v34 = vadd.f32 %v3773_v0, %v3772_v10  ;;  %v3736_v4 = vmul.f32 %v4940_v54, %v3720_v33 }
 0x415   :  { %v3733_v27 = vmul.f32 %v4939_v51, %v3717_v44 }
 0x416   :  { %v3776_v25 = vadd.f32 %v3775_v30, %v3774_v34  ;;  %v3702_v41 = vpop.xlane.xlu1 %3701  ;;  %v3783_v13 = vsel %vm3753_vm11, %v3736_v4, 0.0 }
 0x417   :  { %v3777_v24 = vsel %vm3753_vm11, %v3733_v27, 0.0  ;;  %v3719_v18 = vsub.f32 %v3639_v50, %v3702_v41 }
 0x418   :  { %v3778_v55 = vadd.f32 %v3777_v24, %v3776_v25 }
 0x419   :  { %v3735_v39 = vmul.f32 %v4941_v6, %v3719_v18 }
 0x41a   :  { %v3780_v19 = vadd.f32 %v3779_v36, %v3778_v55 }
 0x41b   :  { %v3781_v48 = vsel %vm3753_vm11, %v3735_v39, 0.0 }
 0x41c   :  { %v3782_v58 = vadd.f32 %v3781_v48, %v3780_v19 }
 0x41e   :  { %v3784_v8 = vadd.f32 %v3783_v13, %v3782_v58 }
 0x420   :  { %v3785_v20 = vrot.slane %v3784_v8, 4 }
 0x422   :  { %v3786_v1 = vadd.f32 %v3785_v20, %v3784_v8 }
 0x424   :  { %v3787_v32 = vrot.slane %v3786_v1, 2 }
 0x426   :  { %v3788_v56 = vadd.f32 %v3787_v32, %v3786_v1 }
 0x428   :  { %v3789_v21 = vrot.slane %v3788_v56, 1 }
 0x42a   :  { %v3790_v61 = vadd.f32 %v3789_v21, %v3788_v56 }
 0x42c   :  { %3793 = vperm.xlu1 %4666, %v3790_v61  }
 0x42d   :  { %4953 = shalt.err (!%p4950_p4)
}
 0x42e   :  { %s4954_s23 = scalar_lea.hbm %s8633_s5, 128 }
 0x42f   :  { %p4955_p5 = scmp.ne.s32.totalorder %s8633_s5, %s4954_s23  ;;  %p4958_p6 = scmp.lt.u32.totalorder %s4954_s23, %s8633_s5 }
 0x431   :  { %p4960_p7 = pnand %p4958_p6, %p4955_p5 }
 0x433   :  { %4963 = shalt.err (!%p4960_p7)
}
 0x434   :  { %3806 = dma.vmem_to_hbm [thread:$0]  %s3804_s21, 128, %s8633_s5, [#allocation4]  }
 0x435   :  { %s5002_s29 = smov [#allocation5]  }
 0x436   :  { %s3813_s30 = sshll.u32 %s5002_s29, 4  ;;  %s3814_s30 = int_to_ptr.vmem [resolvable:$true] %s3813_s30 }
 0x437   :  { %s4964_s1 = scalar_lea.vmem %s3814_s30, 128  ;;  %p4969_p9 = scmp.lt.s32.totalorder %s3814_s30, %s3814_s30 }
 0x438   :  { %p4965_p8 = scmp.ne.s32.totalorder %s3814_s30, %s4964_s1  ;;  %p4970_p10 = scmp.lt.s32.totalorder %s4964_s1, %s4964_s1 }
 0x43a   :  { %p4971_p11 = por %p4970_p10, %p4969_p9 }
 0x43c   :  { %p4972_p12 = pnand %p4971_p11, %p4965_p8 }
 0x4ab   :  { %v3794_v59 = vpop.permute.xlu1 %3793 }
 0x4ac   :  { %3796 = vst [vmem:[#allocation5] sm:$0xff] %v3794_v59 }
 0x4ad   :  { %4975 = shalt.err (!%p4972_p12)
}
 0x4ae   :  { %s4976_s9 = scalar_lea.hbm %s8634_s6, 128 }
 0x4af   :  { %p4977_p13 = scmp.ne.s32.totalorder %s8634_s6, %s4976_s9  ;;  %p4980_p0 = scmp.lt.u32.totalorder %s4976_s9, %s8634_s6 }
 0x4b1   :  { %p4982_p1 = pnand %p4980_p0, %p4977_p13 }
 0x4b3   :  { %4985 = shalt.err (!%p4982_p1)
}
 0x4b4   :  { %3816 = dma.vmem_to_hbm [thread:$0]  %s3814_s30, 128, %s8634_s6, [#allocation6]  }
 0x4b5   :  { %4986 = dma.done.wait [#allocation4], 128  }
 0x4b6   :  { %4987 = vsyncadd [#allocation4], 4294967168 }
 0x4b7   :  { %4988 = dma.done.wait [#allocation6], 128  }
 0x4b8   :  { %4989 = vsyncadd [#allocation6], 4294967168 }
 0x4b9   :  { %3823 = vsyncpa [#allocation4], 1 }
 0x4ba   :  { %3824 = vsyncpa [#allocation6], 1 }

</bundles_post_ra>
